<compile_context>
chip_gen: v7x
topology: tpu7x:2x2x1
jax: 0.10.0
libtpu: 0.0.40
codegen_flags: <defaults>
</compile_context>

<pallas_src>
import functools
import math

import jax
import jax.numpy as jnp
from jax.experimental import pallas as pl
from jax.experimental.pallas import tpu as pltpu


NC_PAD = 128  # pad fc3's output dim to one full lane width

_VMEM = pl.BlockSpec(memory_space=pltpu.MemorySpace.VMEM)


# ----------------------------- Pallas kernels ------------------------------ #
def conv1_fused(x_flat, w, b, *, kh, seg, out_w):
    """Conv2d(C_in, C_out, (kh, 1), stride 1) + bias + ReLU with the im2col
    done in-kernel.

    x_flat: (C, H*N*W) bf16 laid out channel-major, then H, then batch, then W,
            so the `kh` shifted row-views are `kh` static lane slices.
    w:      (Cout, kh*C) bf16, columns ordered (kernel_row, channel).
    b:      (Cout, 1) f32.
    Returns relu(conv + b): (Cout, out_w) f32, columns ordered (h_out, n, w)
    -> lane-dense output (out_w = H_out*N*W)."""
    C = x_flat.shape[0]
    Cout = w.shape[0]

    def kernel(x_ref, w_ref, b_ref, o_ref):
        # Unrolled at trace time: kh small static matmuls accumulated in f32.
        acc = jnp.dot(w_ref[:, 0:C], x_ref[:, 0:out_w],
                      preferred_element_type=jnp.float32)
        for i in range(1, kh):
            xi = x_ref[:, i * seg:i * seg + out_w]        # (C, out_w) bf16
            wi = w_ref[:, i * C:(i + 1) * C]              # (Cout, C) bf16
            acc = acc + jnp.dot(wi, xi, preferred_element_type=jnp.float32)
        o_ref[...] = jnp.maximum(acc + b_ref[...], 0.0)

    return pl.pallas_call(
        kernel,
        out_shape=jax.ShapeDtypeStruct((Cout, out_w), jnp.float32),
        in_specs=[_VMEM, _VMEM, _VMEM],
        out_specs=_VMEM,
    )(x_flat, w, b)


def _conv2_matmul_relu_kernel(w_ref, p_ref, o_ref):
    # (Cout, K) bf16 @ (K, Mpad) bf16 -> f32; Mpad = 128 so stores are lane-dense.
    acc = jnp.dot(w_ref[...], p_ref[...], preferred_element_type=jnp.float32)
    o_ref[...] = jnp.maximum(acc, 0.0)


def conv2_matmul_relu(w, patches):
    """w: (Cout, K) bf16, patches: (K, Mpad) bf16. Returns relu(w @ patches) f32."""
    Cout = w.shape[0]
    Mp = patches.shape[1]
    return pl.pallas_call(
        _conv2_matmul_relu_kernel,
        out_shape=jax.ShapeDtypeStruct((Cout, Mp), jnp.float32),
        in_specs=[_VMEM, _VMEM],
        out_specs=_VMEM,
    )(w, patches)


def _classifier_kernel(x_ref, w1_ref, b1_ref, w2_ref, b2_ref, w3_ref, b3_ref,
                       o_ref):
    """Fused fc1+ReLU+fc2+ReLU+fc3, single invocation, everything VMEM-resident.
    bf16 matmul operands, f32 accumulation / bias / ReLU epilogues."""
    xb = x_ref[...].astype(jnp.bfloat16)                               # (M, 160)
    h1 = jnp.dot(xb, w1_ref[...], preferred_element_type=jnp.float32)
    h1 = jnp.maximum(h1 + b1_ref[...], 0.0)                            # (M, 1024)
    h2 = jnp.dot(h1.astype(jnp.bfloat16), w2_ref[...],
                 preferred_element_type=jnp.float32)
    h2 = jnp.maximum(h2 + b2_ref[...], 0.0)                            # (M, 1024)
    out = jnp.dot(h2.astype(jnp.bfloat16), w3_ref[...],
                  preferred_element_type=jnp.float32)                  # (M, 128)
    o_ref[...] = out + b3_ref[...]


def fused_classifier(flat, fc1_w, fc1_b, fc2_w, fc2_b, fc3_w, fc3_b):
    """flat: (N, 160) f32; fc weights pre-transposed to (in, out) bf16,
    biases f32 as (1, out); fc3 padded to NC_PAD. Returns (N, NC_PAD) f32.

    Total resident weights ~2.6 MiB bf16 -> fits every generation's VMEM, so
    there is no grid, no streaming, no accumulator scratch."""
    Mb = flat.shape[0]
    NCp = fc3_w.shape[1]
    return pl.pallas_call(
        _classifier_kernel,
        out_shape=jax.ShapeDtypeStruct((Mb, NCp), jnp.float32),
        in_specs=[_VMEM] * 7,
        out_specs=_VMEM,
    )(flat, fc1_w, fc1_b, fc2_w, fc2_b, fc3_w, fc3_b)


# --------------------------------- glue ------------------------------------ #
def im2col_chnw(x, kh, kw):
    """Valid-padding stride-1 patch extraction from a (C, H, N, W) tensor.
    Returns (C*kh*kw, Ho*N*Wo) with (c, kh, kw)-major row ordering, matching
    PyTorch weight.reshape(O, C*kh*kw); columns ordered (h_out, n, w_out)."""
    C, H, N, W = x.shape
    Ho, Wo = H - kh + 1, W - kw + 1
    cols = [x[:, i:i + Ho, :, j:j + Wo]
            for i in range(kh) for j in range(kw)]        # each (C, Ho, N, Wo)
    p = jnp.stack(cols, axis=1)                           # (C, kh*kw, Ho, N, Wo)
    return p.reshape(C * kh * kw, Ho * N * Wo), Ho, Wo


def maxpool_3x3_s2_p1_chnw(x):
    """MaxPool2d(kernel_size=3, stride=2, padding=1) on a (C, H, N, W) tensor.
    Running max over the 9 strided views in plain JAX (one XLA fusion)."""
    C, H, N, W = x.shape
    Ho = (H + 2 - 3) // 2 + 1
    Wo = (W + 2 - 3) // 2 + 1
    xp = jnp.pad(x, ((0, 0), (1, 1), (0, 0), (1, 1)),
                 constant_values=-jnp.inf)
    out = None
    for dh in range(3):
        for dw in range(3):
            v = xp[:, dh:dh + 2 * (Ho - 1) + 1:2, :,
                      dw:dw + 2 * (Wo - 1) + 1:2]
            out = v if out is None else jnp.maximum(out, v)
    return out                                            # (C, Ho, N, Wo)


def init_params(key, num_classes=2):
    """Parameters in PyTorch layout, matching TinyConvNet._initialize_weights."""
    ks = jax.random.split(key, 6)
    # Conv2d(3, 16, (17, 1)): weight ~ N(0, sqrt(2/n)), n = kh*kw*out_channels
    n1 = 17 * 1 * 16
    w1 = jax.random.normal(ks[0], (16, 3, 17, 1), jnp.float32) * math.sqrt(2.0 / n1)
    b1 = jax.random.normal(ks[1], (16,), jnp.float32) * 0.01
    # Conv2d(16, 16, (5, 7), bias=False)
    n2 = 5 * 7 * 16
    w2 = jax.random.normal(ks[2], (16, 16, 5, 7), jnp.float32) * math.sqrt(2.0 / n2)
    # Linear layers: weight ~ N(0, 0.01), bias = 0
    fc1_w = jax.random.normal(ks[3], (1024, 160), jnp.float32) * 0.01
    fc1_b = jnp.zeros((1024,), jnp.float32)
    fc2_w = jax.random.normal(ks[4], (1024, 1024), jnp.float32) * 0.01
    fc2_b = jnp.zeros((1024,), jnp.float32)
    fc3_w = jax.random.normal(ks[5], (num_classes, 1024), jnp.float32) * 0.01
    fc3_b = jnp.zeros((num_classes,), jnp.float32)
    return dict(w1=w1, b1=b1, w2=w2,
                fc1_w=fc1_w, fc1_b=fc1_b,
                fc2_w=fc2_w, fc2_b=fc2_b,
                fc3_w=fc3_w, fc3_b=fc3_b)


def prepare_params(params, num_classes=2):
    """ONE-TIME (outside the jitted forward) layout & dtype preparation:
      * conv1 weight reordered to (Cout, kh*Cin) with (kernel_row, channel)
        column order to match the in-kernel lane-slice im2col; conv2 weight
        reshaped to (Cout, Cin*kh*kw); conv1 bias to (Cout, 1)
      * ALL matmul weights cast to bf16 (f32 accumulation stays in-kernel)
      * fc weights pre-transposed to (in, out); biases stay f32
      * fc3 output dim padded to 128 for a lane-dense output slab
    """
    assert params["fc3_w"].shape[0] == num_classes
    pad = NC_PAD - num_classes
    # (16, 3, 17, 1) -> (16, 17, 3) -> (16, 51): column index = kh*3 + c
    conv1_w = params["w1"][:, :, :, 0].transpose(0, 2, 1).reshape(16, 17 * 3)
    conv2_w = params["w2"].reshape(16, 16 * 5 * 7)
    fc3_w = jnp.pad(params["fc3_w"].T.astype(jnp.bfloat16), ((0, 0), (0, pad)))
    fc3_b = jnp.pad(params["fc3_b"], (0, pad)).reshape(1, NC_PAD).astype(jnp.float32)
    return dict(
        conv1_w=conv1_w.astype(jnp.bfloat16),               # (16, 51)
        conv1_b=params["b1"].reshape(16, 1).astype(jnp.float32),
        conv2_w=conv2_w.astype(jnp.bfloat16),                # (16, 560)
        fc1_w=params["fc1_w"].T.astype(jnp.bfloat16),        # (160, 1024)
        fc1_b=params["fc1_b"].reshape(1, -1).astype(jnp.float32),
        fc2_w=params["fc2_w"].T.astype(jnp.bfloat16),        # (1024, 1024)
        fc2_b=params["fc2_b"].reshape(1, -1).astype(jnp.float32),
        fc3_w=fc3_w,                                         # (1024, 128) bf16
        fc3_b=fc3_b,                                         # (1, 128) f32
    )


@functools.partial(jax.jit, static_argnames=("num_classes",))
def tiny_convnet_forward(prepared, x_nchw, num_classes=2):
    N, C, H, W = x_nchw.shape                                  # (2, 3, 32, 32)
    KH1 = 17
    H1, W1 = H - KH1 + 1, W                                    # 16, 32
    # ------------------------------ features ------------------------------ #
    # Conv2d(3, 16, (17, 1)) + ReLU: input flattened to (C, H*N*W) bf16 so the
    # kernel's im2col is 17 static lane slices; output is lane-dense (16, 1024)
    # in (C, H1, N, W) column order.
    x_flat = x_nchw.transpose(1, 2, 0, 3).reshape(C, H * N * W).astype(jnp.bfloat16)
    y1 = conv1_fused(x_flat, prepared["conv1_w"], prepared["conv1_b"],
                     kh=KH1, seg=N * W, out_w=H1 * N * W1)     # (16, 1024) f32
    y1 = y1.reshape(16, H1, N, W1)                             # (16, 16, 2, 32)
    y1 = maxpool_3x3_s2_p1_chnw(y1)                            # (16, 8, 2, 16)
    # Conv2d(16, 16, (5, 7), bias=False) + ReLU (tiny XLA im2col + Pallas matmul;
    # M padded 80 -> 128 so the kernel's stores are lane-dense, sliced back below).
    p2, H2, W2 = im2col_chnw(y1, 5, 7)                         # (560, 80)
    M2 = p2.shape[1]
    p2 = jnp.pad(p2.astype(jnp.bfloat16), ((0, 0), (0, 128 - M2)))
    y2 = conv2_matmul_relu(prepared["conv2_w"], p2)            # (16, 128) f32
    y2 = y2[:, :M2].reshape(16, H2, N, W2)                     # (16, 4, 2, 10)
    y2 = maxpool_3x3_s2_p1_chnw(y2)                            # (16, 2, 2, 5)
    # ------------- flatten (PyTorch NCHW view order: C, H, W) ------------- #
    flat = y2.transpose(2, 0, 1, 3).reshape(N, -1)             # (N, 160)
    # ----------------------------- classifier ----------------------------- #
    # TODO(synk): nn.Dropout() treated as identity (eval-mode semantics).
    out = fused_classifier(flat,
                           prepared["fc1_w"], prepared["fc1_b"],
                           prepared["fc2_w"], prepared["fc2_b"],
                           prepared["fc3_w"], prepared["fc3_b"])
    return out[:, :num_classes]


if __name__ == "__main__":
    key = jax.random.PRNGKey(0)
    pkey, xkey = jax.random.split(key)
    params = init_params(pkey, num_classes=2)
    prepared = prepare_params(params, num_classes=2)   # one-time layout/cast
    # Input NCHW (2, 3, 32, 32): 32x32 spatial makes the flattened feature dim
    # exactly 160, as required by Linear(160, 1024).
    x = jax.random.normal(xkey, (2, 3, 32, 32), jnp.float32)
    out = tiny_convnet_forward(prepared, x)
    out = jax.block_until_ready(out)
    assert out.shape == (2, 2), out.shape
    print("KERNEL_OK")
</pallas_src>

<mosaic_0001>
module attributes {stable_mosaic.version = 11 : i64} {
  func.func @kernel(%arg0: memref<3x2048xbf16, #tpu.memory_space<vmem>>, %arg1: memref<16x51xbf16, #tpu.memory_space<vmem>>, %arg2: memref<16x1xf32, #tpu.memory_space<vmem>>, %arg3: memref<16x1024xf32, #tpu.memory_space<vmem>>) attributes {dimension_semantics = [], scalar_prefetch = 0 : i64, scratch_operands = 0 : i64, tpu.core_type = #tpu.core_type<tc>} {
    %c0 = arith.constant 0 : index
    %c0_0 = arith.constant 0 : index
    %0 = vector.load %arg1[%c0, %c0_0] : memref<16x51xbf16, #tpu.memory_space<vmem>>, vector<16x3xbf16>
    %c0_1 = arith.constant 0 : index
    %c0_2 = arith.constant 0 : index
    %1 = vector.load %arg0[%c0_1, %c0_2] : memref<3x2048xbf16, #tpu.memory_space<vmem>>, vector<3x1024xbf16>
    %cst = arith.constant dense<0.000000e+00> : vector<16x1024xf32>
    %2 = tpu.matmul %0, %1, %cst {dimension_numbers = #tpu.dot_dimension_numbers<[1], [0], [0], [1], [0, 0, 1, 1], [], []>} : vector<16x3xbf16>, vector<3x1024xbf16>, vector<16x1024xf32> -> vector<16x1024xf32>
    %c0_3 = arith.constant 0 : index
    %c64 = arith.constant 64 : index
    %3 = vector.load %arg0[%c0_3, %c64] : memref<3x2048xbf16, #tpu.memory_space<vmem>>, vector<3x1024xbf16>
    %c0_4 = arith.constant 0 : index
    %c3 = arith.constant 3 : index
    %4 = vector.load %arg1[%c0_4, %c3] : memref<16x51xbf16, #tpu.memory_space<vmem>>, vector<16x3xbf16>
    %cst_5 = arith.constant dense<0.000000e+00> : vector<16x1024xf32>
    %5 = tpu.matmul %4, %3, %cst_5 {dimension_numbers = #tpu.dot_dimension_numbers<[1], [0], [0], [1], [0, 0, 1, 1], [], []>} : vector<16x3xbf16>, vector<3x1024xbf16>, vector<16x1024xf32> -> vector<16x1024xf32>
    %6 = arith.addf %2, %5 : vector<16x1024xf32>
    %c0_6 = arith.constant 0 : index
    %c128 = arith.constant 128 : index
    %7 = vector.load %arg0[%c0_6, %c128] : memref<3x2048xbf16, #tpu.memory_space<vmem>>, vector<3x1024xbf16>
    %c0_7 = arith.constant 0 : index
    %c6 = arith.constant 6 : index
    %8 = vector.load %arg1[%c0_7, %c6] : memref<16x51xbf16, #tpu.memory_space<vmem>>, vector<16x3xbf16>
    %cst_8 = arith.constant dense<0.000000e+00> : vector<16x1024xf32>
    %9 = tpu.matmul %8, %7, %cst_8 {dimension_numbers = #tpu.dot_dimension_numbers<[1], [0], [0], [1], [0, 0, 1, 1], [], []>} : vector<16x3xbf16>, vector<3x1024xbf16>, vector<16x1024xf32> -> vector<16x1024xf32>
    %10 = arith.addf %6, %9 : vector<16x1024xf32>
    %c0_9 = arith.constant 0 : index
    %c192 = arith.constant 192 : index
    %11 = vector.load %arg0[%c0_9, %c192] : memref<3x2048xbf16, #tpu.memory_space<vmem>>, vector<3x1024xbf16>
    %c0_10 = arith.constant 0 : index
    %c9 = arith.constant 9 : index
    %12 = vector.load %arg1[%c0_10, %c9] : memref<16x51xbf16, #tpu.memory_space<vmem>>, vector<16x3xbf16>
    %cst_11 = arith.constant dense<0.000000e+00> : vector<16x1024xf32>
    %13 = tpu.matmul %12, %11, %cst_11 {dimension_numbers = #tpu.dot_dimension_numbers<[1], [0], [0], [1], [0, 0, 1, 1], [], []>} : vector<16x3xbf16>, vector<3x1024xbf16>, vector<16x1024xf32> -> vector<16x1024xf32>
    %14 = arith.addf %10, %13 : vector<16x1024xf32>
    %c0_12 = arith.constant 0 : index
    %c256 = arith.constant 256 : index
    %15 = vector.load %arg0[%c0_12, %c256] : memref<3x2048xbf16, #tpu.memory_space<vmem>>, vector<3x1024xbf16>
    %c0_13 = arith.constant 0 : index
    %c12 = arith.constant 12 : index
    %16 = vector.load %arg1[%c0_13, %c12] : memref<16x51xbf16, #tpu.memory_space<vmem>>, vector<16x3xbf16>
    %cst_14 = arith.constant dense<0.000000e+00> : vector<16x1024xf32>
    %17 = tpu.matmul %16, %15, %cst_14 {dimension_numbers = #tpu.dot_dimension_numbers<[1], [0], [0], [1], [0, 0, 1, 1], [], []>} : vector<16x3xbf16>, vector<3x1024xbf16>, vector<16x1024xf32> -> vector<16x1024xf32>
    %18 = arith.addf %14, %17 : vector<16x1024xf32>
    %c0_15 = arith.constant 0 : index
    %c320 = arith.constant 320 : index
    %19 = vector.load %arg0[%c0_15, %c320] : memref<3x2048xbf16, #tpu.memory_space<vmem>>, vector<3x1024xbf16>
    %c0_16 = arith.constant 0 : index
    %c15 = arith.constant 15 : index
    %20 = vector.load %arg1[%c0_16, %c15] : memref<16x51xbf16, #tpu.memory_space<vmem>>, vector<16x3xbf16>
    %cst_17 = arith.constant dense<0.000000e+00> : vector<16x1024xf32>
    %21 = tpu.matmul %20, %19, %cst_17 {dimension_numbers = #tpu.dot_dimension_numbers<[1], [0], [0], [1], [0, 0, 1, 1], [], []>} : vector<16x3xbf16>, vector<3x1024xbf16>, vector<16x1024xf32> -> vector<16x1024xf32>
    %22 = arith.addf %18, %21 : vector<16x1024xf32>
    %c0_18 = arith.constant 0 : index
    %c384 = arith.constant 384 : index
    %23 = vector.load %arg0[%c0_18, %c384] : memref<3x2048xbf16, #tpu.memory_space<vmem>>, vector<3x1024xbf16>
    %c0_19 = arith.constant 0 : index
    %c18 = arith.constant 18 : index
    %24 = vector.load %arg1[%c0_19, %c18] : memref<16x51xbf16, #tpu.memory_space<vmem>>, vector<16x3xbf16>
    %cst_20 = arith.constant dense<0.000000e+00> : vector<16x1024xf32>
    %25 = tpu.matmul %24, %23, %cst_20 {dimension_numbers = #tpu.dot_dimension_numbers<[1], [0], [0], [1], [0, 0, 1, 1], [], []>} : vector<16x3xbf16>, vector<3x1024xbf16>, vector<16x1024xf32> -> vector<16x1024xf32>
    %26 = arith.addf %22, %25 : vector<16x1024xf32>
    %c0_21 = arith.constant 0 : index
    %c448 = arith.constant 448 : index
    %27 = vector.load %arg0[%c0_21, %c448] : memref<3x2048xbf16, #tpu.memory_space<vmem>>, vector<3x1024xbf16>
    %c0_22 = arith.constant 0 : index
    %c21 = arith.constant 21 : index
    %28 = vector.load %arg1[%c0_22, %c21] : memref<16x51xbf16, #tpu.memory_space<vmem>>, vector<16x3xbf16>
    %cst_23 = arith.constant dense<0.000000e+00> : vector<16x1024xf32>
    %29 = tpu.matmul %28, %27, %cst_23 {dimension_numbers = #tpu.dot_dimension_numbers<[1], [0], [0], [1], [0, 0, 1, 1], [], []>} : vector<16x3xbf16>, vector<3x1024xbf16>, vector<16x1024xf32> -> vector<16x1024xf32>
    %30 = arith.addf %26, %29 : vector<16x1024xf32>
    %c0_24 = arith.constant 0 : index
    %c512 = arith.constant 512 : index
    %31 = vector.load %arg0[%c0_24, %c512] : memref<3x2048xbf16, #tpu.memory_space<vmem>>, vector<3x1024xbf16>
    %c0_25 = arith.constant 0 : index
    %c24 = arith.constant 24 : index
    %32 = vector.load %arg1[%c0_25, %c24] : memref<16x51xbf16, #tpu.memory_space<vmem>>, vector<16x3xbf16>
    %cst_26 = arith.constant dense<0.000000e+00> : vector<16x1024xf32>
    %33 = tpu.matmul %32, %31, %cst_26 {dimension_numbers = #tpu.dot_dimension_numbers<[1], [0], [0], [1], [0, 0, 1, 1], [], []>} : vector<16x3xbf16>, vector<3x1024xbf16>, vector<16x1024xf32> -> vector<16x1024xf32>
    %34 = arith.addf %30, %33 : vector<16x1024xf32>
    %c0_27 = arith.constant 0 : index
    %c576 = arith.constant 576 : index
    %35 = vector.load %arg0[%c0_27, %c576] : memref<3x2048xbf16, #tpu.memory_space<vmem>>, vector<3x1024xbf16>
    %c0_28 = arith.constant 0 : index
    %c27 = arith.constant 27 : index
    %36 = vector.load %arg1[%c0_28, %c27] : memref<16x51xbf16, #tpu.memory_space<vmem>>, vector<16x3xbf16>
    %cst_29 = arith.constant dense<0.000000e+00> : vector<16x1024xf32>
    %37 = tpu.matmul %36, %35, %cst_29 {dimension_numbers = #tpu.dot_dimension_numbers<[1], [0], [0], [1], [0, 0, 1, 1], [], []>} : vector<16x3xbf16>, vector<3x1024xbf16>, vector<16x1024xf32> -> vector<16x1024xf32>
    %38 = arith.addf %34, %37 : vector<16x1024xf32>
    %c0_30 = arith.constant 0 : index
    %c640 = arith.constant 640 : index
    %39 = vector.load %arg0[%c0_30, %c640] : memref<3x2048xbf16, #tpu.memory_space<vmem>>, vector<3x1024xbf16>
    %c0_31 = arith.constant 0 : index
    %c30 = arith.constant 30 : index
    %40 = vector.load %arg1[%c0_31, %c30] : memref<16x51xbf16, #tpu.memory_space<vmem>>, vector<16x3xbf16>
    %cst_32 = arith.constant dense<0.000000e+00> : vector<16x1024xf32>
    %41 = tpu.matmul %40, %39, %cst_32 {dimension_numbers = #tpu.dot_dimension_numbers<[1], [0], [0], [1], [0, 0, 1, 1], [], []>} : vector<16x3xbf16>, vector<3x1024xbf16>, vector<16x1024xf32> -> vector<16x1024xf32>
    %42 = arith.addf %38, %41 : vector<16x1024xf32>
    %c0_33 = arith.constant 0 : index
    %c704 = arith.constant 704 : index
    %43 = vector.load %arg0[%c0_33, %c704] : memref<3x2048xbf16, #tpu.memory_space<vmem>>, vector<3x1024xbf16>
    %c0_34 = arith.constant 0 : index
    %c33 = arith.constant 33 : index
    %44 = vector.load %arg1[%c0_34, %c33] : memref<16x51xbf16, #tpu.memory_space<vmem>>, vector<16x3xbf16>
    %cst_35 = arith.constant dense<0.000000e+00> : vector<16x1024xf32>
    %45 = tpu.matmul %44, %43, %cst_35 {dimension_numbers = #tpu.dot_dimension_numbers<[1], [0], [0], [1], [0, 0, 1, 1], [], []>} : vector<16x3xbf16>, vector<3x1024xbf16>, vector<16x1024xf32> -> vector<16x1024xf32>
    %46 = arith.addf %42, %45 : vector<16x1024xf32>
    %c0_36 = arith.constant 0 : index
    %c768 = arith.constant 768 : index
    %47 = vector.load %arg0[%c0_36, %c768] : memref<3x2048xbf16, #tpu.memory_space<vmem>>, vector<3x1024xbf16>
    %c0_37 = arith.constant 0 : index
    %c36 = arith.constant 36 : index
    %48 = vector.load %arg1[%c0_37, %c36] : memref<16x51xbf16, #tpu.memory_space<vmem>>, vector<16x3xbf16>
    %cst_38 = arith.constant dense<0.000000e+00> : vector<16x1024xf32>
    %49 = tpu.matmul %48, %47, %cst_38 {dimension_numbers = #tpu.dot_dimension_numbers<[1], [0], [0], [1], [0, 0, 1, 1], [], []>} : vector<16x3xbf16>, vector<3x1024xbf16>, vector<16x1024xf32> -> vector<16x1024xf32>
    %50 = arith.addf %46, %49 : vector<16x1024xf32>
    %c0_39 = arith.constant 0 : index
    %c832 = arith.constant 832 : index
    %51 = vector.load %arg0[%c0_39, %c832] : memref<3x2048xbf16, #tpu.memory_space<vmem>>, vector<3x1024xbf16>
    %c0_40 = arith.constant 0 : index
    %c39 = arith.constant 39 : index
    %52 = vector.load %arg1[%c0_40, %c39] : memref<16x51xbf16, #tpu.memory_space<vmem>>, vector<16x3xbf16>
    %cst_41 = arith.constant dense<0.000000e+00> : vector<16x1024xf32>
    %53 = tpu.matmul %52, %51, %cst_41 {dimension_numbers = #tpu.dot_dimension_numbers<[1], [0], [0], [1], [0, 0, 1, 1], [], []>} : vector<16x3xbf16>, vector<3x1024xbf16>, vector<16x1024xf32> -> vector<16x1024xf32>
    %54 = arith.addf %50, %53 : vector<16x1024xf32>
    %c0_42 = arith.constant 0 : index
    %c896 = arith.constant 896 : index
    %55 = vector.load %arg0[%c0_42, %c896] : memref<3x2048xbf16, #tpu.memory_space<vmem>>, vector<3x1024xbf16>
    %c0_43 = arith.constant 0 : index
    %c42 = arith.constant 42 : index
    %56 = vector.load %arg1[%c0_43, %c42] : memref<16x51xbf16, #tpu.memory_space<vmem>>, vector<16x3xbf16>
    %cst_44 = arith.constant dense<0.000000e+00> : vector<16x1024xf32>
    %57 = tpu.matmul %56, %55, %cst_44 {dimension_numbers = #tpu.dot_dimension_numbers<[1], [0], [0], [1], [0, 0, 1, 1], [], []>} : vector<16x3xbf16>, vector<3x1024xbf16>, vector<16x1024xf32> -> vector<16x1024xf32>
    %58 = arith.addf %54, %57 : vector<16x1024xf32>
    %c0_45 = arith.constant 0 : index
    %c960 = arith.constant 960 : index
    %59 = vector.load %arg0[%c0_45, %c960] : memref<3x2048xbf16, #tpu.memory_space<vmem>>, vector<3x1024xbf16>
    %c0_46 = arith.constant 0 : index
    %c45 = arith.constant 45 : index
    %60 = vector.load %arg1[%c0_46, %c45] : memref<16x51xbf16, #tpu.memory_space<vmem>>, vector<16x3xbf16>
    %cst_47 = arith.constant dense<0.000000e+00> : vector<16x1024xf32>
    %61 = tpu.matmul %60, %59, %cst_47 {dimension_numbers = #tpu.dot_dimension_numbers<[1], [0], [0], [1], [0, 0, 1, 1], [], []>} : vector<16x3xbf16>, vector<3x1024xbf16>, vector<16x1024xf32> -> vector<16x1024xf32>
    %62 = arith.addf %58, %61 : vector<16x1024xf32>
    %c0_48 = arith.constant 0 : index
    %c1024 = arith.constant 1024 : index
    %63 = vector.load %arg0[%c0_48, %c1024] : memref<3x2048xbf16, #tpu.memory_space<vmem>>, vector<3x1024xbf16>
    %c0_49 = arith.constant 0 : index
    %c48 = arith.constant 48 : index
    %64 = vector.load %arg1[%c0_49, %c48] : memref<16x51xbf16, #tpu.memory_space<vmem>>, vector<16x3xbf16>
    %cst_50 = arith.constant dense<0.000000e+00> : vector<16x1024xf32>
    %65 = tpu.matmul %64, %63, %cst_50 {dimension_numbers = #tpu.dot_dimension_numbers<[1], [0], [0], [1], [0, 0, 1, 1], [], []>} : vector<16x3xbf16>, vector<3x1024xbf16>, vector<16x1024xf32> -> vector<16x1024xf32>
    %66 = arith.addf %62, %65 : vector<16x1024xf32>
    %c0_51 = arith.constant 0 : index
    %c0_52 = arith.constant 0 : index
    %67 = vector.load %arg2[%c0_51, %c0_52] : memref<16x1xf32, #tpu.memory_space<vmem>>, vector<16x1xf32>
    %68 = vector.broadcast %67 : vector<16x1xf32> to vector<16x1024xf32>
    %69 = arith.addf %66, %68 : vector<16x1024xf32>
    %cst_53 = arith.constant 0.000000e+00 : f32
    %70 = vector.broadcast %cst_53 : f32 to vector<16x1024xf32>
    %71 = arith.maximumf %69, %70 : vector<16x1024xf32>
    %c0_54 = arith.constant 0 : index
    %c0_55 = arith.constant 0 : index
    %72 = vector.load %arg3[%c0_54, %c0_55] : memref<16x1024xf32, #tpu.memory_space<vmem>>, vector<16x1024xf32>
    tpu.vector_store %arg3[%c0_54, %c0_55], %71 {strides = array<i32>} : memref<16x1024xf32, #tpu.memory_space<vmem>>, vector<16x1024xf32>,
    return
  }
}

module attributes {stable_mosaic.version = 11 : i64} {
  func.func @_conv2_matmul_relu_kernel(%arg0: memref<16x560xbf16, #tpu.memory_space<vmem>>, %arg1: memref<560x128xbf16, #tpu.memory_space<vmem>>, %arg2: memref<16x128xf32, #tpu.memory_space<vmem>>) attributes {dimension_semantics = [], scalar_prefetch = 0 : i64, scratch_operands = 0 : i64, tpu.core_type = #tpu.core_type<tc>} {
    %c0 = arith.constant 0 : index
    %c0_0 = arith.constant 0 : index
    %0 = vector.load %arg0[%c0, %c0_0] : memref<16x560xbf16, #tpu.memory_space<vmem>>, vector<16x560xbf16>
    %c0_1 = arith.constant 0 : index
    %c0_2 = arith.constant 0 : index
    %1 = vector.load %arg1[%c0_1, %c0_2] : memref<560x128xbf16, #tpu.memory_space<vmem>>, vector<560x128xbf16>
    %cst = arith.constant dense<0.000000e+00> : vector<16x128xf32>
    %2 = tpu.matmul %0, %1, %cst {dimension_numbers = #tpu.dot_dimension_numbers<[1], [0], [0], [1], [0, 0, 1, 1], [], []>} : vector<16x560xbf16>, vector<560x128xbf16>, vector<16x128xf32> -> vector<16x128xf32>
    %cst_3 = arith.constant 0.000000e+00 : f32
    %3 = vector.broadcast %cst_3 : f32 to vector<16x128xf32>
    %4 = arith.maximumf %2, %3 : vector<16x128xf32>
    %c0_4 = arith.constant 0 : index
    %c0_5 = arith.constant 0 : index
    %5 = vector.load %arg2[%c0_4, %c0_5] : memref<16x128xf32, #tpu.memory_space<vmem>>, vector<16x128xf32>
    tpu.vector_store %arg2[%c0_4, %c0_5], %4 {strides = array<i32>} : memref<16x128xf32, #tpu.memory_space<vmem>>, vector<16x128xf32>,
    return
  }
}

module attributes {stable_mosaic.version = 11 : i64} {
  func.func @_classifier_kernel(%arg0: memref<2x160xf32, #tpu.memory_space<vmem>>, %arg1: memref<160x1024xbf16, #tpu.memory_space<vmem>>, %arg2: memref<1x1024xf32, #tpu.memory_space<vmem>>, %arg3: memref<1024x1024xbf16, #tpu.memory_space<vmem>>, %arg4: memref<1x1024xf32, #tpu.memory_space<vmem>>, %arg5: memref<1024x128xbf16, #tpu.memory_space<vmem>>, %arg6: memref<1x128xf32, #tpu.memory_space<vmem>>, %arg7: memref<2x128xf32, #tpu.memory_space<vmem>>) attributes {dimension_semantics = [], scalar_prefetch = 0 : i64, scratch_operands = 0 : i64, tpu.core_type = #tpu.core_type<tc>} {
    %c0 = arith.constant 0 : index
    %c0_0 = arith.constant 0 : index
    %0 = vector.load %arg0[%c0, %c0_0] : memref<2x160xf32, #tpu.memory_space<vmem>>, vector<2x160xf32>
    %1 = arith.truncf %0 : vector<2x160xf32> to vector<2x160xbf16>
    %c0_1 = arith.constant 0 : index
    %c0_2 = arith.constant 0 : index
    %2 = vector.load %arg1[%c0_1, %c0_2] : memref<160x1024xbf16, #tpu.memory_space<vmem>>, vector<160x1024xbf16>
    %cst = arith.constant dense<0.000000e+00> : vector<2x1024xf32>
    %3 = tpu.matmul %1, %2, %cst {dimension_numbers = #tpu.dot_dimension_numbers<[1], [0], [0], [1], [0, 0, 1, 1], [], []>} : vector<2x160xbf16>, vector<160x1024xbf16>, vector<2x1024xf32> -> vector<2x1024xf32>
    %c0_3 = arith.constant 0 : index
    %c0_4 = arith.constant 0 : index
    %4 = vector.load %arg2[%c0_3, %c0_4] : memref<1x1024xf32, #tpu.memory_space<vmem>>, vector<1x1024xf32>
    %5 = vector.broadcast %4 : vector<1x1024xf32> to vector<2x1024xf32>
    %6 = arith.addf %3, %5 : vector<2x1024xf32>
    %cst_5 = arith.constant 0.000000e+00 : f32
    %7 = vector.broadcast %cst_5 : f32 to vector<2x1024xf32>
    %8 = arith.maximumf %6, %7 : vector<2x1024xf32>
    %9 = arith.truncf %8 : vector<2x1024xf32> to vector<2x1024xbf16>
    %c0_6 = arith.constant 0 : index
    %c0_7 = arith.constant 0 : index
    %10 = vector.load %arg3[%c0_6, %c0_7] : memref<1024x1024xbf16, #tpu.memory_space<vmem>>, vector<1024x1024xbf16>
    %cst_8 = arith.constant dense<0.000000e+00> : vector<2x1024xf32>
    %11 = tpu.matmul %9, %10, %cst_8 {dimension_numbers = #tpu.dot_dimension_numbers<[1], [0], [0], [1], [0, 0, 1, 1], [], []>} : vector<2x1024xbf16>, vector<1024x1024xbf16>, vector<2x1024xf32> -> vector<2x1024xf32>
    %c0_9 = arith.constant 0 : index
    %c0_10 = arith.constant 0 : index
    %12 = vector.load %arg4[%c0_9, %c0_10] : memref<1x1024xf32, #tpu.memory_space<vmem>>, vector<1x1024xf32>
    %13 = vector.broadcast %12 : vector<1x1024xf32> to vector<2x1024xf32>
    %14 = arith.addf %11, %13 : vector<2x1024xf32>
    %cst_11 = arith.constant 0.000000e+00 : f32
    %15 = vector.broadcast %cst_11 : f32 to vector<2x1024xf32>
    %16 = arith.maximumf %14, %15 : vector<2x1024xf32>
    %17 = arith.truncf %16 : vector<2x1024xf32> to vector<2x1024xbf16>
    %c0_12 = arith.constant 0 : index
    %c0_13 = arith.constant 0 : index
    %18 = vector.load %arg5[%c0_12, %c0_13] : memref<1024x128xbf16, #tpu.memory_space<vmem>>, vector<1024x128xbf16>
    %cst_14 = arith.constant dense<0.000000e+00> : vector<2x128xf32>
    %19 = tpu.matmul %17, %18, %cst_14 {dimension_numbers = #tpu.dot_dimension_numbers<[1], [0], [0], [1], [0, 0, 1, 1], [], []>} : vector<2x1024xbf16>, vector<1024x128xbf16>, vector<2x128xf32> -> vector<2x128xf32>
    %c0_15 = arith.constant 0 : index
    %c0_16 = arith.constant 0 : index
    %20 = vector.load %arg6[%c0_15, %c0_16] : memref<1x128xf32, #tpu.memory_space<vmem>>, vector<1x128xf32>
    %21 = vector.broadcast %20 : vector<1x128xf32> to vector<2x128xf32>
    %22 = arith.addf %19, %21 : vector<2x128xf32>
    %c0_17 = arith.constant 0 : index
    %c0_18 = arith.constant 0 : index
    %23 = vector.load %arg7[%c0_17, %c0_18] : memref<2x128xf32, #tpu.memory_space<vmem>>, vector<2x128xf32>
    tpu.vector_store %arg7[%c0_17, %c0_18], %22 {strides = array<i32>} : memref<2x128xf32, #tpu.memory_space<vmem>>, vector<2x128xf32>,
    return
  }
}

</mosaic_0001>

<bundles_post_ra>
// kernel: tiny_convnet_forward.3
= control target key start
LH: loop header
LB: loop body
LE: loop exit
PB: predicated region body
PF: predicated region fallthrough
CT: control target
= control target key end

     0   :  { %8 = vsyncpa [#allocation3], 0  ;;  %s5185_s12 = smov [#allocation2]   ;;  %s6236_s0 = inlined_call_operand.vmem [shape: bf16[3,2048], index: 0, kind: input, shape index: {}]   ;;  %s6237_s1 = inlined_call_operand.hbm [shape: bf16[16,51], index: 1, kind: input, shape index: {}]   ;;  %s6238_s2 = inlined_call_operand.vmem [shape: f32[16,1], index: 2, kind: input, shape index: {}]   ;;  %s6239_s3 = inlined_call_operand.vmem [shape: f32[16,1024], index: 3, kind: output, shape index: {}]  }
   0x1   :  { %s16_s13 = sshll.u32 %s5185_s12, 4  ;;  %s5161_s16 = scalar_lea.hbm %s6237_s1, 128  ;;  %s17_s13 = int_to_ptr.vmem [resolvable:$true] %s16_s13 }
   0x2   :  { %p5162_p0 = scmp.ne.s32.totalorder %s6237_s1, %s5161_s16  ;;  %p5165_p1 = scmp.lt.u32.totalorder %s5161_s16, %s6237_s1 }
   0x4   :  { %p5167_p2 = pnand %p5165_p1, %p5162_p0 }
   0x6   :  { %5170 = shalt.err (!%p5167_p2)
}
   0x7   :  { %s5171_s21 = scalar_lea.vmem %s17_s13, 128  ;;  %p5176_p4 = scmp.lt.s32.totalorder %s17_s13, %s17_s13 }
   0x8   :  { %p5172_p3 = scmp.ne.s32.totalorder %s17_s13, %s5171_s21  ;;  %p5177_p5 = scmp.lt.s32.totalorder %s5171_s21, %s5171_s21 }
   0xa   :  { %p5178_p6 = por %p5177_p5, %p5176_p4 }
   0xc   :  { %p5179_p7 = pnand %p5178_p6, %p5172_p3 }
   0xe   :  { %5182 = shalt.err (!%p5179_p7)
}
   0xf   :  { %s5186_s22 = smov 64   ;;  %s5187_s23 = smov 4  }
  0x10   :  { %22 = dma.hbm_to_vmem [thread:$0]  %s6237_s1, 128, %s17_s13, [#allocation3], %s5186_s22, %s5186_s22, %s5187_s23  }
  0x11   :  { %5183 = dma.done.wait [#allocation3], 128  }
  0x12   :  { %5184 = vsyncadd [#allocation3], 4294967168  ;;  %v48_v0 = vlaneseq  ;;  %v5188_v1 = vmov 1983009808   ;;  %v32_v6 = vld [vmem:[%s6236_s0 + $0x8] sm:$0xff]  ;;  %v31_v7 = vld [vmem:[%s6236_s0] sm:$0xff] }
  0x13   :  { %v46_v2 = vunpack.c.l.s4 %v5188_v1  ;;  %v44_v10 = vcombine.high %v31_v7, %v31_v7  ;;  %v5263_v12 = vld [vmem:[#allocation2] sm:$0xff]   ;;  %v5189_v14 = vmov 0   ;;  %s5190_s1 = smov 125   ;;  %v61_v16 = vcombine.high %v32_v6, %v32_v6  ;;  %s5191_s7 = smov 122   ;;  %v778_v28 = vld [vmem:[%s6236_s0 + $0xa] sm:$0xff] }
  0x14   :  { %v49_v3 = vshrl.u32 %v48_v0, 7  ;;  %176 = vmatprep.mubr.bf16.mxu0 %v5189_v14  ;;  %219 = vmatprep.mubr.bf16.mxu1 %v5189_v14  ;;  %v777_v19 = vld [vmem:[%s6236_s0 + $0x2] sm:$0xff]  ;;  %v4756_v20 = vld.sshfl [vmem:[%s6236_s0 + $0x10] sm:$0x3 pattern:$0x76325410]  ;;  %v809_v30 = vcombine.high %v778_v28, %v778_v28 }
  0x15   :  { %v47_v4 = vunpack.c.0.s8 %v46_v2  ;;  %5125 = vset.pattern.permute.xlu0 %v5189_v14  ;;  %5126 = vset.pattern.permute.xlu1 %v5189_v14  ;;  %v792_v23 = vcombine.high %v777_v19, %v777_v19  ;;  %v5130_v24 = vld [vmem:[#allocation2] sm:$0xff]   ;;  %s5192_s10 = smov 119   ;;  %v4771_v39 = vld.sshfl [vmem:[%s6236_s0 + $0x12] sm:$0x3 pattern:$0x76325410] }
  0x16   :  { %v5132_v31 = vld [vmem:[#allocation2] sm:$0xff]   ;;  %s5193_s15 = smov 116   ;;  %v1337_v42 = vld [vmem:[%s6236_s0 + $0xc] sm:$0xff]  ;;  %s5194_s18 = smov 113   ;;  %vm116_vm0 = vcmask 1040384   ;;  %vm117_vm1 = vcmask 1041408  }
  0x17   :  { %v5241_v5 = vsub.s32 %v47_v4, %v49_v3  ;;  %v1336_v35 = vld [vmem:[%s6236_s0 + $0x4] sm:$0xff]  ;;  %v1368_v46 = vcombine.high %v1337_v42, %v1337_v42  ;;  %v4782_v53 = vld.sshfl [vmem:[%s6236_s0 + $0x14] sm:$0x3 pattern:$0x76325410]  ;;  %s5195_s24 = smov 110  }
  0x18   :  { %v5134_v36 = vld [vmem:[#allocation2] sm:$0xff]   ;;  %v1351_v38 = vcombine.high %v1336_v35, %v1336_v35  ;;  %v1896_v58 = vld [vmem:[%s6236_s0 + $0xe] sm:$0xff]  ;;  %s5196_s27 = smov 107   ;;  %s5198_s5 = smov 101   ;;  %vm103_vm2 = vcmask 523264   ;;  %vm112_vm3 = vcmask 23552  }
  0x19   :  { %v5250_v8 = vrot.slane %v32_v6, %v5241_v5  ;;  %v5253_v9 = vrot.slane %v31_v7, %v5241_v5  ;;  %v5266_v13 = vrot.slane %v44_v10, %v5241_v5  ;;  %v5288_v18 = vrot.slane %v61_v16, %v5241_v5  ;;  %v5136_v45 = vld [vmem:[#allocation2] sm:$0xff]   ;;  %v4793_v2 = vld.sshfl [vmem:[%s6236_s0 + $0x16] sm:$0x3 pattern:$0x76325410]  ;;  %s5199_s8 = smov 98  }
  0x1a   :  { %v5305_v22 = vrot.slane %v777_v19, %v5241_v5  ;;  %v5315_v26 = vrot.slane %v792_v23, %v5241_v5  ;;  %v5331_v29 = vrot.slane %v778_v28, %v5241_v5  ;;  %v5342_v33 = vrot.slane %v809_v30, %v5241_v5  ;;  %v1895_v49 = vld [vmem:[%s6236_s0 + $0x6] sm:$0xff]  ;;  %v2455_v3 = vld [vmem:[%s6236_s0 + $0x10] sm:$0xff]  ;;  %s5201_s11 = smov 95   ;;  %s5202_s14 = smov 92  }
  0x1b   :  { %93 = vrot.lane.b32.xlu1 %v5250_v8, %s5186_s22  ;;  %85 = vrot.lane.b32.xlu0 %v5253_v9, %s5186_s22  ;;  %v5261_v11 = vcombine.high %v5253_v9, %v5253_v9  ;;  %v5276_v15 = vcombine.high %v5266_v13, %v5266_v13  ;;  %v5285_v17 = vcombine.high %v5250_v8, %v5250_v8  ;;  %v5138_v54 = vld [vmem:[#allocation2] sm:$0xff]   ;;  %s5203_s17 = smov 89   ;;  %s5204_s20 = smov 86  }
  0x1c   :  { %v5302_v21 = vcombine.high %v5288_v18, %v5288_v18  ;;  %v5312_v25 = vcombine.high %v5305_v22, %v5305_v22  ;;  %v5321_v27 = vcombine.high %v5315_v26, %v5315_v26  ;;  %v5339_v32 = vcombine.high %v5331_v29, %v5331_v29  ;;  %v5140_v61 = vld [vmem:[#allocation2] sm:$0xff]  }
  0x1d   :  { %v5348_v34 = vcombine.high %v5342_v33, %v5342_v33  ;;  %v5358_v37 = vrot.slane %v1336_v35, %v5241_v5  ;;  %v5369_v41 = vrot.slane %v1351_v38, %v5241_v5  ;;  %v5383_v44 = vrot.slane %v1337_v42, %v5241_v5  ;;  %v5142_v1 = vld [vmem:[#allocation2] sm:$0xff]  }
  0x1e   :  { %v5396_v48 = vrot.slane %v1368_v46, %v5241_v5  ;;  %v5410_v51 = vrot.slane %v1895_v49, %v5241_v5  ;;  %v1910_v52 = vcombine.high %v1895_v49, %v1895_v49  ;;  %v5439_v59 = vrot.slane %v1896_v58, %v5241_v5  ;;  %v5143_v6 = vld [vmem:[#allocation2] sm:$0xff]  }
  0x1f   :  { %87 = vrot.lane.b32.xlu0 %v5261_v11, %s5186_s22  ;;  %39 = vrot.lane.b32.xlu1 %v5263_v12, %s5190_s1  ;;  %v5366_v40 = vcombine.high %v5358_v37, %v5358_v37  ;;  %v5380_v43 = vcombine.high %v5369_v41, %v5369_v41  ;;  %v5393_v47 = vcombine.high %v5383_v44, %v5383_v44  ;;  %s5197_s1 = smov 104   ;;  %v5145_v23 = vld [vmem:[#allocation2] sm:$0xff]   ;;  %v5200_v46 = vmov 65535  }
  0x20   :  { %v5407_v50 = vcombine.high %v5396_v48, %v5396_v48  ;;  %v5420_v55 = vcombine.high %v5410_v51, %v5410_v51  ;;  %v5423_v56 = vrot.slane %v1910_v52, %v5241_v5  ;;  %v1927_v60 = vcombine.high %v1896_v58, %v1896_v58 }
  0x21   :  { %v5447_v62 = vcombine.high %v5439_v59, %v5439_v59  ;;  %v5474_v4 = vrot.slane %v2455_v3, %v5241_v5  ;;  %v2486_v7 = vcombine.high %v2455_v3, %v2455_v3  ;;  %v118_v49 = vsel %vm116_vm0, 4294967295, %v5200_v46 }
  0x22   :  { %v5429_v57 = vcombine.high %v5423_v56, %v5423_v56  ;;  %v5450_v63 = vrot.slane %v1927_v60, %v5241_v5 }
  0x23   :  { %89 = vrot.lane.b32.xlu0 %v5266_v13, %s5186_s22  ;;  %91 = vrot.lane.b32.xlu1 %v5276_v15, %s5186_s22  ;;  %v5484_v10 = vcombine.high %v5474_v4, %v5474_v4  ;;  %v5487_v16 = vrot.slane %v2486_v7, %v5241_v5 }
  0x24   :  { %v5456_v0 = vcombine.high %v5450_v63, %v5450_v63 }
  0x25   :  { %v5495_v19 = vcombine.high %v5487_v16, %v5487_v16 }
  0x27   :  { %95 = vrot.lane.b32.xlu0 %v5285_v17, %s5186_s22  ;;  %97 = vrot.lane.b32.xlu1 %v5288_v18, %s5186_s22 }
  0x2b   :  { %99 = vrot.lane.b32.xlu0 %v5302_v21, %s5186_s22  ;;  %101 = vrot.lane.b32.xlu1 %v4756_v20, %s5186_s22  ;;  %v4804_v20 = vld.sshfl [vmem:[%s6236_s0 + $0x18] sm:$0x3 pattern:$0x76325410] }
  0x2f   :  { %524 = vrot.lane.b32.xlu0 %v5130_v24, %s5191_s7  ;;  %835 = vrot.lane.b32.xlu1 %v5312_v25, %s5186_s22  ;;  %v3014_v24 = vld [vmem:[%s6236_s0 + $0x12] sm:$0xff] }
  0x30   :  { %v5513_v28 = vrot.slane %v3014_v24, %v5241_v5  ;;  %v3045_v35 = vcombine.high %v3014_v24, %v3014_v24  ;;  %v4815_v24 = vld.sshfl [vmem:[%s6236_s0 + $0x1a] sm:$0x3 pattern:$0x76325410] }
  0x32   :  { %v5521_v38 = vcombine.high %v5513_v28, %v5513_v28 }
  0x33   :  { %837 = vrot.lane.b32.xlu0 %v5315_v26, %s5186_s22  ;;  %839 = vrot.lane.b32.xlu1 %v5321_v27, %s5186_s22 }
  0x37   :  { %841 = vrot.lane.b32.xlu0 %v5331_v29, %s5186_s22  ;;  %833 = vrot.lane.b32.xlu1 %v5305_v22, %s5186_s22 }
  0x3b   :  { %787 = vrot.lane.b32.xlu0 %v5132_v31, %s5192_s10  ;;  %843 = vrot.lane.b32.xlu1 %v5339_v32, %s5186_s22 }
  0x3f   :  { %845 = vrot.lane.b32.xlu0 %v5342_v33, %s5186_s22  ;;  %847 = vrot.lane.b32.xlu1 %v5348_v34, %s5186_s22 }
  0x43   :  { %849 = vrot.lane.b32.xlu0 %v4771_v39, %s5186_s22  ;;  %1083 = vrot.lane.b32.xlu1 %v5134_v36, %s5193_s15  ;;  %v5146_v36 = vld [vmem:[#allocation2] sm:$0xff]  }
  0x47   :  { %1394 = vrot.lane.b32.xlu0 %v5366_v40, %s5186_s22  ;;  %1396 = vrot.lane.b32.xlu1 %v5369_v41, %s5186_s22 }
  0x4b   :  { %1398 = vrot.lane.b32.xlu0 %v5380_v43, %s5186_s22  ;;  %1400 = vrot.lane.b32.xlu1 %v5383_v44, %s5186_s22 }
  0x4f   :  { %1392 = vrot.lane.b32.xlu0 %v5358_v37, %s5186_s22  ;;  %1346 = vrot.lane.b32.xlu1 %v5136_v45, %s5194_s18  ;;  %v5526_v45 = vrot.slane %v3045_v35, %v5241_v5 }
  0x51   :  { %v5532_v52 = vcombine.high %v5526_v45, %v5526_v45 }
  0x53   :  { %1402 = vrot.lane.b32.xlu0 %v5393_v47, %s5186_s22  ;;  %1404 = vrot.lane.b32.xlu1 %v5396_v48, %s5186_s22 }
  0x57   :  { %1406 = vrot.lane.b32.xlu0 %v5407_v50, %s5186_s22  ;;  %1408 = vrot.lane.b32.xlu1 %v4782_v53, %s5186_s22  ;;  %v5534_v53 = vsel %vm117_vm1, %v118_v49, 0 }
  0x5b   :  { %1642 = vrot.lane.b32.xlu0 %v5138_v54, %s5195_s24  ;;  %1953 = vrot.lane.b32.xlu1 %v5420_v55, %s5186_s22  ;;  %s5205_s24 = smov 83  }
  0x5f   :  { %1955 = vrot.lane.b32.xlu0 %v5423_v56, %s5186_s22  ;;  %1957 = vrot.lane.b32.xlu1 %v5429_v57, %s5186_s22 }
  0x63   :  { %1959 = vrot.lane.b32.xlu0 %v5439_v59, %s5186_s22  ;;  %1951 = vrot.lane.b32.xlu1 %v5410_v51, %s5186_s22 }
  0x67   :  { %1905 = vrot.lane.b32.xlu0 %v5140_v61, %s5196_s27  ;;  %1961 = vrot.lane.b32.xlu1 %v5447_v62, %s5186_s22 }
  0x6b   :  { %1963 = vrot.lane.b32.xlu0 %v5450_v63, %s5186_s22  ;;  %1965 = vrot.lane.b32.xlu1 %v5456_v0, %s5186_s22 }
  0x6f   :  { %1967 = vrot.lane.b32.xlu0 %v4793_v2, %s5186_s22  ;;  %2201 = vrot.lane.b32.xlu1 %v5142_v1, %s5197_s1 }
  0x73   :  { %2512 = vrot.lane.b32.xlu0 %v5285_v17, %s5186_s22  ;;  %2514 = vrot.lane.b32.xlu1 %v5288_v18, %s5186_s22 }
  0x77   :  { %2516 = vrot.lane.b32.xlu0 %v5302_v21, %s5186_s22  ;;  %2518 = vrot.lane.b32.xlu1 %v5474_v4, %s5186_s22 }
  0x7b   :  { %2510 = vrot.lane.b32.xlu0 %v5250_v8, %s5186_s22  ;;  %2464 = vrot.lane.b32.xlu1 %v5143_v6, %s5198_s5 }
  0x7f   :  { %2520 = vrot.lane.b32.xlu0 %v5484_v10, %s5186_s22  ;;  %2522 = vrot.lane.b32.xlu1 %v5487_v16, %s5186_s22 }
  0x83   :  { %2524 = vrot.lane.b32.xlu0 %v5495_v19, %s5186_s22  ;;  %2526 = vrot.lane.b32.xlu1 %v4804_v20, %s5186_s22  ;;  %v5148_v20 = vld [vmem:[#allocation2] sm:$0xff]  }
  0x87   :  { %2760 = vrot.lane.b32.xlu0 %v5145_v23, %s5199_s8  ;;  %3071 = vrot.lane.b32.xlu1 %v5339_v32, %s5186_s22 }
  0x8b   :  { %3073 = vrot.lane.b32.xlu0 %v5342_v33, %s5186_s22  ;;  %3075 = vrot.lane.b32.xlu1 %v5348_v34, %s5186_s22 }
  0x8d   :  { %v94_v30 = vpop.permute.xlu1 %93  ;;  %v86_v31 = vpop.permute.xlu0 %85 }
  0x8f   :  { %3077 = vrot.lane.b32.xlu0 %v5513_v28, %s5186_s22  ;;  %3069 = vrot.lane.b32.xlu1 %v5331_v29, %s5186_s22 }
  0x91   :  { %v88_v39 = vpop.permute.xlu0 %87  ;;  %v5523_v42 = vpop.permute.xlu1 %39 }
  0x92   :  { %v104_v54 = vsel %vm103_vm2, %v86_v31, %v88_v39 }
  0x93   :  { %3023 = vrot.lane.b32.xlu0 %v5146_v36, %s5201_s11  ;;  %3079 = vrot.lane.b32.xlu1 %v5521_v38, %s5186_s22  ;;  %v121_v23 = vand.u32 %v5534_v53, %v104_v54  ;;  %v323_v54 = vand.u32 %v5534_v53, %v5261_v11 }
  0x95   :  { %v90_v58 = vpop.permute.xlu0 %89  ;;  %v92_v60 = vpop.permute.xlu1 %91 }
  0x96   :  { %v106_v61 = vsel %vm103_vm2, %v90_v58, %v92_v60  ;;  %v105_v1 = vsel %vm103_vm2, %v88_v39, %v90_v58  ;;  %v107_v2 = vsel %vm103_vm2, %v92_v60, %v94_v30 }
  0x97   :  { %v124_v3 = vand.u32 %v5534_v53, %v105_v1  ;;  %v130_v6 = vand.u32 %v5534_v53, %v107_v2  ;;  %v127_v7 = vand.u32 %v5534_v53, %v106_v61  ;;  %3081 = vrot.lane.b32.xlu0 %v5526_v45, %s5186_s22  ;;  %3083 = vrot.lane.b32.xlu1 %v5532_v52, %s5186_s22 }
  0x98   :  { %v329_v1 = vand.u32 %v5534_v53, %v5276_v15  ;;  %v320_v15 = vand.u32 %v5534_v53, %v5253_v9 }
  0x99   :  { %144 = vmatprep.subr.bf16.mxu0 %v124_v3  ;;  %v96_v31 = vpop.permute.xlu0 %95  ;;  %187 = vmatprep.subr.bf16.mxu1 %v130_v6  ;;  %v98_v35 = vpop.permute.xlu1 %97  ;;  %v326_v6 = vand.u32 %v5534_v53, %v5266_v13 }
  0x9a   :  { %v108_v36 = vsel %vm103_vm2, %v94_v30, %v96_v31  ;;  %v109_v39 = vsel %vm103_vm2, %v96_v31, %v98_v35  ;;  %145 = vmatpush1.bf16.msra.mxu0 %v121_v23  ;;  %188 = vmatpush1.bf16.msra.mxu1 %v127_v7  ;;  %v3573_v7 = vld [vmem:[%s6236_s0 + $0x14] sm:$0xff]  ;;  %v341_v23 = vand.u32 %v5534_v53, %v5302_v21 }
  0x9b   :  { %v133_v46 = vand.u32 %v5534_v53, %v108_v36  ;;  %v136_v49 = vand.u32 %v5534_v53, %v109_v39  ;;  %3085 = vrot.lane.b32.xlu0 %v4815_v24, %s5186_s22  ;;  %3319 = vrot.lane.b32.xlu1 %v5148_v20, %s5202_s14  ;;  %v335_v20 = vand.u32 %v5534_v53, %v5285_v17  ;;  %v5149_v39 = vld [vmem:[#allocation2] sm:$0xff]  }
  0x9c   :  { %v5594_v9 = vrot.slane %v3573_v7, %v5241_v5  ;;  %v332_v21 = vand.u32 %v5534_v53, %v5250_v8  ;;  %v569_v24 = vand.u32 %v5312_v25, %v5534_v53  ;;  %v575_v31 = vand.u32 %v5321_v27, %v5534_v53 }
  0x9d   :  { %v100_v58 = vpop.permute.xlu0 %99  ;;  %4757 = vmatmul.mubr.msk.bf16.vlgmr.msra.gmra.mrb[0].mxu0 %vm112_vm3, %v5523_v42  ;;  %4758 = vmatmul.mubr.msk.bf16.vlgmr.msra.gmra.mrb[0].mxu1 %vm112_vm3, %v5523_v42  ;;  %v102_v30 = vpop.permute.xlu1 %101  ;;  %v566_v25 = vand.u32 %v5305_v22, %v5534_v53  ;;  %v572_v27 = vand.u32 %v5315_v26, %v5534_v53 }
  0x9e   :  { %v110_v60 = vsel %vm103_vm2, %v98_v35, %v100_v58  ;;  %230 = vmatprep.subr.bf16.mxu0 %v136_v49  ;;  %v111_v61 = vsel %vm103_vm2, %v100_v58, %v102_v30  ;;  %262 = vmatprep.mubr.bf16.mxu0 %v5189_v14  ;;  %v5622_v8 = vcombine.high %v5594_v9, %v5594_v9 }
  0x9f   :  { %v139_v11 = vand.u32 %v5534_v53, %v110_v60  ;;  %v142_v2 = vand.u32 %v5534_v53, %v111_v61  ;;  %231 = vmatpush1.bf16.msra.mxu0 %v133_v46  ;;  %305 = vmatprep.mubr.bf16.mxu1 %v5189_v14  ;;  %v581_v58 = vand.u32 %v5339_v32, %v5534_v53 }
  0xa0   :  { %343 = vmatprep.subr.bf16.mxu0 %v323_v54  ;;  %3630 = vrot.lane.b32.xlu0 %v5393_v47, %s5186_s22  ;;  %v587_v30 = vand.u32 %v5348_v34, %v5534_v53  ;;  %v578_v60 = vand.u32 %v5331_v29, %v5534_v53  ;;  %v584_v61 = vand.u32 %v5342_v33, %v5534_v53  ;;  %v4826_v29 = vld.sshfl [vmem:[%s6236_s0 + $0x1c] sm:$0x3 pattern:$0x76325410] }
  0xa1   :  { %273 = vmatprep.subr.bf16.mxu1 %v142_v2  ;;  %v5572_v3 = vpop.permute.xlu0 %524  ;;  %3632 = vrot.lane.b32.xlu1 %v5396_v48, %s5186_s22  ;;  %v5596_v13 = vpop.permute.xlu1 %835 }
  0xa2   :  { %274 = vmatpush1.bf16.msra.mxu1 %v139_v11 }
  0xa3   :  { %386 = vmatprep.subr.bf16.mxu1 %v329_v1 }
  0xa4   :  { %3634 = vrot.lane.b32.xlu0 %v5407_v50, %s5186_s22 }
  0xa5   :  { %4759 = vmatmul.mubr.msk.bf16.vlgmr.msra.gmra.mrb[4].mxu0 %vm112_vm3, %v5523_v42  ;;  %4760 = vmatmul.mubr.msk.bf16.vlgmr.msra.gmra.mrb[4].mxu1 %vm112_vm3, %v5523_v42  ;;  %v5598_v17 = vpop.permute.xlu0 %837  ;;  %v338_v42 = vand.u32 %v5534_v53, %v5288_v18  ;;  %v840_v35 = vpop.permute.xlu1 %839  ;;  %v3604_v18 = vcombine.high %v3573_v7, %v3573_v7 }
  0xa6   :  { %344 = vmatpush1.bf16.msra.mxu0 %v320_v15  ;;  %387 = vmatpush1.bf16.msra.mxu1 %v326_v6  ;;  %v852_v26 = vsel %vm103_vm2, %v5596_v13, %v5598_v17  ;;  %v5151_v15 = vld [vmem:[#allocation2] sm:$0xff]   ;;  %v853_v33 = vsel %vm103_vm2, %v5598_v17, %v840_v35 }
  0xa7   :  { %375 = vmatprep.mubr.bf16.mxu0 %v5189_v14  ;;  %418 = vmatprep.mubr.bf16.mxu1 %v5189_v14  ;;  %v5635_v54 = vrot.slane %v3604_v18, %v5241_v5  ;;  %v866_v1 = vand.u32 %v852_v26, %v5534_v53 }
  0xa8   :  { %429 = vmatprep.subr.bf16.mxu0 %v335_v20  ;;  %472 = vmatprep.subr.bf16.mxu1 %v341_v23 }
  0xa9   :  { %3636 = vrot.lane.b32.xlu1 %v5594_v9, %s5186_s22  ;;  %3628 = vrot.lane.b32.xlu0 %v5383_v44, %s5186_s22  ;;  %v5614_v36 = vpop.permute.xlu0 %841  ;;  %v834_v46 = vpop.permute.xlu1 %833  ;;  %v5647_v22 = vcombine.high %v5635_v54, %v5635_v54 }
  0xaa   :  { %v851_v20 = vsel %vm103_vm2, %v834_v46, %v5596_v13 }
  0xab   :  { %v863_v17 = vand.u32 %v851_v20, %v5534_v53 }
  0xad   :  { %4761 = vmatmul.mubr.msk.bf16.vlgmr.msra.gmra.mrb[0].mxu0 %vm112_vm3, %v5263_v12  ;;  %4762 = vmatmul.mubr.msk.bf16.vlgmr.msra.gmra.mrb[0].mxu1 %vm112_vm3, %v5263_v12  ;;  %v5632_v49 = vpop.permute.xlu0 %787  ;;  %v844_v32 = vpop.permute.xlu1 %843 }
  0xae   :  { %430 = vmatpush1.bf16.msra.mxu0 %v332_v21  ;;  %473 = vmatpush1.bf16.msra.mxu1 %v338_v42  ;;  %v869_v42 = vand.u32 %v853_v33, %v5534_v53  ;;  %v855_v18 = vsel %vm103_vm2, %v5614_v36, %v844_v32 }
  0xaf   :  { %461 = vmatprep.mubr.bf16.mxu0 %v5189_v14  ;;  %504 = vmatprep.mubr.bf16.mxu1 %v5189_v14 }
  0xb0   :  { %589 = vmatprep.subr.bf16.mxu0 %v569_v24  ;;  %632 = vmatprep.subr.bf16.mxu1 %v575_v31 }
  0xb1   :  { %3582 = vrot.lane.b32.xlu1 %v5149_v39, %s5203_s17  ;;  %3638 = vrot.lane.b32.xlu0 %v5622_v8, %s5186_s22  ;;  %v846_v34 = vpop.permute.xlu0 %845  ;;  %v848_v2 = vpop.permute.xlu1 %847 }
  0xb2   :  { %v856_v23 = vsel %vm103_vm2, %v844_v32, %v846_v34  ;;  %v857_v39 = vsel %vm103_vm2, %v846_v34, %v848_v2 }
  0xb3   :  { %v878_v24 = vand.u32 %v856_v23, %v5534_v53 }
  0xb5   :  { %4763 = vmatmul.mubr.msk.bf16.vlgmr.msra.gmra.mrb[4].mxu0 %vm112_vm3, %v5263_v12  ;;  %4764 = vmatmul.mubr.msk.bf16.vlgmr.msra.gmra.mrb[4].mxu1 %vm112_vm3, %v5263_v12  ;;  %v854_v12 = vsel %vm103_vm2, %v840_v35, %v5614_v36  ;;  %v850_v6 = vpop.permute.xlu0 %849  ;;  %v5677_v7 = vpop.permute.xlu1 %1083  ;;  %v1134_v36 = vand.u32 %v5380_v43, %v5534_v53  ;;  %v1131_v43 = vand.u32 %v5369_v41, %v5534_v53 }
  0xb6   :  { %590 = vmatpush1.bf16.msra.mxu0 %v566_v25  ;;  %633 = vmatpush1.bf16.msra.mxu1 %v572_v27  ;;  %v872_v11 = vand.u32 %v854_v12, %v5534_v53  ;;  %v858_v21 = vsel %vm103_vm2, %v848_v2, %v850_v6  ;;  %v4132_v25 = vld [vmem:[%s6236_s0 + $0x16] sm:$0xff]  ;;  %v875_v27 = vand.u32 %v855_v18, %v5534_v53 }
  0xb7   :  { %621 = vmatprep.mubr.bf16.mxu0 %v5189_v14  ;;  %664 = vmatprep.mubr.bf16.mxu1 %v5189_v14  ;;  %v884_v31 = vand.u32 %v858_v21, %v5534_v53  ;;  %v5721_v26 = vrot.slane %v4132_v25, %v5241_v5  ;;  %v1140_v12 = vand.u32 %v5393_v47, %v5534_v53 }
  0xb8   :  { %675 = vmatprep.subr.bf16.mxu0 %v581_v58  ;;  %718 = vmatprep.subr.bf16.mxu1 %v587_v30  ;;  %v1128_v58 = vand.u32 %v5366_v40, %v5534_v53  ;;  %v1125_v40 = vand.u32 %v5358_v37, %v5534_v53 }
  0xb9   :  { %3640 = vrot.lane.b32.xlu1 %v5635_v54, %s5186_s22  ;;  %3642 = vrot.lane.b32.xlu0 %v5647_v22, %s5186_s22  ;;  %v5692_v13 = vpop.permute.xlu0 %1394  ;;  %v5694_v35 = vpop.permute.xlu1 %1396 }
  0xba   :  { %v1411_v37 = vsel %vm103_vm2, %v5692_v13, %v5694_v35 }
  0xbb   :  { %v1425_v2 = vand.u32 %v1411_v37, %v5534_v53  ;;  %v1702_v37 = vand.u32 %v5450_v63, %v5534_v53 }
  0xbd   :  { %4766 = vmatmul.mubr.msk.bf16.vlgmr.msra.gmra.mrb[0].mxu0 %vm112_vm3, %v5572_v3  ;;  %4767 = vmatmul.mubr.msk.bf16.vlgmr.msra.gmra.mrb[0].mxu1 %vm112_vm3, %v5572_v3  ;;  %v1399_v46 = vpop.permute.xlu0 %1398  ;;  %v5714_v30 = vpop.permute.xlu1 %1400 }
  0xbe   :  { %676 = vmatpush1.bf16.msra.mxu0 %v578_v60  ;;  %719 = vmatpush1.bf16.msra.mxu1 %v584_v61  ;;  %v1146_v60 = vand.u32 %v5407_v50, %v5534_v53  ;;  %v5152_v61 = vld [vmem:[#allocation2] sm:$0xff]   ;;  %v1413_v50 = vsel %vm103_vm2, %v1399_v46, %v5714_v30  ;;  %v1412_v33 = vsel %vm103_vm2, %v5694_v35, %v1399_v46 }
  0xbf   :  { %886 = vmatprep.subr.bf16.mxu0 %v866_v1  ;;  %707 = vmatprep.mubr.bf16.mxu0 %v5189_v14  ;;  %v1137_v1 = vand.u32 %v5383_v44, %v5534_v53 }
  0xc0   :  { %750 = vmatprep.mubr.bf16.mxu1 %v5189_v14  ;;  %929 = vmatprep.subr.bf16.mxu1 %v872_v11  ;;  %v1143_v11 = vand.u32 %v5396_v48, %v5534_v53 }
  0xc1   :  { %3644 = vrot.lane.b32.xlu1 %v4826_v29, %s5186_s22  ;;  %3878 = vrot.lane.b32.xlu0 %v5151_v15, %s5204_s20  ;;  %v1393_v32 = vpop.permute.xlu0 %1392  ;;  %v5733_v34 = vpop.permute.xlu1 %1346  ;;  %v1431_v15 = vand.u32 %v1413_v50, %v5534_v53  ;;  %v5764_v29 = vcombine.high %v5721_v26, %v5721_v26 }
  0xc2   :  { %v1410_v23 = vsel %vm103_vm2, %v1393_v32, %v5692_v13 }
  0xc5   :  { %4768 = vmatmul.mubr.msk.bf16.vlgmr.msra.gmra.mrb[4].mxu0 %vm112_vm3, %v5572_v3  ;;  %4769 = vmatmul.mubr.msk.bf16.vlgmr.msra.gmra.mrb[4].mxu1 %vm112_vm3, %v5572_v3  ;;  %v881_v3 = vand.u32 %v857_v39, %v5534_v53  ;;  %v1403_v41 = vpop.permute.xlu0 %1402  ;;  %v1405_v47 = vpop.permute.xlu1 %1404 }
  0xc6   :  { %887 = vmatpush1.bf16.msra.mxu0 %v863_v17  ;;  %930 = vmatpush1.bf16.msra.mxu1 %v869_v42  ;;  %v1415_v21 = vsel %vm103_vm2, %v1403_v41, %v1405_v47  ;;  %v1428_v17 = vand.u32 %v1412_v33, %v5534_v53 }
  0xc7   :  { %918 = vmatprep.mubr.bf16.mxu0 %v5189_v14  ;;  %961 = vmatprep.mubr.bf16.mxu1 %v5189_v14 }
  0xc8   :  { %972 = vmatprep.subr.bf16.mxu0 %v878_v24  ;;  %1015 = vmatprep.subr.bf16.mxu1 %v884_v31  ;;  %v1422_v24 = vand.u32 %v1410_v23, %v5534_v53  ;;  %v1437_v31 = vand.u32 %v1415_v21, %v5534_v53 }
  0xc9   :  { %4189 = vrot.lane.b32.xlu1 %v5447_v62, %s5186_s22  ;;  %4191 = vrot.lane.b32.xlu0 %v5450_v63, %s5186_s22  ;;  %v1407_v6 = vpop.permute.xlu0 %1406  ;;  %v1409_v48 = vpop.permute.xlu1 %1408 }
  0xca   :  { %v1417_v42 = vsel %vm103_vm2, %v1407_v6, %v1409_v48 }
  0xcb   :  { %v1443_v35 = vand.u32 %v1417_v42, %v5534_v53 }
  0xcd   :  { %4772 = vmatmul.mubr.msk.bf16.vlgmr.msra.gmra.mrb[0].mxu0 %vm112_vm3, %v5632_v49  ;;  %4773 = vmatmul.mubr.msk.bf16.vlgmr.msra.gmra.mrb[0].mxu1 %vm112_vm3, %v5632_v49  ;;  %v5773_v20 = vpop.permute.xlu0 %1642  ;;  %v5795_v39 = vpop.permute.xlu1 %1953 }
  0xce   :  { %973 = vmatpush1.bf16.msra.mxu0 %v875_v27  ;;  %1016 = vmatpush1.bf16.msra.mxu1 %v881_v3  ;;  %v4837_v3 = vld.sshfl [vmem:[%s6236_s0 + $0x1e] sm:$0x3 pattern:$0x76325410] }
  0xcf   :  { %1004 = vmatprep.mubr.bf16.mxu0 %v5189_v14  ;;  %1047 = vmatprep.mubr.bf16.mxu1 %v5189_v14 }
  0xd0   :  { %1148 = vmatprep.subr.bf16.mxu0 %v1128_v58  ;;  %1191 = vmatprep.subr.bf16.mxu1 %v1134_v36  ;;  %v1687_v58 = vand.u32 %v5420_v55, %v5534_v53  ;;  %v1693_v36 = vand.u32 %v5429_v57, %v5534_v53  ;;  %v1684_v55 = vand.u32 %v5410_v51, %v5534_v53 }
  0xd1   :  { %4193 = vrot.lane.b32.xlu1 %v5456_v0, %s5186_s22  ;;  %4195 = vrot.lane.b32.xlu0 %v5721_v26, %s5186_s22  ;;  %v5797_v18 = vpop.permute.xlu0 %1955  ;;  %v1690_v57 = vand.u32 %v5423_v56, %v5534_v53 }
  0xd2   :  { %v1970_v51 = vsel %vm103_vm2, %v5795_v39, %v5797_v18 }
  0xd5   :  { %4774 = vmatmul.mubr.msk.bf16.vlgmr.msra.gmra.mrb[4].mxu0 %vm112_vm3, %v5632_v49  ;;  %4775 = vmatmul.mubr.msk.bf16.vlgmr.msra.gmra.mrb[4].mxu1 %vm112_vm3, %v5632_v49  ;;  %v4163_v49 = vcombine.high %v4132_v25, %v4132_v25  ;;  %v1416_v25 = vsel %vm103_vm2, %v1405_v47, %v1407_v6 }
  0xd6   :  { %1149 = vmatpush1.bf16.msra.mxu0 %v1125_v40  ;;  %1192 = vmatpush1.bf16.msra.mxu1 %v1131_v43  ;;  %v1440_v27 = vand.u32 %v1416_v25, %v5534_v53  ;;  %v1958_v40 = vpop.permute.xlu1 %1957  ;;  %v5816_v43 = vpop.permute.xlu0 %1959 }
  0xd7   :  { %1180 = vmatprep.mubr.bf16.mxu0 %v5189_v14  ;;  %1223 = vmatprep.mubr.bf16.mxu1 %v5189_v14  ;;  %v5767_v44 = vrot.slane %v4163_v49, %v5241_v5  ;;  %v2192_v49 = vld [vmem:[%s6236_s0 + $0x8] sm:$0xff] }
  0xd8   :  { %1234 = vmatprep.subr.bf16.mxu0 %v1140_v12  ;;  %1277 = vmatprep.subr.bf16.mxu1 %v1146_v60  ;;  %v1699_v60 = vand.u32 %v5447_v62, %v5534_v53  ;;  %v2205_v63 = vcombine.high %v2192_v49, %v2192_v49  ;;  %v2212_v48 = vrot.slane %v2192_v49, %v5241_v5 }
  0xd9   :  { %4187 = vrot.lane.b32.xlu1 %v5439_v59, %s5186_s22  ;;  %4141 = vrot.lane.b32.xlu0 %v5152_v61, %s5205_s24  ;;  %v5793_v13 = vcombine.high %v5767_v44, %v5767_v44  ;;  %v1705_v61 = vand.u32 %v5456_v0, %v5534_v53  ;;  %v1972_v0 = vsel %vm103_vm2, %v1958_v40, %v5816_v43 }
  0xda   :  { %v1952_v32 = vpop.permute.xlu1 %1951  ;;  %v5828_v12 = vpop.permute.xlu0 %1905  ;;  %v1990_v47 = vand.u32 %v1972_v0, %v5534_v53  ;;  %v2219_v33 = vrot.slane %v2205_v63, %v5241_v5  ;;  %v2751_v0 = vld [vmem:[%s6236_s0 + $0xa] sm:$0xff] }
  0xdb   :  { %v2771_v49 = vrot.slane %v2751_v0, %v5241_v5 }
  0xdd   :  { %4777 = vmatmul.mubr.msk.bf16.vlgmr.msra.gmra.mrb[0].mxu0 %vm112_vm3, %v5677_v7  ;;  %4778 = vmatmul.mubr.msk.bf16.vlgmr.msra.gmra.mrb[0].mxu1 %vm112_vm3, %v5677_v7 }
  0xde   :  { %1235 = vmatpush1.bf16.msra.mxu0 %v1137_v1  ;;  %1278 = vmatpush1.bf16.msra.mxu1 %v1143_v11  ;;  %v1962_v56 = vpop.permute.xlu1 %1961  ;;  %v1964_v62 = vpop.permute.xlu0 %1963  ;;  %v1971_v11 = vsel %vm103_vm2, %v5797_v18, %v1958_v40  ;;  %v2221_v18 = vcombine.high %v2219_v33, %v2219_v33  ;;  %v2249_v40 = vand.u32 %v2219_v33, %v5534_v53  ;;  %v4690_v33 = vld [vmem:[%s6238_s2] sm:$0xff] }
  0xdf   :  { %1445 = vmatprep.subr.bf16.mxu0 %v1425_v2  ;;  %1266 = vmatprep.mubr.bf16.mxu0 %v5189_v14  ;;  %v1969_v2 = vsel %vm103_vm2, %v1952_v32, %v5795_v39  ;;  %v1987_v23 = vand.u32 %v1971_v11, %v5534_v53  ;;  %v2220_v39 = vcombine.high %v2212_v48, %v2212_v48 }
  0xe0   :  { %1309 = vmatprep.mubr.bf16.mxu1 %v5189_v14  ;;  %1488 = vmatprep.subr.bf16.mxu1 %v1431_v15  ;;  %v1974_v15 = vsel %vm103_vm2, %v1962_v56, %v1964_v62  ;;  %v1981_v21 = vand.u32 %v1969_v2, %v5534_v53 }
  0xe1   :  { %4197 = vrot.lane.b32.xlu1 %v5764_v29, %s5186_s22  ;;  %4199 = vrot.lane.b32.xlu0 %v5767_v44, %s5186_s22  ;;  %v1996_v42 = vand.u32 %v1974_v15, %v5534_v53 }
  0xe2   :  { %v1966_v50 = vpop.permute.xlu1 %1965 }
  0xe5   :  { %4779 = vmatmul.mubr.msk.bf16.vlgmr.msra.gmra.mrb[4].mxu0 %vm112_vm3, %v5677_v7  ;;  %4780 = vmatmul.mubr.msk.bf16.vlgmr.msra.gmra.mrb[4].mxu1 %vm112_vm3, %v5677_v7  ;;  %v1414_v7 = vsel %vm103_vm2, %v5714_v30, %v1403_v41  ;;  %v5155_v30 = vld [vmem:[#allocation2] sm:$0xff]   ;;  %v1984_v41 = vand.u32 %v1970_v51, %v5534_v53 }
  0xe6   :  { %1446 = vmatpush1.bf16.msra.mxu0 %v1422_v24  ;;  %1489 = vmatpush1.bf16.msra.mxu1 %v1428_v17  ;;  %v1434_v46 = vand.u32 %v1414_v7, %v5534_v53  ;;  %v5860_v1 = vpop.permute.xlu1 %2201 }
  0xe7   :  { %1477 = vmatprep.mubr.bf16.mxu0 %v5189_v14  ;;  %1520 = vmatprep.mubr.bf16.mxu1 %v5189_v14 }
  0xe8   :  { %1531 = vmatprep.subr.bf16.mxu0 %v1437_v31  ;;  %1574 = vmatprep.subr.bf16.mxu1 %v1443_v35  ;;  %v1975_v35 = vsel %vm103_vm2, %v1964_v62, %v1966_v50 }
  0xe9   :  { %4203 = vrot.lane.b32.xlu0 %v4837_v3, %s5186_s22  ;;  %4201 = vrot.lane.b32.xlu1 %v5793_v13, %s5186_s22  ;;  %s5206_s22 = smov 80   ;;  %v1973_v3 = vsel %vm103_vm2, %v5816_v43, %v1962_v56  ;;  %v1999_v25 = vand.u32 %v1975_v35, %v5534_v53 }
  0xea   :  { %v2515_v31 = vpop.permute.xlu1 %2514 }
  0xed   :  { %4783 = vmatmul.mubr.msk.bf16.vlgmr.msra.gmra.mrb[0].mxu0 %vm112_vm3, %v5733_v34  ;;  %4784 = vmatmul.mubr.msk.bf16.vlgmr.msra.gmra.mrb[0].mxu1 %vm112_vm3, %v5733_v34 }
  0xee   :  { %1532 = vmatpush1.bf16.msra.mxu0 %v1434_v46  ;;  %1575 = vmatpush1.bf16.msra.mxu1 %v1440_v27  ;;  %v2246_v27 = vand.u32 %v2220_v39, %v5534_v53  ;;  %v2252_v46 = vand.u32 %v2221_v18, %v5534_v53 }
  0xef   :  { %1563 = vmatprep.mubr.bf16.mxu0 %v5189_v14  ;;  %1606 = vmatprep.mubr.bf16.mxu1 %v5189_v14 }
  0xf0   :  { %1707 = vmatprep.subr.bf16.mxu0 %v1687_v58  ;;  %1750 = vmatprep.subr.bf16.mxu1 %v1693_v36  ;;  %v5887_v58 = vpop.permute.xlu1 %2518  ;;  %v2243_v36 = vand.u32 %v2212_v48, %v5534_v53 }
  0xf1   :  { %4437 = vrot.lane.b32.xlu1 %v5155_v30, %s5206_s22  ;;  %4694 = vperm.xlu0 %5125, %v4690_v33  }
  0xf4   :  { %v5897_v30 = vpop.permute.xlu1 %2464 }
  0xf5   :  { %4785 = vmatmul.mubr.msk.bf16.vlgmr.msra.gmra.mrb[4].mxu0 %vm112_vm3, %v5733_v34  ;;  %4786 = vmatmul.mubr.msk.bf16.vlgmr.msra.gmra.mrb[4].mxu1 %vm112_vm3, %v5733_v34  ;;  %v1696_v34 = vand.u32 %v5439_v59, %v5534_v53  ;;  %v1968_v59 = vpop.permute.xlu0 %1967 }
  0xf6   :  { %1708 = vmatpush1.bf16.msra.mxu0 %v1684_v55  ;;  %1751 = vmatpush1.bf16.msra.mxu1 %v1690_v57  ;;  %v1976_v6 = vsel %vm103_vm2, %v1966_v50, %v1968_v59  ;;  %v2258_v55 = vand.u32 %v5484_v10, %v5534_v53  ;;  %v2264_v57 = vand.u32 %v5495_v19, %v5534_v53 }
  0xf7   :  { %1739 = vmatprep.mubr.bf16.mxu0 %v5189_v14  ;;  %1782 = vmatprep.mubr.bf16.mxu1 %v5189_v14  ;;  %v2002_v17 = vand.u32 %v1976_v6, %v5534_v53 }
  0xf8   :  { %1793 = vmatprep.subr.bf16.mxu0 %v1699_v60  ;;  %1836 = vmatprep.subr.bf16.mxu1 %v1705_v61  ;;  %v2523_v60 = vpop.permute.xlu1 %2522  ;;  %v2255_v61 = vand.u32 %v5474_v4, %v5534_v53 }
  0xf9   :  { %v2513_v24 = vpop.permute.xlu0 %2512 }
  0xfa   :  { %v2529_v32 = vsel %vm103_vm2, %v2513_v24, %v2515_v31 }
  0xfb   :  { %v2543_v51 = vand.u32 %v2529_v32, %v5534_v53 }
  0xfc   :  { %v2527_v4 = vpop.permute.xlu1 %2526 }
  0xfd   :  { %4788 = vmatmul.mubr.msk.bf16.vlgmr.msra.gmra.mrb[0].mxu0 %vm112_vm3, %v5773_v20  ;;  %4789 = vmatmul.mubr.msk.bf16.vlgmr.msra.gmra.mrb[0].mxu1 %vm112_vm3, %v5773_v20  ;;  %v2517_v7 = vpop.permute.xlu0 %2516 }
  0xfe   :  { %1794 = vmatpush1.bf16.msra.mxu0 %v1696_v34  ;;  %1837 = vmatpush1.bf16.msra.mxu1 %v1702_v37  ;;  %v2531_v19 = vsel %vm103_vm2, %v2517_v7, %v5887_v58  ;;  %v2530_v37 = vsel %vm103_vm2, %v2515_v31, %v2517_v7 }
  0xff   :  { %2004 = vmatprep.subr.bf16.mxu0 %v1984_v41  ;;  %1825 = vmatprep.mubr.bf16.mxu0 %v5189_v14  ;;  %v2549_v56 = vand.u32 %v2531_v19, %v5534_v53  ;;  %v2546_v63 = vand.u32 %v2530_v37, %v5534_v53 }
 0x100   :  { %1868 = vmatprep.mubr.bf16.mxu1 %v5189_v14  ;;  %2047 = vmatprep.subr.bf16.mxu1 %v1990_v47  ;;  %v5943_v6 = vpop.permute.xlu1 %3071 }
 0x101   :  { %v2511_v43 = vpop.permute.xlu0 %2510 }
 0x102   :  { %v2528_v41 = vsel %vm103_vm2, %v2511_v43, %v2513_v24  ;;  %v2814_v43 = vand.u32 %v5513_v28, %v5534_v53 }
 0x103   :  { %v2540_v11 = vand.u32 %v2528_v41, %v5534_v53 }
 0x104   :  { %v3076_v18 = vpop.permute.xlu1 %3075 }
 0x105   :  { %4790 = vmatmul.mubr.msk.bf16.vlgmr.msra.gmra.mrb[4].mxu0 %vm112_vm3, %v5773_v20  ;;  %4791 = vmatmul.mubr.msk.bf16.vlgmr.msra.gmra.mrb[4].mxu1 %vm112_vm3, %v5773_v20  ;;  %v1993_v20 = vand.u32 %v1973_v3, %v5534_v53  ;;  %v2521_v10 = vpop.permute.xlu0 %2520 }
 0x106   :  { %2005 = vmatpush1.bf16.msra.mxu0 %v1981_v21  ;;  %2048 = vmatpush1.bf16.msra.mxu1 %v1987_v23  ;;  %v2533_v47 = vsel %vm103_vm2, %v2521_v10, %v2523_v60  ;;  %v4691_v23 = vld [vmem:[%s6238_s2 + $0x8] sm:$0xff] }
 0x107   :  { %2036 = vmatprep.mubr.bf16.mxu0 %v5189_v14  ;;  %2079 = vmatprep.mubr.bf16.mxu1 %v5189_v14  ;;  %v2555_v2 = vand.u32 %v2533_v47, %v5534_v53 }
 0x108   :  { %2090 = vmatprep.subr.bf16.mxu0 %v1996_v42  ;;  %2133 = vmatprep.subr.bf16.mxu1 %v2002_v17  ;;  %v2532_v17 = vsel %vm103_vm2, %v5887_v58, %v2521_v10  ;;  %v3070_v7 = vpop.permute.xlu1 %3069  ;;  %v2823_v58 = vand.u32 %v5532_v52, %v5534_v53  ;;  %v3310_v10 = vld [vmem:[%s6236_s0 + $0xc] sm:$0xff] }
 0x109   :  { %v2525_v62 = vpop.permute.xlu0 %2524  ;;  %4699 = vperm.xlu1 %5126, %v4691_v23   ;;  %v2552_v31 = vand.u32 %v2532_v17, %v5534_v53  ;;  %v3382_v17 = vand.u32 %v5647_v22, %v5534_v53 }
 0x10a   :  { %v2535_v50 = vsel %vm103_vm2, %v2525_v62, %v2527_v4  ;;  %v2534_v21 = vsel %vm103_vm2, %v2523_v60, %v2525_v62 }
 0x10b   :  { %v2561_v15 = vand.u32 %v2535_v50, %v5534_v53  ;;  %v2558_v24 = vand.u32 %v2534_v21, %v5534_v53 }
 0x10d   :  { %4794 = vmatmul.mubr.msk.bf16.vlgmr.msra.gmra.mrb[0].mxu0 %vm112_vm3, %v5828_v12  ;;  %4795 = vmatmul.mubr.msk.bf16.vlgmr.msra.gmra.mrb[0].mxu1 %vm112_vm3, %v5828_v12  ;;  %v5927_v34 = vpop.permute.xlu0 %2760 }
 0x10e   :  { %2091 = vmatpush1.bf16.msra.mxu0 %v1993_v20  ;;  %2134 = vmatpush1.bf16.msra.mxu1 %v1999_v25  ;;  %v2802_v25 = vand.u32 %v2771_v49, %v5534_v53 }
 0x10f   :  { %2122 = vmatprep.mubr.bf16.mxu0 %v5189_v14  ;;  %2165 = vmatprep.mubr.bf16.mxu1 %v5189_v14 }
 0x110   :  { %2266 = vmatprep.subr.bf16.mxu0 %v2246_v27  ;;  %2309 = vmatprep.subr.bf16.mxu1 %v2252_v46  ;;  %v2817_v46 = vand.u32 %v5521_v38, %v5534_v53  ;;  %v3080_v38 = vpop.permute.xlu1 %3079 }
 0x111   :  { %v5945_v48 = vpop.permute.xlu0 %3073 }
 0x112   :  { %v3089_v19 = vsel %vm103_vm2, %v5945_v48, %v3076_v18 }
 0x114   :  { %v3084_v32 = vpop.permute.xlu1 %3083 }
 0x115   :  { %4796 = vmatmul.mubr.msk.bf16.vlgmr.msra.gmra.mrb[4].mxu0 %vm112_vm3, %v5828_v12  ;;  %4797 = vmatmul.mubr.msk.bf16.vlgmr.msra.gmra.mrb[4].mxu1 %vm112_vm3, %v5828_v12  ;;  %v2261_v12 = vand.u32 %v5487_v16, %v5534_v53  ;;  %v2764_v16 = vcombine.high %v2751_v0, %v2751_v0  ;;  %v5962_v3 = vpop.permute.xlu0 %3077  ;;  %v3105_v0 = vand.u32 %v3089_v19, %v5534_v53 }
 0x116   :  { %2267 = vmatpush1.bf16.msra.mxu0 %v2243_v36  ;;  %2310 = vmatpush1.bf16.msra.mxu1 %v2249_v40  ;;  %v3088_v36 = vsel %vm103_vm2, %v5943_v6, %v5945_v48  ;;  %v3090_v40 = vsel %vm103_vm2, %v3076_v18, %v5962_v3 }
 0x117   :  { %2298 = vmatprep.mubr.bf16.mxu0 %v5189_v14  ;;  %2341 = vmatprep.mubr.bf16.mxu1 %v5189_v14  ;;  %v2778_v59 = vrot.slane %v2764_v16, %v5241_v5 }
 0x118   :  { %2352 = vmatprep.subr.bf16.mxu0 %v2258_v55  ;;  %2395 = vmatprep.subr.bf16.mxu1 %v2264_v57  ;;  %v3102_v55 = vand.u32 %v3088_v36, %v5534_v53  ;;  %v3108_v57 = vand.u32 %v3090_v40, %v5534_v53  ;;  %v6004_v60 = vpop.permute.xlu1 %3319 }
 0x119   :  { %v2780_v42 = vcombine.high %v2778_v59, %v2778_v59  ;;  %v2808_v20 = vand.u32 %v2778_v59, %v5534_v53  ;;  %v5972_v27 = vpop.permute.xlu0 %3023 }
 0x11b   :  { %v2811_v39 = vand.u32 %v2780_v42, %v5534_v53  ;;  %v3376_v42 = vand.u32 %v5622_v8, %v5534_v53 }
 0x11c   :  { %v3633_v47 = vpop.permute.xlu1 %3632 }
 0x11d   :  { %4799 = vmatmul.mubr.msk.bf16.vlgmr.msra.gmra.mrb[0].mxu0 %vm112_vm3, %v5860_v1  ;;  %4800 = vmatmul.mubr.msk.bf16.vlgmr.msra.gmra.mrb[0].mxu1 %vm112_vm3, %v5860_v1  ;;  %v3082_v52 = vpop.permute.xlu0 %3081 }
 0x11e   :  { %2353 = vmatpush1.bf16.msra.mxu0 %v2255_v61  ;;  %2396 = vmatpush1.bf16.msra.mxu1 %v2261_v12  ;;  %v3087_v61 = vsel %vm103_vm2, %v3070_v7, %v5943_v6  ;;  %v3092_v12 = vsel %vm103_vm2, %v3080_v38, %v3082_v52  ;;  %v3093_v50 = vsel %vm103_vm2, %v3082_v52, %v3084_v32 }
 0x11f   :  { %2563 = vmatprep.subr.bf16.mxu0 %v2543_v51  ;;  %2384 = vmatprep.mubr.bf16.mxu0 %v5189_v14  ;;  %v3099_v4 = vand.u32 %v3087_v61, %v5534_v53  ;;  %v3114_v16 = vand.u32 %v3092_v12, %v5534_v53 }
 0x120   :  { %2427 = vmatprep.mubr.bf16.mxu1 %v5189_v14  ;;  %2606 = vmatprep.subr.bf16.mxu1 %v2549_v56  ;;  %v3330_v56 = vrot.slane %v3310_v10, %v5241_v5  ;;  %v6031_v48 = vpop.permute.xlu1 %3636 }
 0x121   :  { %v3086_v28 = vpop.permute.xlu0 %3085 }
 0x122   :  { %v3094_v51 = vsel %vm103_vm2, %v3084_v32, %v3086_v28  ;;  %v3361_v33 = vand.u32 %v3330_v56, %v5534_v53 }
 0x123   :  { %v3120_v37 = vand.u32 %v3094_v51, %v5534_v53 }
 0x125   :  { %4801 = vmatmul.mubr.msk.bf16.vlgmr.msra.gmra.mrb[4].mxu0 %vm112_vm3, %v5860_v1  ;;  %4802 = vmatmul.mubr.msk.bf16.vlgmr.msra.gmra.mrb[4].mxu1 %vm112_vm3, %v5860_v1  ;;  %v2779_v1 = vcombine.high %v2771_v49, %v2771_v49  ;;  %v3631_v41 = vpop.permute.xlu0 %3630  ;;  %v3338_v49 = vcombine.high %v3330_v56, %v3330_v56 }
 0x126   :  { %2564 = vmatpush1.bf16.msra.mxu0 %v2540_v11  ;;  %2607 = vmatpush1.bf16.msra.mxu1 %v2546_v63  ;;  %v3091_v63 = vsel %vm103_vm2, %v5962_v3, %v3080_v38  ;;  %v3117_v11 = vand.u32 %v3093_v50, %v5534_v53 }
 0x127   :  { %2595 = vmatprep.mubr.bf16.mxu0 %v5189_v14  ;;  %2638 = vmatprep.mubr.bf16.mxu1 %v5189_v14  ;;  %v2805_v35 = vand.u32 %v2779_v1, %v5534_v53  ;;  %v6041_v1 = vpop.permute.xlu1 %3582 }
 0x128   :  { %2649 = vmatprep.subr.bf16.mxu0 %v2555_v2  ;;  %2692 = vmatprep.subr.bf16.mxu1 %v2561_v15  ;;  %v3364_v15 = vand.u32 %v3338_v49, %v5534_v53  ;;  %v3932_v49 = vand.u32 %v5721_v26, %v5534_v53 }
 0x129   :  { %v3635_v2 = vpop.permute.xlu0 %3634 }
 0x12a   :  { %v3649_v22 = vsel %vm103_vm2, %v3635_v2, %v6031_v48 }
 0x12b   :  { %v3667_v3 = vand.u32 %v3649_v22, %v5534_v53 }
 0x12d   :  { %4805 = vmatmul.mubr.msk.bf16.vlgmr.msra.gmra.mrb[0].mxu0 %vm112_vm3, %v5897_v30  ;;  %4806 = vmatmul.mubr.msk.bf16.vlgmr.msra.gmra.mrb[0].mxu1 %vm112_vm3, %v5897_v30  ;;  %v3629_v21 = vpop.permute.xlu0 %3628 }
 0x12e   :  { %2650 = vmatpush1.bf16.msra.mxu0 %v2552_v31  ;;  %2693 = vmatpush1.bf16.msra.mxu1 %v2558_v24  ;;  %v3647_v24 = vsel %vm103_vm2, %v3631_v41, %v3633_v47  ;;  %v3641_v31 = vpop.permute.xlu1 %3640 }
 0x12f   :  { %2681 = vmatprep.mubr.bf16.mxu0 %v5189_v14  ;;  %2724 = vmatprep.mubr.bf16.mxu1 %v5189_v14  ;;  %v3661_v18 = vand.u32 %v3647_v24, %v5534_v53 }
 0x130   :  { %2825 = vmatprep.subr.bf16.mxu0 %v2805_v35  ;;  %2868 = vmatprep.subr.bf16.mxu1 %v2811_v39  ;;  %v3373_v35 = vand.u32 %v5594_v9, %v5534_v53  ;;  %v3379_v39 = vand.u32 %v5635_v54, %v5534_v53 }
 0x131   :  { %v3639_v8 = vpop.permute.xlu0 %3638 }
 0x132   :  { %v3650_v19 = vsel %vm103_vm2, %v6031_v48, %v3639_v8 }
 0x133   :  { %v3645_v9 = vpop.permute.xlu1 %3644 }
 0x135   :  { %4807 = vmatmul.mubr.msk.bf16.vlgmr.msra.gmra.mrb[4].mxu0 %vm112_vm3, %v5897_v30  ;;  %4808 = vmatmul.mubr.msk.bf16.vlgmr.msra.gmra.mrb[4].mxu1 %vm112_vm3, %v5897_v30  ;;  %v2820_v30 = vand.u32 %v5526_v45, %v5534_v53  ;;  %v3323_v45 = vcombine.high %v3310_v10, %v3310_v10 }
 0x136   :  { %2826 = vmatpush1.bf16.msra.mxu0 %v2802_v25  ;;  %2869 = vmatpush1.bf16.msra.mxu1 %v2808_v20  ;;  %v3643_v25 = vpop.permute.xlu0 %3642  ;;  %v3869_v20 = vld [vmem:[%s6236_s0 + $0xe] sm:$0xff] }
 0x137   :  { %2857 = vmatprep.mubr.bf16.mxu0 %v5189_v14  ;;  %2900 = vmatprep.mubr.bf16.mxu1 %v5189_v14  ;;  %v3337_v62 = vrot.slane %v3323_v45, %v5241_v5  ;;  %v3882_v54 = vcombine.high %v3869_v20, %v3869_v20  ;;  %v3653_v36 = vsel %vm103_vm2, %v3643_v25, %v3645_v9 }
 0x138   :  { %2911 = vmatprep.subr.bf16.mxu0 %v2817_v46  ;;  %2954 = vmatprep.subr.bf16.mxu1 %v2823_v58  ;;  %v3646_v46 = vsel %vm103_vm2, %v3629_v21, %v3631_v41  ;;  %v3651_v58 = vsel %vm103_vm2, %v3639_v8, %v3641_v31  ;;  %v3889_v38 = vrot.slane %v3869_v20, %v5241_v5 }
 0x139   :  { %v3339_v59 = vcombine.high %v3337_v62, %v3337_v62  ;;  %v3367_v23 = vand.u32 %v3337_v62, %v5534_v53  ;;  %v3896_v52 = vrot.slane %v3882_v54, %v5241_v5  ;;  %v3652_v32 = vsel %vm103_vm2, %v3641_v31, %v3643_v25  ;;  %v4429_v31 = vld [vmem:[%s6236_s0 + $0x18] sm:$0xff] }
 0x13a   :  { %v6071_v7 = vpop.permute.xlu0 %3878  ;;  %v3897_v28 = vcombine.high %v3889_v38, %v3889_v38  ;;  %v3676_v61 = vand.u32 %v3652_v32, %v5534_v53  ;;  %v3935_v41 = vand.u32 %v5764_v29, %v5534_v53 }
 0x13b   :  { %v3370_v6 = vand.u32 %v3339_v59, %v5534_v53  ;;  %v4190_v10 = vpop.permute.xlu1 %4189  ;;  %v3898_v45 = vcombine.high %v3896_v52, %v3896_v52  ;;  %v3938_v59 = vand.u32 %v5767_v44, %v5534_v53 }
 0x13c   :  { %v3923_v12 = vand.u32 %v3897_v28, %v5534_v53 }
 0x13d   :  { %4810 = vmatmul.mubr.msk.bf16.vlgmr.msra.gmra.mrb[0].mxu0 %vm112_vm3, %v5927_v34  ;;  %4811 = vmatmul.mubr.msk.bf16.vlgmr.msra.gmra.mrb[0].mxu1 %vm112_vm3, %v5927_v34  ;;  %v3929_v51 = vand.u32 %v3898_v45, %v5534_v53 }
 0x13e   :  { %2912 = vmatpush1.bf16.msra.mxu0 %v2814_v43  ;;  %2955 = vmatpush1.bf16.msra.mxu1 %v2820_v30  ;;  %v3658_v43 = vand.u32 %v3646_v46, %v5534_v53  ;;  %v3673_v30 = vand.u32 %v3651_v58, %v5534_v53 }
 0x13f   :  { %3122 = vmatprep.subr.bf16.mxu0 %v3102_v55  ;;  %2943 = vmatprep.mubr.bf16.mxu0 %v5189_v14  ;;  %v3679_v55 = vand.u32 %v3653_v36, %v5534_v53 }
 0x140   :  { %2986 = vmatprep.mubr.bf16.mxu1 %v5189_v14  ;;  %3165 = vmatprep.subr.bf16.mxu1 %v3108_v57  ;;  %v4192_v57 = vpop.permute.xlu0 %4191 }
 0x141   :  { %v4206_v50 = vsel %vm103_vm2, %v4190_v10, %v4192_v57 }
 0x143   :  { %v4194_v62 = vpop.permute.xlu1 %4193 }
 0x144   :  { %v6096_v56 = vpop.permute.xlu0 %4195 }
 0x145   :  { %4812 = vmatmul.mubr.msk.bf16.vlgmr.msra.gmra.mrb[4].mxu0 %vm112_vm3, %v5927_v34  ;;  %4813 = vmatmul.mubr.msk.bf16.vlgmr.msra.gmra.mrb[4].mxu1 %vm112_vm3, %v5927_v34  ;;  %v3111_v34 = vand.u32 %v3091_v63, %v5534_v53 }
 0x146   :  { %3123 = vmatpush1.bf16.msra.mxu0 %v3099_v4  ;;  %3166 = vmatpush1.bf16.msra.mxu1 %v3105_v0  ;;  %v3920_v0 = vand.u32 %v3889_v38, %v5534_v53  ;;  %v3926_v4 = vand.u32 %v3896_v52, %v5534_v53 }
 0x147   :  { %3154 = vmatprep.mubr.bf16.mxu0 %v5189_v14  ;;  %3197 = vmatprep.mubr.bf16.mxu1 %v5189_v14 }
 0x148   :  { %3208 = vmatprep.subr.bf16.mxu0 %v3114_v16  ;;  %3251 = vmatprep.subr.bf16.mxu1 %v3120_v37 }
 0x14b   :  { %v6106_v16 = vpop.permute.xlu0 %4141  ;;  %v4188_v37 = vpop.permute.xlu1 %4187 }
 0x14c   :  { %v4205_v48 = vsel %vm103_vm2, %v4188_v37, %v4190_v10 }
 0x14d   :  { %4816 = vmatmul.mubr.msk.bf16.vlgmr.msra.gmra.mrb[0].mxu0 %vm112_vm3, %v5972_v27  ;;  %4817 = vmatmul.mubr.msk.bf16.vlgmr.msra.gmra.mrb[0].mxu1 %vm112_vm3, %v5972_v27 }
 0x14e   :  { %3209 = vmatpush1.bf16.msra.mxu0 %v3111_v34  ;;  %3252 = vmatpush1.bf16.msra.mxu1 %v3117_v11  ;;  %v4220_v11 = vand.u32 %v4206_v50, %v5534_v53 }
 0x14f   :  { %3240 = vmatprep.mubr.bf16.mxu0 %v5189_v14  ;;  %3283 = vmatprep.mubr.bf16.mxu1 %v5189_v14 }
 0x150   :  { %3384 = vmatprep.subr.bf16.mxu0 %v3364_v15  ;;  %3427 = vmatprep.subr.bf16.mxu1 %v3370_v6  ;;  %v4207_v6 = vsel %vm103_vm2, %v4192_v57, %v4194_v62 }
 0x153   :  { %v4200_v29 = vpop.permute.xlu0 %4199  ;;  %v4198_v63 = vpop.permute.xlu1 %4197 }
 0x155   :  { %4818 = vmatmul.mubr.msk.bf16.vlgmr.msra.gmra.mrb[4].mxu0 %vm112_vm3, %v5972_v27  ;;  %4819 = vmatmul.mubr.msk.bf16.vlgmr.msra.gmra.mrb[4].mxu1 %vm112_vm3, %v5972_v27  ;;  %v3648_v27 = vsel %vm103_vm2, %v3633_v47, %v3635_v2  ;;  %v3941_v47 = vand.u32 %v5793_v13, %v5534_v53  ;;  %v4208_v13 = vsel %vm103_vm2, %v4194_v62, %v6096_v56  ;;  %v4428_v2 = vld [vmem:[%s6236_s0 + $0x10] sm:$0xff] }
 0x156   :  { %3385 = vmatpush1.bf16.msra.mxu0 %v3361_v33  ;;  %3428 = vmatpush1.bf16.msra.mxu1 %v3367_v23  ;;  %v3664_v40 = vand.u32 %v3648_v27, %v5534_v53  ;;  %v4226_v34 = vand.u32 %v4208_v13, %v5534_v53  ;;  %v4441_v44 = vcombine.high %v4428_v2, %v4428_v2 }
 0x157   :  { %3416 = vmatprep.mubr.bf16.mxu0 %v5189_v14  ;;  %3459 = vmatprep.mubr.bf16.mxu1 %v5189_v14  ;;  %v4210_v33 = vsel %vm103_vm2, %v4198_v63, %v4200_v29  ;;  %v4448_v21 = vrot.slane %v4428_v2, %v5241_v5 }
 0x158   :  { %3470 = vmatprep.subr.bf16.mxu0 %v3376_v42  ;;  %3513 = vmatprep.subr.bf16.mxu1 %v3382_v17  ;;  %v4223_v42 = vand.u32 %v4207_v6, %v5534_v53  ;;  %v4217_v17 = vand.u32 %v4205_v48, %v5534_v53  ;;  %v4232_v24 = vand.u32 %v4210_v33, %v5534_v53 }
 0x159   :  { %v4479_v36 = vand.u32 %v4448_v21, %v5534_v53 }
 0x15b   :  { %v4204_v26 = vpop.permute.xlu0 %4203  ;;  %v4202_v15 = vpop.permute.xlu1 %4201 }
 0x15c   :  { %v4212_v23 = vsel %vm103_vm2, %v4202_v15, %v4204_v26  ;;  %v4211_v22 = vsel %vm103_vm2, %v4200_v29, %v4202_v15 }
 0x15d   :  { %4821 = vmatmul.mubr.msk.bf16.vlgmr.msra.gmra.mrb[0].mxu0 %vm112_vm3, %v6004_v60  ;;  %4822 = vmatmul.mubr.msk.bf16.vlgmr.msra.gmra.mrb[0].mxu1 %vm112_vm3, %v6004_v60  ;;  %v4238_v8 = vand.u32 %v4212_v23, %v5534_v53  ;;  %v4235_v25 = vand.u32 %v4211_v22, %v5534_v53 }
 0x15e   :  { %3471 = vmatpush1.bf16.msra.mxu0 %v3373_v35  ;;  %3514 = vmatpush1.bf16.msra.mxu1 %v3379_v39  ;;  %v4456_v35 = vcombine.high %v4448_v21, %v4448_v21 }
 0x15f   :  { %3681 = vmatprep.subr.bf16.mxu0 %v3661_v18  ;;  %3502 = vmatprep.mubr.bf16.mxu0 %v5189_v14  ;;  %v4458_v18 = vcombine.high %v4429_v31, %v4429_v31 }
 0x160   :  { %3545 = vmatprep.mubr.bf16.mxu1 %v5189_v14  ;;  %3724 = vmatprep.subr.bf16.mxu1 %v3667_v3  ;;  %v4209_v3 = vsel %vm103_vm2, %v6096_v56, %v4198_v63  ;;  %v4482_v20 = vand.u32 %v4456_v35, %v5534_v53 }
 0x161   :  { %v4229_v9 = vand.u32 %v4209_v3, %v5534_v53  ;;  %v4472_v27 = vrot.slane %v4458_v18, %v5241_v5 }
 0x163   :  { %v4474_v58 = vcombine.high %v4472_v27, %v4472_v27 }
 0x165   :  { %4823 = vmatmul.mubr.msk.bf16.vlgmr.msra.gmra.mrb[4].mxu0 %vm112_vm3, %v6004_v60  ;;  %4824 = vmatmul.mubr.msk.bf16.vlgmr.msra.gmra.mrb[4].mxu1 %vm112_vm3, %v6004_v60  ;;  %v3670_v60 = vand.u32 %v3650_v19, %v5534_v53  ;;  %v4500_v52 = vand.u32 %v4474_v58, %v5534_v53 }
 0x166   :  { %3682 = vmatpush1.bf16.msra.mxu0 %v3658_v43  ;;  %3725 = vmatpush1.bf16.msra.mxu1 %v3664_v40  ;;  %v4438_v40 = vpop.permute.xlu1 %4437 }
 0x167   :  { %3713 = vmatprep.mubr.bf16.mxu0 %v5189_v14  ;;  %3756 = vmatprep.mubr.bf16.mxu1 %v5189_v14 }
 0x168   :  { %3767 = vmatprep.subr.bf16.mxu0 %v3673_v30  ;;  %3810 = vmatprep.subr.bf16.mxu1 %v3679_v55  ;;  %v4497_v30 = vand.u32 %v4472_v27, %v5534_v53 }
 0x16d   :  { %4827 = vmatmul.mubr.msk.bf16.vlgmr.msra.gmra.mrb[0].mxu0 %vm112_vm3, %v6041_v1  ;;  %4828 = vmatmul.mubr.msk.bf16.vlgmr.msra.gmra.mrb[0].mxu1 %vm112_vm3, %v6041_v1 }
 0x16e   :  { %3768 = vmatpush1.bf16.msra.mxu0 %v3670_v60  ;;  %3811 = vmatpush1.bf16.msra.mxu1 %v3676_v61 }
 0x16f   :  { %3799 = vmatprep.mubr.bf16.mxu0 %v5189_v14  ;;  %3842 = vmatprep.mubr.bf16.mxu1 %v5189_v14 }
 0x170   :  { %3943 = vmatprep.subr.bf16.mxu0 %v3923_v12  ;;  %3986 = vmatprep.subr.bf16.mxu1 %v3929_v51  ;;  %v4695_v55 = vpop.permute.xlu0 %4694 }
 0x175   :  { %4829 = vmatmul.mubr.msk.bf16.vlgmr.msra.gmra.mrb[4].mxu0 %vm112_vm3, %v6041_v1  ;;  %4830 = vmatmul.mubr.msk.bf16.vlgmr.msra.gmra.mrb[4].mxu1 %vm112_vm3, %v6041_v1  ;;  %v4455_v1 = vrot.slane %v4441_v44, %v5241_v5 }
 0x176   :  { %3944 = vmatpush1.bf16.msra.mxu0 %v3920_v0  ;;  %3987 = vmatpush1.bf16.msra.mxu1 %v3926_v4 }
 0x177   :  { %3975 = vmatprep.mubr.bf16.mxu0 %v5189_v14  ;;  %4018 = vmatprep.mubr.bf16.mxu1 %v5189_v14  ;;  %v4457_v39 = vcombine.high %v4455_v1, %v4455_v1 }
 0x178   :  { %4029 = vmatprep.subr.bf16.mxu0 %v3935_v41  ;;  %4072 = vmatprep.subr.bf16.mxu1 %v3941_v47 }
 0x179   :  { %v4488_v54 = vand.u32 %v4457_v39, %v5534_v53 }
 0x17d   :  { %4832 = vmatmul.mubr.msk.bf16.vlgmr.msra.gmra.mrb[0].mxu0 %vm112_vm3, %v6071_v7  ;;  %4833 = vmatmul.mubr.msk.bf16.vlgmr.msra.gmra.mrb[0].mxu1 %vm112_vm3, %v6071_v7 }
 0x17e   :  { %4030 = vmatpush1.bf16.msra.mxu0 %v3932_v49  ;;  %4073 = vmatpush1.bf16.msra.mxu1 %v3938_v59 }
 0x17f   :  { %4240 = vmatprep.subr.bf16.mxu0 %v4220_v11  ;;  %4061 = vmatprep.mubr.bf16.mxu0 %v5189_v14 }
 0x180   :  { %4104 = vmatprep.mubr.bf16.mxu1 %v5189_v14  ;;  %4283 = vmatprep.subr.bf16.mxu1 %v4226_v34 }
 0x185   :  { %4834 = vmatmul.mubr.msk.bf16.vlgmr.msra.gmra.mrb[4].mxu0 %vm112_vm3, %v6071_v7  ;;  %4835 = vmatmul.mubr.msk.bf16.vlgmr.msra.gmra.mrb[4].mxu1 %vm112_vm3, %v6071_v7  ;;  %v4465_v7 = vrot.slane %v4429_v31, %v5241_v5  ;;  %v4485_v5 = vand.u32 %v4455_v1, %v5534_v53 }
 0x186   :  { %4241 = vmatpush1.bf16.msra.mxu0 %v4217_v17  ;;  %4284 = vmatpush1.bf16.msra.mxu1 %v4223_v42 }
 0x187   :  { %4272 = vmatprep.mubr.bf16.mxu0 %v5189_v14  ;;  %4315 = vmatprep.mubr.bf16.mxu1 %v5189_v14  ;;  %v4473_v46 = vcombine.high %v4465_v7, %v4465_v7  ;;  %v4491_v43 = vand.u32 %v4465_v7, %v5534_v53 }
 0x188   :  { %4326 = vmatprep.subr.bf16.mxu0 %v4232_v24  ;;  %4369 = vmatprep.subr.bf16.mxu1 %v4238_v8  ;;  %v4700_v57 = vpop.permute.xlu1 %4699 }
 0x189   :  { %v4494_v38 = vand.u32 %v4473_v46, %v5534_v53 }
 0x18d   :  { %4838 = vmatmul.mubr.msk.bf16.vlgmr.msra.gmra.mrb[0].mxu0 %vm112_vm3, %v6106_v16  ;;  %4839 = vmatmul.mubr.msk.bf16.vlgmr.msra.gmra.mrb[0].mxu1 %vm112_vm3, %v6106_v16 }
 0x18e   :  { %4327 = vmatpush1.bf16.msra.mxu0 %v4229_v9  ;;  %4370 = vmatpush1.bf16.msra.mxu1 %v4235_v25 }
 0x18f   :  { %4358 = vmatprep.mubr.bf16.mxu0 %v5189_v14  ;;  %4401 = vmatprep.mubr.bf16.mxu1 %v5189_v14 }
 0x190   :  { %4502 = vmatprep.subr.bf16.mxu0 %v4482_v20  ;;  %4545 = vmatprep.subr.bf16.mxu1 %v4488_v54 }
 0x195   :  { %4840 = vmatmul.mubr.msk.bf16.vlgmr.msra.gmra.mrb[4].mxu0 %vm112_vm3, %v6106_v16  ;;  %4841 = vmatmul.mubr.msk.bf16.vlgmr.msra.gmra.mrb[4].mxu1 %vm112_vm3, %v6106_v16 }
 0x196   :  { %4503 = vmatpush1.bf16.msra.mxu0 %v4479_v36  ;;  %4546 = vmatpush1.bf16.msra.mxu1 %v4485_v5 }
 0x197   :  { %4534 = vmatprep.mubr.bf16.mxu0 %v5189_v14  ;;  %4577 = vmatprep.mubr.bf16.mxu1 %v5189_v14 }
 0x198   :  { %4588 = vmatprep.subr.bf16.mxu0 %v4494_v38  ;;  %4631 = vmatprep.subr.bf16.mxu1 %v4500_v52 }
 0x19d   :  { %4843 = vmatmul.mubr.msk.bf16.vlgmr.msra.gmra.mrb[0].mxu0 %vm112_vm3, %v4438_v40  ;;  %4844 = vmatmul.mubr.msk.bf16.vlgmr.msra.gmra.mrb[0].mxu1 %vm112_vm3, %v4438_v40 }
 0x19e   :  { %4589 = vmatpush1.bf16.msra.mxu0 %v4491_v43  ;;  %4632 = vmatpush1.bf16.msra.mxu1 %v4497_v30 }
 0x19f   :  { %4620 = vmatprep.mubr.bf16.mxu0 %v5189_v14  ;;  %4663 = vmatprep.mubr.bf16.mxu1 %v5189_v14 }
 0x1a5   :  { %4845 = vmatmul.mubr.msk.bf16.vlgmr.msra.gmra.mrb[4].mxu0 %vm112_vm3, %v4438_v40  ;;  %4846 = vmatmul.mubr.msk.bf16.vlgmr.msra.gmra.mrb[4].mxu1 %vm112_vm3, %v4438_v40 }
 0x270   :  { %v4536_v32 = vpop.f32.mrb[0].mxu0  ;;  %v4579_v10 = vpop.f32.mrb[0].mxu1 }
 0x271   :  { %v4702_v28 = vadd.f32 %v4695_v55, %v4536_v32  ;;  %v4704_v53 = vadd.f32 %v4695_v55, %v4579_v10  ;;  %v4538_v45 = vpop.f32.mrb[1].mxu0  ;;  %v4581_v19 = vpop.f32.mrb[1].mxu1 }
 0x272   :  { %v4703_v61 = vadd.f32 %v4695_v55, %v4538_v45  ;;  %v4705_v60 = vadd.f32 %v4695_v55, %v4581_v19  ;;  %v4540_v12 = vpop.f32.mrb[2].mxu0  ;;  %v4583_v51 = vpop.f32.mrb[2].mxu1 }
 0x273   :  { %v4718_v56 = vmax.f32 %v4702_v28, 0.0  ;;  %v4720_v62 = vmax.f32 %v4704_v53, 0.0  ;;  %v4710_v0 = vadd.f32 %v4700_v57, %v4540_v12  ;;  %v4712_v14 = vadd.f32 %v4700_v57, %v4583_v51  ;;  %v4542_v4 = vpop.f32.mrb[3].mxu0  ;;  %v4585_v16 = vpop.f32.mrb[3].mxu1 }
 0x274   :  { %v4719_v37 = vmax.f32 %v4703_v61, 0.0  ;;  %v4721_v41 = vmax.f32 %v4705_v60, 0.0  ;;  %v4711_v47 = vadd.f32 %v4700_v57, %v4542_v4  ;;  %v4713_v50 = vadd.f32 %v4700_v57, %v4585_v16 }
 0x275   :  { %4734 = vst [vmem:[%s6239_s3] sm:$0xff] %v4718_v56  ;;  %4736 = vst [vmem:[%s6239_s3 + $0x10] sm:$0xff] %v4720_v62  ;;  %v4726_v29 = vmax.f32 %v4710_v0, 0.0  ;;  %v4728_v13 = vmax.f32 %v4712_v14, 0.0 }
 0x276   :  { %4735 = vst [vmem:[%s6239_s3 + $0x8] sm:$0xff] %v4719_v37  ;;  %4737 = vst [vmem:[%s6239_s3 + $0x18] sm:$0xff] %v4721_v41  ;;  %v4727_v49 = vmax.f32 %v4711_v47, 0.0  ;;  %v4729_v59 = vmax.f32 %v4713_v50, 0.0 }
 0x277   :  { %4742 = vst [vmem:[%s6239_s3 + $0x40] sm:$0xff] %v4726_v29  ;;  %4744 = vst [vmem:[%s6239_s3 + $0x50] sm:$0xff] %v4728_v13 }
 0x278   :  { %4743 = vst [vmem:[%s6239_s3 + $0x48] sm:$0xff] %v4727_v49  ;;  %4745 = vst [vmem:[%s6239_s3 + $0x58] sm:$0xff] %v4729_v59  ;;  %v4622_v63 = vpop.f32.mrb[4].mxu0  ;;  %v4665_v11 = vpop.f32.mrb[4].mxu1 }
 0x279   :  { %v4706_v34 = vadd.f32 %v4695_v55, %v4622_v63  ;;  %v4708_v2 = vadd.f32 %v4695_v55, %v4665_v11  ;;  %v4624_v26 = vpop.f32.mrb[5].mxu0  ;;  %v4667_v15 = vpop.f32.mrb[5].mxu1 }
 0x27a   :  { %v4707_v44 = vadd.f32 %v4695_v55, %v4624_v26  ;;  %v4709_v6 = vadd.f32 %v4695_v55, %v4667_v15  ;;  %v4626_v48 = vpop.f32.mrb[6].mxu0  ;;  %v4669_v33 = vpop.f32.mrb[6].mxu1 }
 0x27b   :  { %v4722_v23 = vmax.f32 %v4706_v34, 0.0  ;;  %v4724_v21 = vmax.f32 %v4708_v2, 0.0  ;;  %v4714_v1 = vadd.f32 %v4700_v57, %v4626_v48  ;;  %v4716_v42 = vadd.f32 %v4700_v57, %v4669_v33  ;;  %v4628_v17 = vpop.f32.mrb[7].mxu0  ;;  %v4671_v24 = vpop.f32.mrb[7].mxu1 }
 0x27c   :  { %v4723_v8 = vmax.f32 %v4707_v44, 0.0  ;;  %v4725_v31 = vmax.f32 %v4709_v6, 0.0  ;;  %v4715_v22 = vadd.f32 %v4700_v57, %v4628_v17  ;;  %v4717_v35 = vadd.f32 %v4700_v57, %v4671_v24 }
 0x27d   :  { %4738 = vst [vmem:[%s6239_s3 + $0x20] sm:$0xff] %v4722_v23  ;;  %4740 = vst [vmem:[%s6239_s3 + $0x30] sm:$0xff] %v4724_v21  ;;  %v4730_v39 = vmax.f32 %v4714_v1, 0.0  ;;  %v4732_v18 = vmax.f32 %v4716_v42, 0.0 }
 0x27e   :  { %4739 = vst [vmem:[%s6239_s3 + $0x28] sm:$0xff] %v4723_v8  ;;  %4741 = vst [vmem:[%s6239_s3 + $0x38] sm:$0xff] %v4725_v31  ;;  %v4731_v3 = vmax.f32 %v4715_v22, 0.0  ;;  %v4733_v25 = vmax.f32 %v4717_v35, 0.0 }
 0x27f   :  { %4746 = vst [vmem:[%s6239_s3 + $0x60] sm:$0xff] %v4730_v39  ;;  %4748 = vst [vmem:[%s6239_s3 + $0x70] sm:$0xff] %v4732_v18 }
 0x280   :  { %4747 = vst [vmem:[%s6239_s3 + $0x68] sm:$0xff] %v4731_v3  ;;  %4749 = vst [vmem:[%s6239_s3 + $0x78] sm:$0xff] %v4733_v25 }
 0x281   :  { %4754 = vsyncpa [#allocation3], 1 }

// kernel: tiny_convnet_forward.4
= control target key start
LH: loop header
LB: loop body
LE: loop exit
PB: predicated region body
PF: predicated region fallthrough
CT: control target
= control target key end

     0   :  { %v601_v34 = vmov 0.0   ;;  %vm602_vm0 = vmmov 0   ;;  %vm323_vm1 = vcmask 392192   ;;  %s744_s1 = inlined_call_operand.vmem [shape: bf16[560,128], index: 1, kind: input, shape index: {}]   ;;  %s745_s0 = inlined_call_operand.vmem [shape: bf16[16,560], index: 0, kind: input, shape index: {}]   ;;  %s746_s2 = inlined_call_operand.vmem [shape: f32[16,128], index: 2, kind: output, shape index: {}]  }
   0x1   :  { %v559_v0 = vld [vmem:[%s744_s1 + $0x40] sm:$0xff]   ;;  %v563_v4 = vld [vmem:[%s744_s1 + $0x48] sm:$0xff]   ;;  %v567_v8 = vld [vmem:[%s744_s1 + $0x50] sm:$0xff]  }
   0x2   :  { %v560_v1 = vld [vmem:[%s744_s1 + $0xc0] sm:$0xff]   ;;  %499 = vmatprep.subr.bf16.mxu0 %v559_v0  ;;  %v564_v5 = vld [vmem:[%s744_s1 + $0xc8] sm:$0xff]   ;;  %v568_v9 = vld [vmem:[%s744_s1 + $0xd0] sm:$0xff]  }
   0x3   :  { %v561_v2 = vld [vmem:[%s744_s1] sm:$0xff]   ;;  %521 = vmatprep.subr.bf16.mxu1 %v560_v1  ;;  %v565_v6 = vld [vmem:[%s744_s1 + $0x8] sm:$0xff]   ;;  %v569_v10 = vld [vmem:[%s744_s1 + $0x10] sm:$0xff]  }
   0x4   :  { %v562_v3 = vld [vmem:[%s744_s1 + $0x80] sm:$0xff]   ;;  %500 = vmatpush3.bf16.msra.mxu0 %v561_v2  ;;  %v566_v7 = vld [vmem:[%s744_s1 + $0x88] sm:$0xff]   ;;  %v570_v11 = vld [vmem:[%s744_s1 + $0x90] sm:$0xff]  }
   0x5   :  { %522 = vmatpush3.bf16.msra.mxu1 %v562_v3  ;;  %501 = vmatprep.subr.bf16.mxu0 %v563_v4  ;;  %v571_v12 = vld [vmem:[%s744_s1 + $0x58] sm:$0xff]   ;;  %v575_v16 = vld [vmem:[%s744_s1 + $0x60] sm:$0xff]   ;;  %v579_v20 = vld [vmem:[%s744_s1 + $0x68] sm:$0xff]  }
   0x6   :  { %523 = vmatprep.subr.bf16.mxu1 %v564_v5  ;;  %v572_v13 = vld [vmem:[%s744_s1 + $0xd8] sm:$0xff]   ;;  %v576_v17 = vld [vmem:[%s744_s1 + $0xe0] sm:$0xff]   ;;  %v580_v21 = vld [vmem:[%s744_s1 + $0xe8] sm:$0xff]  }
   0x7   :  { %v573_v14 = vld [vmem:[%s744_s1 + $0x18] sm:$0xff]   ;;  %v577_v18 = vld [vmem:[%s744_s1 + $0x20] sm:$0xff]   ;;  %v581_v22 = vld [vmem:[%s744_s1 + $0x28] sm:$0xff]  }
   0x8   :  { %502 = vmatpush3.bf16.msra.mxu0 %v565_v6  ;;  %v574_v15 = vld [vmem:[%s744_s1 + $0x98] sm:$0xff]   ;;  %v578_v19 = vld [vmem:[%s744_s1 + $0xa0] sm:$0xff]   ;;  %v582_v23 = vld [vmem:[%s744_s1 + $0xa8] sm:$0xff]  }
   0x9   :  { %524 = vmatpush3.bf16.msra.mxu1 %v566_v7  ;;  %503 = vmatprep.subr.bf16.mxu0 %v567_v8  ;;  %v583_v24 = vld [vmem:[%s744_s1 + $0x70] sm:$0xff]   ;;  %v587_v28 = vld [vmem:[%s744_s1 + $0x78] sm:$0xff]   ;;  %v596_v36 = vld [vmem:[%s745_s0 + $0xc] ss:$20 sps:$4 sm:$0xff]  }
   0xa   :  { %525 = vmatprep.subr.bf16.mxu1 %v568_v9  ;;  %v584_v25 = vld [vmem:[%s744_s1 + $0xf0] sm:$0xff]   ;;  %v588_v29 = vld [vmem:[%s744_s1 + $0xf8] sm:$0xff]   ;;  %v597_v37 = vld [vmem:[%s744_s1 + $0x100] sm:$0xff]   ;;  %400 = vmatprep.mubr.bf16.mxu1 %v596_v36 }
   0xb   :  { %v585_v26 = vld [vmem:[%s744_s1 + $0x30] sm:$0xff]   ;;  %v589_v30 = vld [vmem:[%s744_s1 + $0x38] sm:$0xff]   ;;  %v598_v38 = vld [vmem:[%s744_s1 + $0x108] sm:$0xff]  }
   0xc   :  { %504 = vmatpush3.bf16.msra.mxu0 %v569_v10  ;;  %v586_v27 = vld [vmem:[%s744_s1 + $0xb0] sm:$0xff]   ;;  %v590_v31 = vld [vmem:[%s744_s1 + $0xb8] sm:$0xff]  }
   0xd   :  { %526 = vmatpush3.bf16.msra.mxu1 %v570_v11  ;;  %505 = vmatprep.subr.bf16.mxu0 %v571_v12  ;;  %v591_v32 = vld [vmem:[%s745_s0] ss:$20 sps:$4 sm:$0xff]   ;;  %v593_v33 = vld [vmem:[%s745_s0 + $0x4] ss:$20 sps:$4 sm:$0xff]   ;;  %v594_v35 = vld [vmem:[%s745_s0 + $0x8] ss:$20 sps:$4 sm:$0xff]  }
   0xe   :  { %527 = vmatprep.subr.bf16.mxu1 %v572_v13  ;;  %359 = vmatprep.mubr.bf16.mxu0 %v593_v33  ;;  %v599_v39 = vld [vmem:[%s744_s1 + $0x110] sm:$0xff]  }
   0xf   :  { %v600_v40 = vld [vmem:[%s745_s0 + $0x10] ss:$20 sps:$4 sm:$0xff]  }
  0x10   :  { %506 = vmatpush3.bf16.msra.mxu0 %v573_v14 }
  0x11   :  { %528 = vmatpush3.bf16.msra.mxu1 %v574_v15  ;;  %507 = vmatprep.subr.bf16.mxu0 %v575_v16 }
  0x12   :  { %529 = vmatprep.subr.bf16.mxu1 %v576_v17 }
  0x14   :  { %508 = vmatpush3.bf16.msra.mxu0 %v577_v18 }
  0x15   :  { %530 = vmatpush3.bf16.msra.mxu1 %v578_v19  ;;  %509 = vmatprep.subr.bf16.mxu0 %v579_v20 }
  0x16   :  { %531 = vmatprep.subr.bf16.mxu1 %v580_v21 }
  0x18   :  { %510 = vmatpush3.bf16.msra.mxu0 %v581_v22 }
  0x19   :  { %532 = vmatpush3.bf16.msra.mxu1 %v582_v23  ;;  %511 = vmatprep.subr.bf16.mxu0 %v583_v24 }
  0x1a   :  { %533 = vmatprep.subr.bf16.mxu1 %v584_v25 }
  0x1c   :  { %512 = vmatpush3.bf16.msra.mxu0 %v585_v26 }
  0x1d   :  { %534 = vmatpush3.bf16.msra.mxu1 %v586_v27  ;;  %513 = vmatprep.subr.bf16.mxu0 %v587_v28 }
  0x1e   :  { %535 = vmatprep.subr.bf16.mxu1 %v588_v29 }
  0x20   :  { %514 = vmatpush3.bf16.msra.mxu0 %v589_v30 }
  0x21   :  { %536 = vmatpush3.bf16.msra.mxu1 %v590_v31  ;;  %547 = vmatprep.subr.bf16.mxu0 %v601_v34 }
  0x23   :  { %360 = vmatmul.mubr.bf16.vlgmr.msra.gmra.mrb[0].mxu0 %v591_v32 }
  0x24   :  { %401 = vmatmul.mubr.bf16.vlgmr.msra.gmra.mrb[0].mxu1 %v594_v35  ;;  %548 = vmatpush3.bf16.msra.mxu0 %v597_v37 }
  0x25   :  { %549 = vmatprep.subr.bf16.mxu0 %v601_v34  ;;  %553 = vmatprep.mubr.msk.bf16.mxu0 %vm602_vm0, %v601_v34 }
  0x28   :  { %550 = vmatpush3.bf16.msra.mxu0 %v598_v38 }
  0x29   :  { %551 = vmatprep.subr.bf16.mxu0 %v601_v34 }
  0x2c   :  { %552 = vmatpush3.bf16.msra.mxu0 %v599_v39 }
  0x2f   :  { %554 = vmatmul.mubr.msk.bf16.vlgmr.msra.gmra.mrb[4].mxu0 %vm323_vm1, %v600_v40 }
  0xf6   :  { %v515_v41 = vpop.f32.mrb[0].mxu0 }
  0xf7   :  { %v537_v42 = vpop.f32.mrb[0].mxu1  ;;  %v516_v43 = vpop.f32.mrb[1].mxu0 }
  0xf8   :  { %v517_v44 = vadd.f32 %v516_v43, %v515_v41  ;;  %v538_v45 = vpop.f32.mrb[1].mxu1  ;;  %v518_v46 = vpop.f32.mrb[2].mxu0 }
  0xf9   :  { %v539_v47 = vadd.f32 %v538_v45, %v537_v42  ;;  %v540_v48 = vpop.f32.mrb[2].mxu1  ;;  %v519_v49 = vpop.f32.mrb[3].mxu0 }
  0xfa   :  { %v520_v50 = vadd.f32 %v519_v49, %v518_v46  ;;  %v541_v51 = vpop.f32.mrb[3].mxu1 }
  0xfb   :  { %v542_v52 = vadd.f32 %v541_v51, %v540_v48  ;;  %v403_v53 = vadd.f32 %v539_v47, %v517_v44 }
  0xfd   :  { %v406_v54 = vadd.f32 %v542_v52, %v520_v50 }
 0x102   :  { %v443_v55 = vpop.f32.mrb[4].mxu0 }
 0x103   :  { %v444_v56 = vadd.f32 %v443_v55, %v403_v53  ;;  %v555_v57 = vpop.f32.mrb[5].mxu0 }
 0x104   :  { %v446_v58 = vpop.f32.mrb[6].mxu0 }
 0x105   :  { %v450_v59 = vmax.f32 %v444_v56, 0.0  ;;  %v447_v60 = vadd.f32 %v446_v58, %v406_v54  ;;  %v556_v61 = vpop.f32.mrb[7].mxu0 }
 0x107   :  { %452 = vst [vmem:[%s746_s2] sm:$0xff] %v450_v59  ;;  %v451_v62 = vmax.f32 %v447_v60, 0.0 }
 0x109   :  { %453 = vst [vmem:[%s746_s2 + $0x8] sm:$0xff] %v451_v62 }

// kernel: tiny_convnet_forward.5
= control target key start
LH: loop header
LB: loop body
LE: loop exit
PB: predicated region body
PF: predicated region fallthrough
CT: control target
= control target key end

     0   :  { %vm564_vm0 = vcmask 261120   ;;  %s8340_s0 = inlined_call_operand.vmem [shape: f32[2,160], index: 0, kind: input, shape index: {}]   ;;  %s8341_s1 = inlined_call_operand.vmem [shape: bf16[160,1024], index: 1, kind: input, shape index: {}]   ;;  %s8342_s2 = inlined_call_operand.vmem [shape: f32[1,1024], index: 2, kind: input, shape index: {}]   ;;  %s8343_s3 = inlined_call_operand.vmem [shape: bf16[1024,1024], index: 3, kind: input, shape index: {}]   ;;  %s8344_s4 = inlined_call_operand.vmem [shape: f32[1,1024], index: 4, kind: input, shape index: {}]   ;;  %s8345_s5 = inlined_call_operand.vmem [shape: bf16[1024,128], index: 5, kind: input, shape index: {}]   ;;  %s8346_s6 = inlined_call_operand.vmem [shape: f32[1,128], index: 6, kind: input, shape index: {}]   ;;  %s8347_s7 = inlined_call_operand.hbm [shape: f32[2,128], index: 7, kind: output, shape index: {}]  }
   0x1   :  { %v42_v0 = vld [vmem:[%s8341_s1] sm:$0xff]  ;;  %v43_v15 = vld [vmem:[%s8341_s1 + $0x8] sm:$0xff] }
   0x2   :  { %v46_v1 = vld [vmem:[%s8341_s1 + $0x20] sm:$0xff]  ;;  %v47_v16 = vld [vmem:[%s8341_s1 + $0x28] sm:$0xff] }
   0x3   :  { %v50_v2 = vld [vmem:[%s8341_s1 + $0x40] sm:$0xff]  ;;  %v5230_v3 = vcombine.high %v42_v0, %v46_v1  ;;  %v5229_v4 = vcombine.low %v42_v0, %v46_v1  ;;  %v51_v17 = vld [vmem:[%s8341_s1 + $0x48] sm:$0xff]  ;;  %v5232_v19 = vcombine.high %v43_v15, %v47_v16  ;;  %v5231_v20 = vcombine.low %v43_v15, %v47_v16 }
   0x4   :  { %v54_v5 = vld [vmem:[%s8341_s1 + $0x60] sm:$0xff]  ;;  %v55_v21 = vld [vmem:[%s8341_s1 + $0x68] sm:$0xff] }
   0x5   :  { %v5238_v6 = vcombine.high %v50_v2, %v54_v5  ;;  %v58_v7 = vld [vmem:[%s8341_s1 + $0x80] sm:$0xff]  ;;  %568 = vmatprep.subr.bf16.mxu0 %v5230_v3  ;;  %v5237_v9 = vcombine.low %v50_v2, %v54_v5  ;;  %v5240_v24 = vcombine.high %v51_v17, %v55_v21  ;;  %v59_v25 = vld [vmem:[%s8341_s1 + $0x88] sm:$0xff]  ;;  %609 = vmatprep.subr.bf16.mxu1 %v5232_v19 }
   0x6   :  { %v62_v8 = vld [vmem:[%s8341_s1 + $0xa0] sm:$0xff]  ;;  %569 = vmatpush1.bf16.msra.mxu0 %v5229_v4  ;;  %v63_v26 = vld [vmem:[%s8341_s1 + $0xa8] sm:$0xff]  ;;  %610 = vmatpush1.bf16.msra.mxu1 %v5231_v20  ;;  %v5239_v29 = vcombine.low %v51_v17, %v55_v21  ;;  %v52_v20 = vld [vmem:[%s8341_s1 + $0x50] sm:$0xff] }
   0x7   :  { %570 = vmatprep.subr.bf16.mxu0 %v5238_v6  ;;  %v5246_v10 = vcombine.high %v58_v7, %v62_v8  ;;  %v66_v11 = vld [vmem:[%s8341_s1 + $0xc0] sm:$0xff]  ;;  %v5245_v18 = vcombine.low %v58_v7, %v62_v8  ;;  %611 = vmatprep.subr.bf16.mxu1 %v5240_v24  ;;  %v5248_v31 = vcombine.high %v59_v25, %v63_v26  ;;  %v67_v33 = vld [vmem:[%s8341_s1 + $0xc8] sm:$0xff]  ;;  %v56_v21 = vld [vmem:[%s8341_s1 + $0x70] sm:$0xff] }
   0x8   :  { %v70_v12 = vld [vmem:[%s8341_s1 + $0xe0] sm:$0xff]  ;;  %v71_v34 = vld [vmem:[%s8341_s1 + $0xe8] sm:$0xff]  ;;  %v5247_v37 = vcombine.low %v59_v25, %v63_v26 }
   0x9   :  { %v6192_v13 = vld.sshfl [vmem:[%s8340_s0] sm:$0x33 pattern:$0x76325410]  ;;  %v5254_v22 = vcombine.high %v66_v11, %v70_v12  ;;  %v5253_v30 = vcombine.low %v66_v11, %v70_v12  ;;  %v5256_v39 = vcombine.high %v67_v33, %v71_v34  ;;  %v75_v41 = vld [vmem:[%s8341_s1 + $0x108] sm:$0xff]  ;;  %v5255_v45 = vcombine.low %v67_v33, %v71_v34  ;;  %v44_v11 = vld [vmem:[%s8341_s1 + $0x10] sm:$0xff] }
   0xa   :  { %v37_v14 = vcombine.high %v6192_v13, %v6192_v13  ;;  %571 = vmatpush1.bf16.msra.mxu0 %v5237_v9  ;;  %v74_v27 = vld [vmem:[%s8341_s1 + $0x100] sm:$0xff]  ;;  %612 = vmatpush1.bf16.msra.mxu1 %v5239_v29  ;;  %v79_v42 = vld [vmem:[%s8341_s1 + $0x128] sm:$0xff]  ;;  %v48_v12 = vld [vmem:[%s8341_s1 + $0x30] sm:$0xff] }
   0xb   :  { %572 = vmatprep.subr.bf16.mxu0 %v5246_v10  ;;  %v78_v28 = vld [vmem:[%s8341_s1 + $0x120] sm:$0xff]  ;;  %613 = vmatprep.subr.bf16.mxu1 %v5248_v31  ;;  %v5264_v47 = vcombine.high %v75_v41, %v79_v42  ;;  %v83_v49 = vld [vmem:[%s8341_s1 + $0x148] sm:$0xff]  ;;  %v5263_v53 = vcombine.low %v75_v41, %v79_v42  ;;  %v5234_v19 = vcombine.high %v44_v11, %v48_v12  ;;  %v49_v29 = vld [vmem:[%s8341_s1 + $0x38] sm:$0xff] }
   0xc   :  { %v6208_v23 = vpack.c.bf16 %v37_v14, %v37_v14  ;;  %v5262_v32 = vcombine.high %v74_v27, %v78_v28  ;;  %v82_v35 = vld [vmem:[%s8341_s1 + $0x140] sm:$0xff]  ;;  %v5261_v38 = vcombine.low %v74_v27, %v78_v28  ;;  %v87_v50 = vld [vmem:[%s8341_s1 + $0x168] sm:$0xff]  ;;  %v5233_v26 = vcombine.low %v44_v11, %v48_v12  ;;  %v45_v28 = vld [vmem:[%s8341_s1 + $0x18] sm:$0xff] }
   0xd   :  { %v86_v36 = vld [vmem:[%s8341_s1 + $0x160] sm:$0xff]  ;;  %v5272_v55 = vcombine.high %v83_v49, %v87_v50  ;;  %v91_v57 = vld [vmem:[%s8341_s1 + $0x188] sm:$0xff]  ;;  %v5271_v61 = vcombine.low %v83_v49, %v87_v50  ;;  %v5242_v27 = vcombine.high %v52_v20, %v56_v21  ;;  %v68_v33 = vld [vmem:[%s8341_s1 + $0xd0] sm:$0xff]  ;;  %v5236_v34 = vcombine.high %v45_v28, %v49_v29 }
   0xe   :  { %5309 = vmatprep.mubr.msk.bf16.mxu0 %vm564_vm0, %v6208_v23  ;;  %573 = vmatpush1.bf16.msra.mxu0 %v5245_v18  ;;  %v5270_v40 = vcombine.high %v82_v35, %v86_v36  ;;  %v90_v43 = vld [vmem:[%s8341_s1 + $0x180] sm:$0xff]  ;;  %v5269_v46 = vcombine.low %v82_v35, %v86_v36  ;;  %v95_v58 = vld [vmem:[%s8341_s1 + $0x1a8] sm:$0xff]  ;;  %v72_v36 = vld [vmem:[%s8341_s1 + $0xf0] sm:$0xff] }
   0xf   :  { %574 = vmatprep.subr.bf16.mxu0 %v5254_v22  ;;  %5310 = vmatprep.mubr.msk.bf16.mxu1 %vm564_vm0, %v6208_v23  ;;  %v94_v44 = vld [vmem:[%s8341_s1 + $0x1a0] sm:$0xff]  ;;  %v5280_v63 = vcombine.high %v91_v57, %v95_v58  ;;  %v99_v1 = vld [vmem:[%s8341_s1 + $0x1c8] sm:$0xff]  ;;  %v5279_v5 = vcombine.low %v91_v57, %v95_v58  ;;  %v6312_v22 = vpack.c.bf16 %v6192_v13, %v6192_v13  ;;  %v60_v13 = vld [vmem:[%s8341_s1 + $0x90] sm:$0xff] }
  0x10   :  { %614 = vmatpush1.bf16.msra.mxu1 %v5247_v37  ;;  %v5278_v48 = vcombine.high %v90_v43, %v94_v44  ;;  %v98_v51 = vld [vmem:[%s8341_s1 + $0x1c0] sm:$0xff]  ;;  %v5277_v54 = vcombine.low %v90_v43, %v94_v44  ;;  %v103_v2 = vld [vmem:[%s8341_s1 + $0x1e8] sm:$0xff]  ;;  %v53_v37 = vld [vmem:[%s8341_s1 + $0x58] sm:$0xff]  ;;  %v5257_v50 = vcombine.low %v68_v33, %v72_v36 }
  0x11   :  { %615 = vmatprep.subr.bf16.mxu1 %v5256_v39  ;;  %v102_v52 = vld [vmem:[%s8341_s1 + $0x1e0] sm:$0xff]  ;;  %v5288_v7 = vcombine.high %v99_v1, %v103_v2  ;;  %v107_v9 = vld [vmem:[%s8341_s1 + $0x208] sm:$0xff]  ;;  %v5287_v14 = vcombine.low %v99_v1, %v103_v2  ;;  %v5235_v39 = vcombine.low %v45_v28, %v49_v29  ;;  %v65_v41 = vld [vmem:[%s8341_s1 + $0xb8] sm:$0xff] }
  0x12   :  { %575 = vmatpush1.bf16.msra.mxu0 %v5253_v30  ;;  %v5286_v56 = vcombine.high %v98_v51, %v102_v52  ;;  %v106_v59 = vld [vmem:[%s8341_s1 + $0x200] sm:$0xff]  ;;  %v5285_v62 = vcombine.low %v98_v51, %v102_v52  ;;  %v111_v10 = vld [vmem:[%s8341_s1 + $0x228] sm:$0xff]  ;;  %v64_v30 = vld [vmem:[%s8341_s1 + $0xb0] sm:$0xff] }
  0x13   :  { %576 = vmatprep.subr.bf16.mxu0 %v5262_v32  ;;  %v110_v60 = vld [vmem:[%s8341_s1 + $0x220] sm:$0xff]  ;;  %v5296_v16 = vcombine.high %v107_v9, %v111_v10  ;;  %v115_v17 = vld [vmem:[%s8341_s1 + $0x248] sm:$0xff]  ;;  %v5295_v24 = vcombine.low %v107_v9, %v111_v10  ;;  %v5241_v32 = vcombine.low %v52_v20, %v56_v21  ;;  %v5250_v35 = vcombine.high %v60_v13, %v64_v30  ;;  %v76_v43 = vld [vmem:[%s8341_s1 + $0x110] sm:$0xff] }
  0x14   :  { %616 = vmatpush1.bf16.msra.mxu1 %v5255_v45  ;;  %v5294_v0 = vcombine.high %v106_v59, %v110_v60  ;;  %v114_v3 = vld [vmem:[%s8341_s1 + $0x240] sm:$0xff]  ;;  %v5293_v6 = vcombine.low %v106_v59, %v110_v60  ;;  %v119_v18 = vld [vmem:[%s8341_s1 + $0x268] sm:$0xff]  ;;  %v5249_v42 = vcombine.low %v60_v13, %v64_v30  ;;  %v80_v44 = vld [vmem:[%s8341_s1 + $0x130] sm:$0xff] }
  0x15   :  { %617 = vmatprep.subr.bf16.mxu1 %v5264_v47  ;;  %v118_v4 = vld [vmem:[%s8341_s1 + $0x260] sm:$0xff]  ;;  %v5304_v25 = vcombine.high %v115_v17, %v119_v18  ;;  %v5303_v31 = vcombine.low %v115_v17, %v119_v18  ;;  %v73_v49 = vld [vmem:[%s8341_s1 + $0xf8] sm:$0xff]  ;;  %v84_v51 = vld [vmem:[%s8341_s1 + $0x150] sm:$0xff]  ;;  %v5265_v57 = vcombine.low %v76_v43, %v80_v44 }
  0x16   :  { %577 = vmatpush1.bf16.msra.mxu0 %v5261_v38  ;;  %v5302_v8 = vcombine.high %v114_v3, %v118_v4  ;;  %v5301_v15 = vcombine.low %v114_v3, %v118_v4  ;;  %v57_v38 = vld [vmem:[%s8341_s1 + $0x78] sm:$0xff]  ;;  %v88_v52 = vld [vmem:[%s8341_s1 + $0x170] sm:$0xff]  ;;  %v748_v13 = vld [vmem:[%s8343_s3] sm:$0xff] }
  0x17   :  { %578 = vmatprep.subr.bf16.mxu0 %v5270_v40  ;;  %v61_v40 = vld [vmem:[%s8341_s1 + $0x98] sm:$0xff]  ;;  %v5244_v45 = vcombine.high %v53_v37, %v57_v38  ;;  %v5243_v47 = vcombine.low %v53_v37, %v57_v38  ;;  %v92_v58 = vld [vmem:[%s8341_s1 + $0x190] sm:$0xff]  ;;  %v5273_v1 = vcombine.low %v84_v51, %v88_v52  ;;  %v752_v30 = vld [vmem:[%s8343_s3 + $0x20] sm:$0xff] }
  0x18   :  { %618 = vmatpush1.bf16.msra.mxu1 %v5263_v53  ;;  %v5252_v53 = vcombine.high %v61_v40, %v65_v41  ;;  %v96_v59 = vld [vmem:[%s8341_s1 + $0x1b0] sm:$0xff]  ;;  %v105_v17 = vld [vmem:[%s8341_s1 + $0x1f8] sm:$0xff]  ;;  %v756_v37 = vld [vmem:[%s8343_s3 + $0x40] sm:$0xff] }
  0x19   :  { %619 = vmatprep.subr.bf16.mxu1 %v5272_v55  ;;  %v5251_v55 = vcombine.low %v61_v40, %v65_v41  ;;  %v100_v2 = vld [vmem:[%s8341_s1 + $0x1d0] sm:$0xff]  ;;  %v5281_v9 = vcombine.low %v92_v58, %v96_v59  ;;  %v760_v38 = vld [vmem:[%s8343_s3 + $0x60] sm:$0xff]  ;;  %v749_v41 = vld [vmem:[%s8343_s3 + $0x8] sm:$0xff] }
  0x1a   :  { %579 = vmatpush1.bf16.msra.mxu0 %v5269_v46  ;;  %v5258_v46 = vcombine.high %v68_v33, %v72_v36  ;;  %v104_v3 = vld [vmem:[%s8341_s1 + $0x1f0] sm:$0xff]  ;;  %v117_v33 = vld [vmem:[%s8341_s1 + $0x258] sm:$0xff] }
  0x1b   :  { %580 = vmatprep.subr.bf16.mxu0 %v5278_v48  ;;  %v69_v48 = vld [vmem:[%s8341_s1 + $0xd8] sm:$0xff]  ;;  %v108_v10 = vld [vmem:[%s8341_s1 + $0x210] sm:$0xff]  ;;  %v5289_v18 = vcombine.low %v100_v2, %v104_v3 }
  0x1c   :  { %620 = vmatpush1.bf16.msra.mxu1 %v5271_v61  ;;  %v5260_v60 = vcombine.high %v69_v48, %v73_v49  ;;  %v5274_v61 = vcombine.high %v84_v51, %v88_v52  ;;  %v112_v11 = vld [vmem:[%s8341_s1 + $0x230] sm:$0xff]  ;;  %v5321_v52 = vcombine.low %v756_v37, %v760_v38 }
  0x1d   :  { %621 = vmatprep.subr.bf16.mxu1 %v5280_v63  ;;  %v85_v63 = vld [vmem:[%s8341_s1 + $0x158] sm:$0xff]  ;;  %v120_v20 = vld [vmem:[%s8341_s1 + $0x270] sm:$0xff]  ;;  %v5297_v28 = vcombine.low %v108_v10, %v112_v11 }
  0x1e   :  { %581 = vmatpush1.bf16.msra.mxu0 %v5277_v54  ;;  %v5266_v54 = vcombine.high %v76_v43, %v80_v44  ;;  %v5313_v44 = vcombine.low %v748_v13, %v752_v30 }
  0x1f   :  { %582 = vmatprep.subr.bf16.mxu0 %v5286_v56  ;;  %v81_v56 = vld [vmem:[%s8341_s1 + $0x138] sm:$0xff] }
  0x20   :  { %622 = vmatpush1.bf16.msra.mxu1 %v5279_v5  ;;  %v5282_v5 = vcombine.high %v92_v58, %v96_v59 }
  0x21   :  { %623 = vmatprep.subr.bf16.mxu1 %v5288_v7  ;;  %v93_v7 = vld [vmem:[%s8341_s1 + $0x198] sm:$0xff] }
  0x22   :  { %583 = vmatpush1.bf16.msra.mxu0 %v5285_v62  ;;  %v5259_v62 = vcombine.low %v69_v48, %v73_v49  ;;  %v757_v49 = vld [vmem:[%s8343_s3 + $0x48] sm:$0xff] }
  0x23   :  { %584 = vmatprep.subr.bf16.mxu0 %v5294_v0  ;;  %v89_v0 = vld [vmem:[%s8341_s1 + $0x178] sm:$0xff] }
  0x24   :  { %624 = vmatpush1.bf16.msra.mxu1 %v5287_v14  ;;  %v5276_v12 = vcombine.high %v85_v63, %v89_v0  ;;  %v5290_v14 = vcombine.high %v100_v2, %v104_v3 }
  0x25   :  { %625 = vmatprep.subr.bf16.mxu1 %v5296_v16  ;;  %v101_v16 = vld [vmem:[%s8341_s1 + $0x1d8] sm:$0xff] }
  0x26   :  { %585 = vmatpush1.bf16.msra.mxu0 %v5293_v6  ;;  %v5292_v29 = vcombine.high %v101_v16, %v105_v17 }
  0x27   :  { %586 = vmatprep.subr.bf16.mxu0 %v5302_v8  ;;  %v97_v8 = vld [vmem:[%s8341_s1 + $0x1b8] sm:$0xff] }
  0x28   :  { %626 = vmatpush1.bf16.msra.mxu1 %v5295_v24  ;;  %v5284_v21 = vcombine.high %v93_v7, %v97_v8  ;;  %v5298_v24 = vcombine.high %v108_v10, %v112_v11 }
  0x29   :  { %627 = vmatprep.subr.bf16.mxu1 %v5304_v25  ;;  %v5283_v25 = vcombine.low %v93_v7, %v97_v8 }
  0x2a   :  { %587 = vmatpush1.bf16.msra.mxu0 %v5301_v15  ;;  %v5275_v15 = vcombine.low %v85_v63, %v89_v0 }
  0x2b   :  { %650 = vmatprep.subr.bf16.mxu0 %v5234_v19  ;;  %v116_v19 = vld [vmem:[%s8341_s1 + $0x250] sm:$0xff] }
  0x2c   :  { %628 = vmatpush1.bf16.msra.mxu1 %v5303_v31  ;;  %v5306_v31 = vcombine.high %v116_v19, %v120_v20 }
  0x2d   :  { %601 = vmatmul.mubr.bf16.vlgmr.msra.gmra.mrb[0].mxu0 %v6312_v22  ;;  %691 = vmatprep.subr.bf16.mxu1 %v5236_v34  ;;  %v121_v34 = vld [vmem:[%s8341_s1 + $0x278] sm:$0xff] }
  0x2e   :  { %651 = vmatpush1.bf16.msra.mxu0 %v5233_v26  ;;  %5311 = vmatprep.mubr.msk.bf16.mxu0 %vm564_vm0, %v6208_v23  ;;  %v109_v26 = vld [vmem:[%s8341_s1 + $0x218] sm:$0xff]  ;;  %v5308_v43 = vcombine.high %v117_v33, %v121_v34  ;;  %v5307_v48 = vcombine.low %v117_v33, %v121_v34 }
  0x2f   :  { %652 = vmatprep.subr.bf16.mxu0 %v5242_v27  ;;  %642 = vmatmul.mubr.bf16.vlgmr.msra.gmra.mrb[0].mxu1 %v6312_v22  ;;  %v113_v27 = vld [vmem:[%s8341_s1 + $0x238] sm:$0xff] }
  0x30   :  { %692 = vmatpush1.bf16.msra.mxu1 %v5235_v39  ;;  %5312 = vmatprep.mubr.msk.bf16.mxu1 %vm564_vm0, %v6208_v23  ;;  %v77_v23 = vld [vmem:[%s8341_s1 + $0x118] sm:$0xff]  ;;  %v5300_v36 = vcombine.high %v109_v26, %v113_v27  ;;  %v5314_v39 = vcombine.high %v748_v13, %v752_v30  ;;  %v5299_v40 = vcombine.low %v109_v26, %v113_v27 }
  0x31   :  { %693 = vmatprep.subr.bf16.mxu1 %v5244_v45  ;;  %v5268_v4 = vcombine.high %v77_v23, %v81_v56  ;;  %v5267_v6 = vcombine.low %v77_v23, %v81_v56  ;;  %v764_v45 = vld [vmem:[%s8343_s3 + $0x80] sm:$0xff] }
  0x32   :  { %653 = vmatpush1.bf16.msra.mxu0 %v5241_v32  ;;  %v5291_v32 = vcombine.low %v101_v16, %v105_v17 }
  0x33   :  { %654 = vmatprep.subr.bf16.mxu0 %v5250_v35  ;;  %v5305_v35 = vcombine.low %v116_v19, %v120_v20 }
  0x34   :  { %694 = vmatpush1.bf16.msra.mxu1 %v5243_v47  ;;  %v5322_v47 = vcombine.high %v756_v37, %v760_v38 }
  0x35   :  { %695 = vmatprep.subr.bf16.mxu1 %v5252_v53  ;;  %v772_v53 = vld [vmem:[%s8343_s3 + $0xc0] sm:$0xff] }
  0x36   :  { %655 = vmatpush1.bf16.msra.mxu0 %v5249_v42  ;;  %v753_v42 = vld [vmem:[%s8343_s3 + $0x28] sm:$0xff] }
  0x37   :  { %656 = vmatprep.subr.bf16.mxu0 %v5258_v46  ;;  %v768_v46 = vld [vmem:[%s8343_s3 + $0xa0] sm:$0xff]  ;;  %v5316_v51 = vcombine.high %v749_v41, %v753_v42  ;;  %v5315_v23 = vcombine.low %v749_v41, %v753_v42 }
  0x38   :  { %696 = vmatpush1.bf16.msra.mxu1 %v5251_v55  ;;  %v5330_v55 = vcombine.high %v764_v45, %v768_v46 }
  0x39   :  { %697 = vmatprep.subr.bf16.mxu1 %v5260_v60 }
  0x3a   :  { %657 = vmatpush1.bf16.msra.mxu0 %v5257_v50  ;;  %v761_v50 = vld [vmem:[%s8343_s3 + $0x68] sm:$0xff] }
  0x3b   :  { %658 = vmatprep.subr.bf16.mxu0 %v5266_v54  ;;  %v776_v54 = vld [vmem:[%s8343_s3 + $0xe0] sm:$0xff]  ;;  %v5324_v56 = vcombine.high %v757_v49, %v761_v50 }
  0x3c   :  { %698 = vmatpush1.bf16.msra.mxu1 %v5259_v62 }
  0x3d   :  { %699 = vmatprep.subr.bf16.mxu1 %v5268_v4 }
  0x3e   :  { %659 = vmatpush1.bf16.msra.mxu0 %v5265_v57  ;;  %v5329_v57 = vcombine.low %v764_v45, %v768_v46 }
  0x3f   :  { %660 = vmatprep.subr.bf16.mxu0 %v5274_v61 }
  0x40   :  { %700 = vmatpush1.bf16.msra.mxu1 %v5267_v6 }
  0x41   :  { %701 = vmatprep.subr.bf16.mxu1 %v5276_v12 }
  0x42   :  { %661 = vmatpush1.bf16.msra.mxu0 %v5273_v1 }
  0x43   :  { %662 = vmatprep.subr.bf16.mxu0 %v5282_v5 }
  0x44   :  { %702 = vmatpush1.bf16.msra.mxu1 %v5275_v15 }
  0x45   :  { %703 = vmatprep.subr.bf16.mxu1 %v5284_v21 }
  0x46   :  { %663 = vmatpush1.bf16.msra.mxu0 %v5281_v9 }
  0x47   :  { %664 = vmatprep.subr.bf16.mxu0 %v5290_v14 }
  0x48   :  { %704 = vmatpush1.bf16.msra.mxu1 %v5283_v25 }
  0x49   :  { %705 = vmatprep.subr.bf16.mxu1 %v5292_v29 }
  0x4a   :  { %665 = vmatpush1.bf16.msra.mxu0 %v5289_v18 }
  0x4b   :  { %666 = vmatprep.subr.bf16.mxu0 %v5298_v24 }
  0x4c   :  { %706 = vmatpush1.bf16.msra.mxu1 %v5291_v32 }
  0x4d   :  { %707 = vmatprep.subr.bf16.mxu1 %v5300_v36 }
  0x4e   :  { %667 = vmatpush1.bf16.msra.mxu0 %v5297_v28 }
  0x4f   :  { %668 = vmatprep.subr.bf16.mxu0 %v5306_v31 }
  0x50   :  { %708 = vmatpush1.bf16.msra.mxu1 %v5299_v40 }
  0x51   :  { %709 = vmatprep.subr.bf16.mxu1 %v5308_v43 }
  0x52   :  { %669 = vmatpush1.bf16.msra.mxu0 %v5305_v35 }
  0x53   :  { %3862 = vmatprep.subr.bf16.mxu0 %v5314_v39 }
  0x54   :  { %710 = vmatpush1.bf16.msra.mxu1 %v5307_v48 }
  0x55   :  { %683 = vmatmul.mubr.bf16.vlgmr.msra.gmra.mrb[4].mxu0 %v6312_v22  ;;  %4026 = vmatprep.subr.bf16.mxu1 %v5316_v51 }
  0x56   :  { %3863 = vmatpush1.bf16.msra.mxu0 %v5313_v44 }
  0x57   :  { %3864 = vmatprep.subr.bf16.mxu0 %v5322_v47 }
  0x5a   :  { %3865 = vmatpush1.bf16.msra.mxu0 %v5321_v52 }
  0x5b   :  { %12 = vsyncpa [#allocation3], 0  ;;  %3866 = vmatprep.subr.bf16.mxu0 %v5330_v55  ;;  %v765_v58 = vld [vmem:[%s8343_s3 + $0x88] sm:$0xff]  ;;  %v5338_v60 = vcombine.high %v772_v53, %v776_v54  ;;  %724 = vmatmul.mubr.bf16.vlgmr.msra.gmra.mrb[4].mxu1 %v6312_v22  ;;  %v780_v61 = vld [vmem:[%s8343_s3 + $0x100] sm:$0xff]  ;;  %v5323_v63 = vcombine.low %v757_v49, %v761_v50  ;;  %v5337_v1 = vcombine.low %v772_v53, %v776_v54 }
  0x5c   :  { %v769_v59 = vld [vmem:[%s8343_s3 + $0xa8] sm:$0xff]  ;;  %v784_v62 = vld [vmem:[%s8343_s3 + $0x120] sm:$0xff]  ;;  %4027 = vmatpush1.bf16.msra.mxu1 %v5315_v23 }
  0x5d   :  { %4028 = vmatprep.subr.bf16.mxu1 %v5324_v56  ;;  %v5332_v0 = vcombine.high %v765_v58, %v769_v59  ;;  %v773_v2 = vld [vmem:[%s8343_s3 + $0xc8] sm:$0xff]  ;;  %v5346_v3 = vcombine.high %v780_v61, %v784_v62  ;;  %v788_v4 = vld [vmem:[%s8343_s3 + $0x140] sm:$0xff]  ;;  %v5331_v6 = vcombine.low %v765_v58, %v769_v59  ;;  %v5345_v8 = vcombine.low %v780_v61, %v784_v62 }
  0x5e   :  { %3867 = vmatpush1.bf16.msra.mxu0 %v5329_v57  ;;  %v777_v22 = vld [vmem:[%s8343_s3 + $0xe8] sm:$0xff]  ;;  %v792_v5 = vld [vmem:[%s8343_s3 + $0x160] sm:$0xff] }
  0x5f   :  { %3868 = vmatprep.subr.bf16.mxu0 %v5338_v60  ;;  %v5340_v7 = vcombine.high %v773_v2, %v777_v22  ;;  %v781_v9 = vld [vmem:[%s8343_s3 + $0x108] sm:$0xff]  ;;  %v5354_v11 = vcombine.high %v788_v4, %v792_v5  ;;  %v796_v12 = vld [vmem:[%s8343_s3 + $0x180] sm:$0xff]  ;;  %v5339_v15 = vcombine.low %v773_v2, %v777_v22  ;;  %v5353_v17 = vcombine.low %v788_v4, %v792_v5 }
  0x60   :  { %4029 = vmatpush1.bf16.msra.mxu1 %v5323_v63  ;;  %v785_v10 = vld [vmem:[%s8343_s3 + $0x128] sm:$0xff]  ;;  %v800_v14 = vld [vmem:[%s8343_s3 + $0x1a0] sm:$0xff] }
  0x61   :  { %4030 = vmatprep.subr.bf16.mxu1 %v5332_v0  ;;  %v5348_v16 = vcombine.high %v781_v9, %v785_v10  ;;  %v789_v18 = vld [vmem:[%s8343_s3 + $0x148] sm:$0xff]  ;;  %v5362_v20 = vcombine.high %v796_v12, %v800_v14  ;;  %v804_v21 = vld [vmem:[%s8343_s3 + $0x1c0] sm:$0xff]  ;;  %v5347_v25 = vcombine.low %v781_v9, %v785_v10  ;;  %v5361_v27 = vcombine.low %v796_v12, %v800_v14 }
  0x62   :  { %3869 = vmatpush1.bf16.msra.mxu0 %v5337_v1  ;;  %v793_v19 = vld [vmem:[%s8343_s3 + $0x168] sm:$0xff]  ;;  %v808_v24 = vld [vmem:[%s8343_s3 + $0x1e0] sm:$0xff] }
  0x63   :  { %3870 = vmatprep.subr.bf16.mxu0 %v5346_v3  ;;  %v5356_v26 = vcombine.high %v789_v18, %v793_v19  ;;  %v797_v28 = vld [vmem:[%s8343_s3 + $0x188] sm:$0xff]  ;;  %v5370_v13 = vcombine.high %v804_v21, %v808_v24  ;;  %v812_v30 = vld [vmem:[%s8343_s3 + $0x200] sm:$0xff]  ;;  %v5355_v32 = vcombine.low %v789_v18, %v793_v19  ;;  %v5369_v34 = vcombine.low %v804_v21, %v808_v24 }
  0x64   :  { %4031 = vmatpush1.bf16.msra.mxu1 %v5331_v6  ;;  %v801_v29 = vld [vmem:[%s8343_s3 + $0x1a8] sm:$0xff]  ;;  %v816_v31 = vld [vmem:[%s8343_s3 + $0x220] sm:$0xff] }
  0x65   :  { %4032 = vmatprep.subr.bf16.mxu1 %v5340_v7  ;;  %v5364_v33 = vcombine.high %v797_v28, %v801_v29  ;;  %v805_v35 = vld [vmem:[%s8343_s3 + $0x1c8] sm:$0xff]  ;;  %v5378_v37 = vcombine.high %v812_v30, %v816_v31  ;;  %v820_v38 = vld [vmem:[%s8343_s3 + $0x240] sm:$0xff]  ;;  %v5363_v40 = vcombine.low %v797_v28, %v801_v29  ;;  %v5377_v42 = vcombine.low %v812_v30, %v816_v31 }
  0x66   :  { %3871 = vmatpush1.bf16.msra.mxu0 %v5345_v8  ;;  %v809_v36 = vld [vmem:[%s8343_s3 + $0x1e8] sm:$0xff]  ;;  %v824_v39 = vld [vmem:[%s8343_s3 + $0x260] sm:$0xff] }
  0x67   :  { %3872 = vmatprep.subr.bf16.mxu0 %v5354_v11  ;;  %v5372_v41 = vcombine.high %v805_v35, %v809_v36  ;;  %v813_v43 = vld [vmem:[%s8343_s3 + $0x208] sm:$0xff]  ;;  %v5386_v45 = vcombine.high %v820_v38, %v824_v39  ;;  %v828_v46 = vld [vmem:[%s8343_s3 + $0x280] sm:$0xff]  ;;  %v5371_v48 = vcombine.low %v805_v35, %v809_v36  ;;  %v5385_v50 = vcombine.low %v820_v38, %v824_v39 }
  0x68   :  { %4033 = vmatpush1.bf16.msra.mxu1 %v5339_v15  ;;  %v817_v44 = vld [vmem:[%s8343_s3 + $0x228] sm:$0xff]  ;;  %v832_v47 = vld [vmem:[%s8343_s3 + $0x2a0] sm:$0xff] }
  0x69   :  { %4034 = vmatprep.subr.bf16.mxu1 %v5348_v16  ;;  %v5380_v49 = vcombine.high %v813_v43, %v817_v44  ;;  %v821_v51 = vld [vmem:[%s8343_s3 + $0x248] sm:$0xff]  ;;  %v5394_v53 = vcombine.high %v828_v46, %v832_v47  ;;  %v836_v54 = vld [vmem:[%s8343_s3 + $0x2c0] sm:$0xff]  ;;  %v5379_v23 = vcombine.low %v813_v43, %v817_v44  ;;  %v5393_v57 = vcombine.low %v828_v46, %v832_v47 }
  0x6a   :  { %3873 = vmatpush1.bf16.msra.mxu0 %v5353_v17  ;;  %v825_v52 = vld [vmem:[%s8343_s3 + $0x268] sm:$0xff]  ;;  %v840_v55 = vld [vmem:[%s8343_s3 + $0x2e0] sm:$0xff]  ;;  %v124_v46 = vlaneseq }
  0x6b   :  { %3874 = vmatprep.subr.bf16.mxu0 %v5362_v20  ;;  %v5388_v56 = vcombine.high %v821_v51, %v825_v52  ;;  %v829_v58 = vld [vmem:[%s8343_s3 + $0x288] sm:$0xff]  ;;  %v5402_v60 = vcombine.high %v836_v54, %v840_v55  ;;  %v844_v61 = vld [vmem:[%s8343_s3 + $0x300] sm:$0xff]  ;;  %v5387_v63 = vcombine.low %v821_v51, %v825_v52  ;;  %v5401_v1 = vcombine.low %v836_v54, %v840_v55 }
  0x6c   :  { %4035 = vmatpush1.bf16.msra.mxu1 %v5347_v25  ;;  %v833_v59 = vld [vmem:[%s8343_s3 + $0x2a8] sm:$0xff]  ;;  %v848_v62 = vld [vmem:[%s8343_s3 + $0x320] sm:$0xff]  ;;  %v6650_v47 = vshrl.u32 %v124_v46, 7 }
  0x6d   :  { %4036 = vmatprep.subr.bf16.mxu1 %v5356_v26  ;;  %v5396_v0 = vcombine.high %v829_v58, %v833_v59  ;;  %v837_v2 = vld [vmem:[%s8343_s3 + $0x2c8] sm:$0xff]  ;;  %v5410_v3 = vcombine.high %v844_v61, %v848_v62  ;;  %v852_v4 = vld [vmem:[%s8343_s3 + $0x340] sm:$0xff]  ;;  %v5395_v6 = vcombine.low %v829_v58, %v833_v59  ;;  %v5409_v8 = vcombine.low %v844_v61, %v848_v62 }
  0x6e   :  { %3875 = vmatpush1.bf16.msra.mxu0 %v5361_v27  ;;  %v841_v22 = vld [vmem:[%s8343_s3 + $0x2e8] sm:$0xff]  ;;  %v856_v5 = vld [vmem:[%s8343_s3 + $0x360] sm:$0xff] }
  0x6f   :  { %3876 = vmatprep.subr.bf16.mxu0 %v5370_v13  ;;  %v5404_v7 = vcombine.high %v837_v2, %v841_v22  ;;  %v845_v9 = vld [vmem:[%s8343_s3 + $0x308] sm:$0xff]  ;;  %v5418_v11 = vcombine.high %v852_v4, %v856_v5  ;;  %v860_v12 = vld [vmem:[%s8343_s3 + $0x380] sm:$0xff]  ;;  %v5403_v15 = vcombine.low %v837_v2, %v841_v22  ;;  %v5417_v20 = vcombine.low %v852_v4, %v856_v5 }
  0x70   :  { %4037 = vmatpush1.bf16.msra.mxu1 %v5355_v32  ;;  %v849_v10 = vld [vmem:[%s8343_s3 + $0x328] sm:$0xff]  ;;  %v864_v14 = vld [vmem:[%s8343_s3 + $0x3a0] sm:$0xff] }
  0x71   :  { %4038 = vmatprep.subr.bf16.mxu1 %v5364_v33  ;;  %v6601_v16 = vld [vmem:[%s8343_s3 + $0x400] sm:$0xff]  ;;  %v6611_v18 = vld [vmem:[%s8343_s3 + $0x408] sm:$0xff]  ;;  %v5412_v19 = vcombine.high %v845_v9, %v849_v10  ;;  %v5426_v26 = vcombine.high %v860_v12, %v864_v14  ;;  %v5411_v30 = vcombine.low %v845_v9, %v849_v10  ;;  %v5425_v32 = vcombine.low %v860_v12, %v864_v14 }
  0x72   :  { %3877 = vmatpush1.bf16.msra.mxu0 %v5369_v34  ;;  %v6606_v17 = vld [vmem:[%s8343_s3 + $0x420] sm:$0xff]  ;;  %v6616_v21 = vld [vmem:[%s8343_s3 + $0x428] sm:$0xff] }
  0x73   :  { %3878 = vmatprep.subr.bf16.mxu0 %v5378_v37  ;;  %v853_v24 = vld [vmem:[%s8343_s3 + $0x348] sm:$0xff]  ;;  %v5441_v27 = vcombine.low %v6601_v16, %v6606_v17  ;;  %v5443_v28 = vcombine.low %v6611_v18, %v6616_v21  ;;  %v868_v29 = vld [vmem:[%s8343_s3 + $0x3c0] sm:$0xff] }
  0x74   :  { %4039 = vmatpush1.bf16.msra.mxu1 %v5363_v40  ;;  %v857_v25 = vld [vmem:[%s8343_s3 + $0x368] sm:$0xff]  ;;  %v872_v13 = vld [vmem:[%s8343_s3 + $0x3e0] sm:$0xff] }
  0x75   :  { %4040 = vmatprep.subr.bf16.mxu1 %v5372_v41  ;;  %v5420_v31 = vcombine.high %v853_v24, %v857_v25  ;;  %v861_v33 = vld [vmem:[%s8343_s3 + $0x388] sm:$0xff]  ;;  %v5434_v35 = vcombine.high %v868_v29, %v872_v13  ;;  %v5419_v36 = vcombine.low %v853_v24, %v857_v25  ;;  %v5433_v38 = vcombine.low %v868_v29, %v872_v13  ;;  %v888_v62 = vld [vmem:[%s8343_s3 + $0x460] sm:$0xff] }
  0x76   :  { %3879 = vmatpush1.bf16.msra.mxu0 %v5377_v42  ;;  %v865_v34 = vld [vmem:[%s8343_s3 + $0x3a8] sm:$0xff]  ;;  %v5442_v41 = vcombine.high %v6601_v16, %v6606_v17  ;;  %v892_v5 = vld [vmem:[%s8343_s3 + $0x480] sm:$0xff] }
  0x77   :  { %3880 = vmatprep.subr.bf16.mxu0 %v5386_v45  ;;  %v5428_v37 = vcombine.high %v861_v33, %v865_v34  ;;  %v869_v39 = vld [vmem:[%s8343_s3 + $0x3c8] sm:$0xff]  ;;  %v5427_v42 = vcombine.low %v861_v33, %v865_v34  ;;  %v5444_v45 = vcombine.high %v6611_v18, %v6616_v21  ;;  %v900_v25 = vld [vmem:[%s8343_s3 + $0x4c0] sm:$0xff] }
  0x78   :  { %4041 = vmatpush1.bf16.msra.mxu1 %v5371_v48  ;;  %v873_v40 = vld [vmem:[%s8343_s3 + $0x3e8] sm:$0xff]  ;;  %v126_v48 = vsub.s32 0, %v6650_v47  ;;  %v904_v16 = vld [vmem:[%s8343_s3 + $0x4e0] sm:$0xff] }
  0x79   :  { %4042 = vmatprep.subr.bf16.mxu1 %v5380_v49  ;;  %v5436_v43 = vcombine.high %v869_v39, %v873_v40  ;;  %v5435_v44 = vcombine.low %v869_v39, %v873_v40  ;;  %v6656_v49 = vld [vmem:[%s8342_s2] sm:$0xff]  ;;  %v897_v9 = vld [vmem:[%s8343_s3 + $0x4a8] sm:$0xff]  ;;  %v5466_v29 = vcombine.high %v900_v25, %v904_v16  ;;  %v5465_v34 = vcombine.low %v900_v25, %v904_v16 }
  0x7a   :  { %3881 = vmatpush1.bf16.msra.mxu0 %v5385_v50  ;;  %v130_v50 = vsub.s32 1, %v6650_v47  ;;  %v127_v51 = vrot.slane %v6656_v49, %v126_v48  ;;  %v901_v17 = vld [vmem:[%s8343_s3 + $0x4c8] sm:$0xff]  ;;  %v920_v39 = vld [vmem:[%s8343_s3 + $0x560] sm:$0xff] }
  0x7b   :  { %3882 = vmatprep.subr.bf16.mxu0 %v5394_v53  ;;  %v905_v18 = vld [vmem:[%s8343_s3 + $0x4e8] sm:$0xff]  ;;  %v924_v46 = vld [vmem:[%s8343_s3 + $0x580] sm:$0xff] }
  0x7c   :  { %4043 = vmatpush1.bf16.msra.mxu1 %v5379_v23  ;;  %v131_v52 = vrot.slane %v6656_v49, %v130_v50  ;;  %v138_v23 = vsub.s32 3, %v6650_v47  ;;  %v5468_v13 = vcombine.high %v901_v17, %v905_v18  ;;  %v913_v33 = vld [vmem:[%s8343_s3 + $0x528] sm:$0xff]  ;;  %v956_v16 = vld [vmem:[%s8343_s3 + $0x680] sm:$0xff] }
  0x7d   :  { %4044 = vmatprep.subr.bf16.mxu1 %v5388_v56  ;;  %v917_v40 = vld [vmem:[%s8343_s3 + $0x548] sm:$0xff] }
  0x7e   :  { %3883 = vmatpush1.bf16.msra.mxu0 %v5393_v57 }
  0x7f   :  { %3884 = vmatprep.subr.bf16.mxu0 %v5402_v60  ;;  %v884_v60 = vld [vmem:[%s8343_s3 + $0x440] sm:$0xff] }
  0x80   :  { %4045 = vmatpush1.bf16.msra.mxu1 %v5387_v63  ;;  %v885_v63 = vld [vmem:[%s8343_s3 + $0x448] sm:$0xff]  ;;  %v5449_v14 = vcombine.low %v884_v60, %v888_v62 }
  0x81   :  { %4046 = vmatprep.subr.bf16.mxu1 %v5396_v0  ;;  %v889_v0 = vld [vmem:[%s8343_s3 + $0x468] sm:$0xff] }
  0x82   :  { %3885 = vmatpush1.bf16.msra.mxu0 %v5401_v1  ;;  %v139_v1 = vrot.slane %v6656_v49, %v138_v23  ;;  %v5452_v4 = vcombine.high %v885_v63, %v889_v0 }
  0x83   :  { %3886 = vmatprep.subr.bf16.mxu0 %v5410_v3  ;;  %v5450_v3 = vcombine.high %v884_v60, %v888_v62  ;;  %v933_v60 = vld [vmem:[%s8343_s3 + $0x5c8] sm:$0xff] }
  0x84   :  { %4047 = vmatpush1.bf16.msra.mxu1 %v5395_v6 }
  0x85   :  { %4048 = vmatprep.subr.bf16.mxu1 %v5404_v7  ;;  %v896_v7 = vld [vmem:[%s8343_s3 + $0x4a0] sm:$0xff] }
  0x86   :  { %3887 = vmatpush1.bf16.msra.mxu0 %v5409_v8  ;;  %v893_v8 = vld [vmem:[%s8343_s3 + $0x488] sm:$0xff] }
  0x87   :  { %3888 = vmatprep.subr.bf16.mxu0 %v5418_v11  ;;  %v5460_v24 = vcombine.high %v893_v8, %v897_v9 }
  0x88   :  { %4049 = vmatpush1.bf16.msra.mxu1 %v5403_v15  ;;  %v5451_v15 = vcombine.low %v885_v63, %v889_v0 }
  0x89   :  { %4050 = vmatprep.subr.bf16.mxu1 %v5412_v19 }
  0x8a   :  { %3889 = vmatpush1.bf16.msra.mxu0 %v5417_v20  ;;  %v5458_v20 = vcombine.high %v892_v5, %v896_v7 }
  0x8b   :  { %3890 = vmatprep.subr.bf16.mxu0 %v5426_v26 }
  0x8c   :  { %4051 = vmatpush1.bf16.msra.mxu1 %v5411_v30  ;;  %v908_v30 = vld [vmem:[%s8343_s3 + $0x500] sm:$0xff] }
  0x8d   :  { %4052 = vmatprep.subr.bf16.mxu1 %v5420_v31  ;;  %v912_v31 = vld [vmem:[%s8343_s3 + $0x520] sm:$0xff] }
  0x8e   :  { %3891 = vmatpush1.bf16.msra.mxu0 %v5425_v32  ;;  %v909_v32 = vld [vmem:[%s8343_s3 + $0x508] sm:$0xff] }
  0x8f   :  { %3892 = vmatprep.subr.bf16.mxu0 %v5434_v35  ;;  %v5467_v35 = vcombine.low %v901_v17, %v905_v18  ;;  %v960_v17 = vld [vmem:[%s8343_s3 + $0x6a0] sm:$0xff]  ;;  %v957_v18 = vld [vmem:[%s8343_s3 + $0x688] sm:$0xff] }
  0x90   :  { %4053 = vmatpush1.bf16.msra.mxu1 %v5419_v36  ;;  %v5474_v36 = vcombine.high %v908_v30, %v912_v31 }
  0x91   :  { %4054 = vmatprep.subr.bf16.mxu1 %v5428_v37  ;;  %v5476_v37 = vcombine.high %v909_v32, %v913_v33 }
  0x92   :  { %3893 = vmatpush1.bf16.msra.mxu0 %v5433_v38  ;;  %v916_v38 = vld [vmem:[%s8343_s3 + $0x540] sm:$0xff] }
  0x93   :  { %3903 = vmatprep.subr.bf16.mxu0 %v5442_v41  ;;  %v921_v41 = vld [vmem:[%s8343_s3 + $0x568] sm:$0xff] }
  0x94   :  { %4055 = vmatpush1.bf16.msra.mxu1 %v5427_v42  ;;  %v5473_v42 = vcombine.low %v908_v30, %v912_v31 }
  0x95   :  { %4056 = vmatprep.subr.bf16.mxu1 %v5436_v43  ;;  %v5475_v43 = vcombine.low %v909_v32, %v913_v33  ;;  %v5522_v32 = vcombine.high %v956_v16, %v960_v17 }
  0x98   :  { %4057 = vmatpush1.bf16.msra.mxu1 %v5435_v44  ;;  %v5482_v44 = vcombine.high %v916_v38, %v920_v39 }
  0x99   :  { %4067 = vmatprep.subr.bf16.mxu1 %v5444_v45  ;;  %v5484_v45 = vcombine.high %v917_v40, %v921_v41 }
 0x100   :  { %v602_v53 = vpop.f32.mrb[0].mxu0 }
 0x101   :  { %v603_v54 = vadd.f32 %v602_v53, %v127_v51  ;;  %v604_v55 = vpop.f32.mrb[1].mxu0  ;;  %v928_v51 = vld [vmem:[%s8343_s3 + $0x5a0] sm:$0xff]  ;;  %v929_v53 = vld [vmem:[%s8343_s3 + $0x5a8] sm:$0xff] }
 0x102   :  { %v605_v56 = vadd.f32 %v604_v55, %v131_v52  ;;  %v606_v57 = vpop.f32.mrb[2].mxu0  ;;  %v6688_v6 = vpop.f32.mrb[0].mxu1  ;;  %v925_v52 = vld [vmem:[%s8343_s3 + $0x588] sm:$0xff]  ;;  %v5483_v55 = vcombine.low %v917_v40, %v921_v41  ;;  %v5489_v62 = vcombine.low %v924_v46, %v928_v51 }
 0x103   :  { %v732_v58 = vmax.f32 %v603_v54, 0.0  ;;  %v607_v59 = vpop.f32.mrb[3].mxu0  ;;  %v645_v10 = vpop.f32.mrb[1].mxu1  ;;  %v5481_v54 = vcombine.low %v916_v38, %v920_v39  ;;  %v5492_v57 = vcombine.high %v925_v52, %v929_v53  ;;  %v5491_v63 = vcombine.low %v925_v52, %v929_v53  ;;  %v969_v38 = vld [vmem:[%s8343_s3 + $0x6e8] sm:$0xff] }
 0x104   :  { %v733_v61 = vmax.f32 %v605_v56, 0.0  ;;  %v646_v11 = vadd.f32 %v645_v10, %v139_v1  ;;  %v647_v12 = vpop.f32.mrb[2].mxu1  ;;  %v5490_v56 = vcombine.high %v924_v46, %v928_v51  ;;  %v936_v59 = vld [vmem:[%s8343_s3 + $0x5e0] sm:$0xff]  ;;  %v5521_v39 = vcombine.low %v956_v16, %v960_v17  ;;  %v973_v46 = vld [vmem:[%s8343_s3 + $0x708] sm:$0xff] }
 0x105   :  { %v6683_v22 = vpack.c.bf16 %v732_v58, %v732_v58  ;;  %v648_v19 = vpop.f32.mrb[3].mxu1  ;;  %v932_v58 = vld [vmem:[%s8343_s3 + $0x5c0] sm:$0xff]  ;;  %v977_v51 = vld [vmem:[%s8343_s3 + $0x728] sm:$0xff] }
 0x106   :  { %v6681_v2 = vpack.c.bf16 %v733_v61, %v733_v61  ;;  %v735_v26 = vmax.f32 %v646_v11, 0.0  ;;  %v937_v61 = vld [vmem:[%s8343_s3 + $0x5e8] sm:$0xff]  ;;  %v5498_v0 = vcombine.high %v932_v58, %v936_v59  ;;  %v948_v12 = vld [vmem:[%s8343_s3 + $0x640] sm:$0xff] }
 0x107   :  { %v5500_v1 = vcombine.high %v933_v60, %v937_v61  ;;  %v953_v19 = vld [vmem:[%s8343_s3 + $0x668] sm:$0xff] }
 0x108   :  { %3894 = vmatprep.mubr.bf16.mxu0 %v6681_v2  ;;  %4058 = vmatprep.mubr.bf16.mxu1 %v6681_v2  ;;  %v6721_v21 = vpack.c.bf16 %v735_v26, %v735_v26 }
 0x109   :  { %3895 = vmatmul.mubr.bf16.vlgmr.msra.gmra.mrb[8].mxu0 %v6683_v22  ;;  %4059 = vmatmul.mubr.bf16.vlgmr.msra.gmra.mrb[8].mxu1 %v6683_v22 }
 0x10a   :  { %3904 = vmatpush1.bf16.msra.mxu0 %v5441_v27  ;;  %4068 = vmatpush1.bf16.msra.mxu1 %v5443_v28  ;;  %v5457_v27 = vcombine.low %v892_v5, %v896_v7  ;;  %v5459_v28 = vcombine.low %v893_v8, %v897_v9  ;;  %v941_v5 = vld [vmem:[%s8343_s3 + $0x608] sm:$0xff]  ;;  %v5497_v8 = vcombine.low %v932_v58, %v936_v59  ;;  %v980_v59 = vld [vmem:[%s8343_s3 + $0x740] sm:$0xff] }
 0x10b   :  { %3905 = vmatprep.subr.bf16.mxu0 %v5450_v3  ;;  %4069 = vmatprep.subr.bf16.mxu1 %v5452_v4  ;;  %v940_v3 = vld [vmem:[%s8343_s3 + $0x600] sm:$0xff]  ;;  %v945_v7 = vld [vmem:[%s8343_s3 + $0x628] sm:$0xff]  ;;  %v5499_v9 = vcombine.low %v933_v60, %v937_v61  ;;  %v5540_v58 = vcombine.high %v973_v46, %v977_v51 }
 0x10c   :  { %3935 = vmatprep.mubr.bf16.mxu0 %v6721_v21  ;;  %4099 = vmatprep.mubr.bf16.mxu1 %v6721_v21  ;;  %v944_v4 = vld [vmem:[%s8343_s3 + $0x620] sm:$0xff]  ;;  %v5508_v11 = vcombine.high %v941_v5, %v945_v7  ;;  %v981_v61 = vld [vmem:[%s8343_s3 + $0x748] sm:$0xff] }
 0x10d   :  { %v5506_v10 = vcombine.high %v940_v3, %v944_v4  ;;  %v984_v60 = vld [vmem:[%s8343_s3 + $0x760] sm:$0xff] }
 0x10e   :  { %3906 = vmatpush1.bf16.msra.mxu0 %v5449_v14  ;;  %4070 = vmatpush1.bf16.msra.mxu1 %v5451_v15  ;;  %v952_v14 = vld [vmem:[%s8343_s3 + $0x660] sm:$0xff]  ;;  %v949_v15 = vld [vmem:[%s8343_s3 + $0x648] sm:$0xff] }
 0x10f   :  { %3907 = vmatprep.subr.bf16.mxu0 %v5458_v20  ;;  %4071 = vmatprep.subr.bf16.mxu1 %v5460_v24  ;;  %v5505_v20 = vcombine.low %v940_v3, %v944_v4  ;;  %v5507_v24 = vcombine.low %v941_v5, %v945_v7  ;;  %v5514_v25 = vcombine.high %v948_v12, %v952_v14  ;;  %v988_v5 = vld [vmem:[%s8343_s3 + $0x780] sm:$0xff] }
 0x110   :  { %v5516_v26 = vcombine.high %v949_v15, %v953_v19  ;;  %v5515_v30 = vcombine.low %v949_v15, %v953_v19  ;;  %v5546_v3 = vcombine.high %v980_v59, %v984_v60  ;;  %v992_v7 = vld [vmem:[%s8343_s3 + $0x7a0] sm:$0xff] }
 0x111   :  { %v5554_v15 = vcombine.high %v988_v5, %v992_v7 }
 0x112   :  { %3908 = vmatpush1.bf16.msra.mxu0 %v5457_v27  ;;  %4072 = vmatpush1.bf16.msra.mxu1 %v5459_v28  ;;  %v961_v27 = vld [vmem:[%s8343_s3 + $0x6a8] sm:$0xff] }
 0x113   :  { %3909 = vmatprep.subr.bf16.mxu0 %v5466_v29  ;;  %4073 = vmatprep.subr.bf16.mxu1 %v5468_v13  ;;  %v5513_v13 = vcombine.low %v948_v12, %v952_v14  ;;  %v5524_v33 = vcombine.high %v957_v18, %v961_v27  ;;  %v5523_v40 = vcombine.low %v957_v18, %v961_v27 }
 0x114   :  { %v5545_v12 = vcombine.low %v980_v59, %v984_v60  ;;  %v5553_v18 = vcombine.low %v988_v5, %v992_v7  ;;  %v1033_v5 = vld [vmem:[%s8343_s3 + $0x8e8] sm:$0xff] }
 0x116   :  { %3910 = vmatpush1.bf16.msra.mxu0 %v5465_v34  ;;  %4074 = vmatpush1.bf16.msra.mxu1 %v5467_v35  ;;  %v964_v34 = vld [vmem:[%s8343_s3 + $0x6c0] sm:$0xff] }
 0x117   :  { %3911 = vmatprep.subr.bf16.mxu0 %v5474_v36  ;;  %4075 = vmatprep.subr.bf16.mxu1 %v5476_v37  ;;  %v968_v36 = vld [vmem:[%s8343_s3 + $0x6e0] sm:$0xff]  ;;  %v965_v37 = vld [vmem:[%s8343_s3 + $0x6c8] sm:$0xff] }
 0x118   :  { %v5530_v41 = vcombine.high %v964_v34, %v968_v36 }
 0x11a   :  { %3912 = vmatpush1.bf16.msra.mxu0 %v5473_v42  ;;  %4076 = vmatpush1.bf16.msra.mxu1 %v5475_v43  ;;  %v5532_v42 = vcombine.high %v965_v37, %v969_v38  ;;  %v972_v43 = vld [vmem:[%s8343_s3 + $0x700] sm:$0xff] }
 0x11b   :  { %3913 = vmatprep.subr.bf16.mxu0 %v5482_v44  ;;  %4077 = vmatprep.subr.bf16.mxu1 %v5484_v45  ;;  %v976_v45 = vld [vmem:[%s8343_s3 + $0x720] sm:$0xff] }
 0x11e   :  { %3914 = vmatpush1.bf16.msra.mxu0 %v5481_v54  ;;  %4078 = vmatpush1.bf16.msra.mxu1 %v5483_v55  ;;  %v5529_v54 = vcombine.low %v964_v34, %v968_v36  ;;  %v5531_v55 = vcombine.low %v965_v37, %v969_v38 }
 0x11f   :  { %3915 = vmatprep.subr.bf16.mxu0 %v5490_v56  ;;  %4079 = vmatprep.subr.bf16.mxu1 %v5492_v57  ;;  %v5538_v57 = vcombine.high %v972_v43, %v976_v45 }
 0x122   :  { %3916 = vmatpush1.bf16.msra.mxu0 %v5489_v62  ;;  %4080 = vmatpush1.bf16.msra.mxu1 %v5491_v63  ;;  %v985_v62 = vld [vmem:[%s8343_s3 + $0x768] sm:$0xff]  ;;  %v134_v63 = vsub.s32 2, %v6650_v47 }
 0x123   :  { %3917 = vmatprep.subr.bf16.mxu0 %v5498_v0  ;;  %4081 = vmatprep.subr.bf16.mxu1 %v5500_v1  ;;  %v5537_v0 = vcombine.low %v972_v43, %v976_v45  ;;  %v5539_v1 = vcombine.low %v973_v46, %v977_v51  ;;  %v5548_v4 = vcombine.high %v981_v61, %v985_v62 }
 0x124   :  { %v5547_v14 = vcombine.low %v981_v61, %v985_v62 }
 0x126   :  { %3918 = vmatpush1.bf16.msra.mxu0 %v5497_v8  ;;  %4082 = vmatpush1.bf16.msra.mxu1 %v5499_v9  ;;  %v989_v8 = vld [vmem:[%s8343_s3 + $0x788] sm:$0xff] }
 0x127   :  { %3919 = vmatprep.subr.bf16.mxu0 %v5506_v10  ;;  %4083 = vmatprep.subr.bf16.mxu1 %v5508_v11  ;;  %v993_v9 = vld [vmem:[%s8343_s3 + $0x7a8] sm:$0xff]  ;;  %v146_v10 = vsub.s32 5, %v6650_v47  ;;  %v135_v11 = vrot.slane %v6656_v49, %v134_v63 }
 0x128   :  { %v6809_v28 = vpop.f32.mrb[4].mxu0  ;;  %v5556_v19 = vcombine.high %v989_v8, %v993_v9  ;;  %v5555_v27 = vcombine.low %v989_v8, %v993_v9 }
 0x129   :  { %v6811_v29 = vpop.f32.mrb[5].mxu0  ;;  %v147_v16 = vrot.slane %v6656_v49, %v146_v10  ;;  %v644_v17 = vadd.f32 %v6688_v6, %v135_v11  ;;  %v1005_v6 = vld [vmem:[%s8343_s3 + $0x808] sm:$0xff] }
 0x12a   :  { %3920 = vmatpush1.bf16.msra.mxu0 %v5505_v20  ;;  %4084 = vmatpush1.bf16.msra.mxu1 %v5507_v24  ;;  %v688_v31 = vpop.f32.mrb[6].mxu0  ;;  %v996_v20 = vld [vmem:[%s8343_s3 + $0x7c0] sm:$0xff] }
 0x12b   :  { %3921 = vmatprep.subr.bf16.mxu0 %v5514_v25  ;;  %4085 = vmatprep.subr.bf16.mxu1 %v5516_v26  ;;  %v689_v35 = vpop.f32.mrb[7].mxu0  ;;  %v1000_v24 = vld [vmem:[%s8343_s3 + $0x7e0] sm:$0xff]  ;;  %v997_v25 = vld [vmem:[%s8343_s3 + $0x7c8] sm:$0xff]  ;;  %v687_v34 = vadd.f32 %v6811_v29, %v147_v16 }
 0x12c   :  { %v1001_v26 = vld [vmem:[%s8343_s3 + $0x7e8] sm:$0xff]  ;;  %v1004_v31 = vld [vmem:[%s8343_s3 + $0x800] sm:$0xff]  ;;  %v734_v35 = vmax.f32 %v644_v17, 0.0  ;;  %v5561_v36 = vcombine.low %v996_v20, %v1000_v24 }
 0x12d   :  { %v5563_v37 = vcombine.low %v997_v25, %v1001_v26  ;;  %v1013_v29 = vld [vmem:[%s8343_s3 + $0x848] sm:$0xff]  ;;  %v737_v43 = vmax.f32 %v687_v34, 0.0  ;;  %v1044_v16 = vld [vmem:[%s8343_s3 + $0x940] sm:$0xff] }
 0x12e   :  { %3922 = vmatpush1.bf16.msra.mxu0 %v5513_v13  ;;  %4086 = vmatpush1.bf16.msra.mxu1 %v5515_v30  ;;  %v6828_v44 = vpop.f32.mrb[4].mxu1  ;;  %v5562_v13 = vcombine.high %v996_v20, %v1000_v24  ;;  %v5564_v30 = vcombine.high %v997_v25, %v1001_v26  ;;  %v6911_v45 = vpack.c.bf16 %v734_v35, %v734_v35  ;;  %v1048_v17 = vld [vmem:[%s8343_s3 + $0x960] sm:$0xff]  ;;  %v1053_v34 = vld [vmem:[%s8343_s3 + $0x988] sm:$0xff] }
 0x12f   :  { %3923 = vmatprep.subr.bf16.mxu0 %v5522_v32  ;;  %4087 = vmatprep.subr.bf16.mxu1 %v5524_v33  ;;  %v6839_v52 = vpop.f32.mrb[5].mxu1  ;;  %v1008_v32 = vld [vmem:[%s8343_s3 + $0x820] sm:$0xff]  ;;  %v1009_v33 = vld [vmem:[%s8343_s3 + $0x828] sm:$0xff]  ;;  %v6925_v59 = vpack.c.bf16 %v737_v43, %v737_v43 }
 0x130   :  { %v729_v53 = vpop.f32.mrb[6].mxu1  ;;  %v5570_v38 = vcombine.high %v1004_v31, %v1008_v32  ;;  %v5569_v46 = vcombine.low %v1004_v31, %v1008_v32  ;;  %v5571_v51 = vcombine.low %v1005_v6, %v1009_v33  ;;  %v5610_v31 = vcombine.high %v1044_v16, %v1048_v17  ;;  %v1057_v35 = vld [vmem:[%s8343_s3 + $0x9a8] sm:$0xff] }
 0x131   :  { %v730_v56 = vpop.f32.mrb[7].mxu1 }
 0x132   :  { %3924 = vmatpush1.bf16.msra.mxu0 %v5521_v39  ;;  %4088 = vmatpush1.bf16.msra.mxu1 %v5523_v40  ;;  %v5572_v39 = vcombine.high %v1005_v6, %v1009_v33  ;;  %v1012_v40 = vld [vmem:[%s8343_s3 + $0x840] sm:$0xff] }
 0x133   :  { %3925 = vmatprep.subr.bf16.mxu0 %v5530_v41  ;;  %4089 = vmatprep.subr.bf16.mxu1 %v5532_v42  ;;  %v1016_v41 = vld [vmem:[%s8343_s3 + $0x860] sm:$0xff]  ;;  %v1017_v42 = vld [vmem:[%s8343_s3 + $0x868] sm:$0xff] }
 0x134   :  { %v5578_v53 = vcombine.high %v1012_v40, %v1016_v41  ;;  %v1024_v56 = vld [vmem:[%s8343_s3 + $0x8a0] sm:$0xff]  ;;  %v5577_v60 = vcombine.low %v1012_v40, %v1016_v41  ;;  %v5579_v61 = vcombine.low %v1013_v29, %v1017_v42 }
 0x135   :  { %v1052_v6 = vld [vmem:[%s8343_s3 + $0x980] sm:$0xff] }
 0x136   :  { %3926 = vmatpush1.bf16.msra.mxu0 %v5529_v54  ;;  %4090 = vmatpush1.bf16.msra.mxu1 %v5531_v55  ;;  %v5580_v54 = vcombine.high %v1013_v29, %v1017_v42  ;;  %v1020_v55 = vld [vmem:[%s8343_s3 + $0x880] sm:$0xff]  ;;  %v1061_v29 = vld [vmem:[%s8343_s3 + $0x9c8] sm:$0xff] }
 0x137   :  { %3927 = vmatprep.subr.bf16.mxu0 %v5538_v57  ;;  %4091 = vmatprep.subr.bf16.mxu1 %v5540_v58  ;;  %v1021_v57 = vld [vmem:[%s8343_s3 + $0x888] sm:$0xff]  ;;  %v5586_v62 = vcombine.high %v1020_v55, %v1024_v56  ;;  %v5585_v7 = vcombine.low %v1020_v55, %v1024_v56  ;;  %v1056_v33 = vld [vmem:[%s8343_s3 + $0x9a0] sm:$0xff] }
 0x138   :  { %v1025_v58 = vld [vmem:[%s8343_s3 + $0x8a8] sm:$0xff]  ;;  %v1060_v40 = vld [vmem:[%s8343_s3 + $0x9c0] sm:$0xff]  ;;  %v5617_v43 = vcombine.low %v1052_v6, %v1056_v33 }
 0x139   :  { %v5587_v8 = vcombine.low %v1021_v57, %v1025_v58  ;;  %v1064_v41 = vld [vmem:[%s8343_s3 + $0x9e0] sm:$0xff]  ;;  %v1065_v42 = vld [vmem:[%s8343_s3 + $0x9e8] sm:$0xff] }
 0x13a   :  { %3928 = vmatpush1.bf16.msra.mxu0 %v5537_v0  ;;  %4092 = vmatpush1.bf16.msra.mxu1 %v5539_v1  ;;  %v5588_v0 = vcombine.high %v1021_v57, %v1025_v58  ;;  %v1028_v1 = vld [vmem:[%s8343_s3 + $0x8c0] sm:$0xff]  ;;  %v1069_v56 = vld [vmem:[%s8343_s3 + $0xa08] sm:$0xff]  ;;  %v5625_v58 = vcombine.low %v1060_v40, %v1064_v41 }
 0x13b   :  { %3929 = vmatprep.subr.bf16.mxu0 %v5546_v3  ;;  %4093 = vmatprep.subr.bf16.mxu1 %v5548_v4  ;;  %v1032_v3 = vld [vmem:[%s8343_s3 + $0x8e0] sm:$0xff]  ;;  %v1029_v4 = vld [vmem:[%s8343_s3 + $0x8c8] sm:$0xff] }
 0x13c   :  { %v5594_v9 = vcombine.high %v1028_v1, %v1032_v3  ;;  %v5596_v11 = vcombine.high %v1029_v4, %v1033_v5  ;;  %v5593_v20 = vcombine.low %v1028_v1, %v1032_v3  ;;  %v5595_v24 = vcombine.low %v1029_v4, %v1033_v5  ;;  %v1072_v55 = vld [vmem:[%s8343_s3 + $0xa20] sm:$0xff]  ;;  %v1073_v57 = vld [vmem:[%s8343_s3 + $0xa28] sm:$0xff] }
 0x13d   :  { %v1080_v1 = vld [vmem:[%s8343_s3 + $0xa60] sm:$0xff]  ;;  %v1077_v3 = vld [vmem:[%s8343_s3 + $0xa48] sm:$0xff] }
 0x13e   :  { %3930 = vmatpush1.bf16.msra.mxu0 %v5545_v12  ;;  %4094 = vmatpush1.bf16.msra.mxu1 %v5547_v14  ;;  %v1036_v12 = vld [vmem:[%s8343_s3 + $0x900] sm:$0xff]  ;;  %v1081_v4 = vld [vmem:[%s8343_s3 + $0xa68] sm:$0xff] }
 0x13f   :  { %3931 = vmatprep.subr.bf16.mxu0 %v5554_v15  ;;  %4095 = vmatprep.subr.bf16.mxu1 %v5556_v19  ;;  %v1040_v14 = vld [vmem:[%s8343_s3 + $0x920] sm:$0xff]  ;;  %v1037_v15 = vld [vmem:[%s8343_s3 + $0x908] sm:$0xff] }
 0x140   :  { %v1041_v19 = vld [vmem:[%s8343_s3 + $0x928] sm:$0xff]  ;;  %v5602_v25 = vcombine.high %v1036_v12, %v1040_v14 }
 0x141   :  { %v5604_v26 = vcombine.high %v1037_v15, %v1041_v19 }
 0x142   :  { %3932 = vmatpush1.bf16.msra.mxu0 %v5553_v18  ;;  %4096 = vmatpush1.bf16.msra.mxu1 %v5555_v27  ;;  %v1045_v18 = vld [vmem:[%s8343_s3 + $0x948] sm:$0xff] }
 0x143   :  { %3933 = vmatprep.subr.bf16.mxu0 %v5562_v13  ;;  %4097 = vmatprep.subr.bf16.mxu1 %v5564_v30  ;;  %v1049_v27 = vld [vmem:[%s8343_s3 + $0x968] sm:$0xff]  ;;  %v5601_v13 = vcombine.low %v1036_v12, %v1040_v14  ;;  %v5603_v30 = vcombine.low %v1037_v15, %v1041_v19  ;;  %v1088_v12 = vld [vmem:[%s8343_s3 + $0xaa0] sm:$0xff] }
 0x144   :  { %v5612_v32 = vcombine.high %v1045_v18, %v1049_v27  ;;  %v1085_v14 = vld [vmem:[%s8343_s3 + $0xa88] sm:$0xff] }
 0x145   :  { %v1089_v15 = vld [vmem:[%s8343_s3 + $0xaa8] sm:$0xff] }
 0x146   :  { %3934 = vmatpush1.bf16.msra.mxu0 %v5561_v36  ;;  %4098 = vmatpush1.bf16.msra.mxu1 %v5563_v37  ;;  %v5609_v36 = vcombine.low %v1044_v16, %v1048_v17  ;;  %v5611_v37 = vcombine.low %v1045_v18, %v1049_v27  ;;  %v1096_v16 = vld [vmem:[%s8343_s3 + $0xae0] sm:$0xff]  ;;  %v1093_v17 = vld [vmem:[%s8343_s3 + $0xac8] sm:$0xff] }
 0x147   :  { %3944 = vmatprep.subr.bf16.mxu0 %v5570_v38  ;;  %4108 = vmatprep.subr.bf16.mxu1 %v5572_v39  ;;  %v5618_v38 = vcombine.high %v1052_v6, %v1056_v33  ;;  %v5620_v39 = vcombine.high %v1053_v34, %v1057_v35  ;;  %v1097_v18 = vld [vmem:[%s8343_s3 + $0xae8] sm:$0xff]  ;;  %v1104_v6 = vld [vmem:[%s8343_s3 + $0xb20] sm:$0xff] }
 0x148   :  { %v1101_v33 = vld [vmem:[%s8343_s3 + $0xb08] sm:$0xff] }
 0x149   :  { %3936 = vmatmul.mubr.bf16.vlgmr.msra.gmra.mrb[8].mxu0 %v6911_v45  ;;  %4100 = vmatmul.mubr.bf16.vlgmr.msra.gmra.mrb[8].mxu1 %v6911_v45 }
 0x14a   :  { %3945 = vmatpush1.bf16.msra.mxu0 %v5569_v46  ;;  %4109 = vmatpush1.bf16.msra.mxu1 %v5571_v51  ;;  %v5619_v46 = vcombine.low %v1053_v34, %v1057_v35  ;;  %v5626_v51 = vcombine.high %v1060_v40, %v1064_v41  ;;  %v1105_v34 = vld [vmem:[%s8343_s3 + $0xb28] sm:$0xff]  ;;  %v1112_v40 = vld [vmem:[%s8343_s3 + $0xb60] sm:$0xff] }
 0x14b   :  { %3946 = vmatprep.subr.bf16.mxu0 %v5578_v53  ;;  %4110 = vmatprep.subr.bf16.mxu1 %v5580_v54  ;;  %v5628_v53 = vcombine.high %v1061_v29, %v1065_v42  ;;  %v1068_v54 = vld [vmem:[%s8343_s3 + $0xa00] sm:$0xff]  ;;  %v1109_v41 = vld [vmem:[%s8343_s3 + $0xb48] sm:$0xff] }
 0x14c   :  { %3976 = vmatprep.mubr.bf16.mxu0 %v6925_v59  ;;  %4140 = vmatprep.mubr.bf16.mxu1 %v6925_v59  ;;  %v5633_v5 = vcombine.low %v1068_v54, %v1072_v55 }
 0x14e   :  { %3947 = vmatpush1.bf16.msra.mxu0 %v5577_v60  ;;  %4111 = vmatpush1.bf16.msra.mxu1 %v5579_v61  ;;  %v5627_v60 = vcombine.low %v1061_v29, %v1065_v42  ;;  %v5634_v61 = vcombine.high %v1068_v54, %v1072_v55  ;;  %v1113_v29 = vld [vmem:[%s8343_s3 + $0xb68] sm:$0xff]  ;;  %v142_v42 = vsub.s32 4, %v6650_v47  ;;  %v1116_v54 = vld [vmem:[%s8343_s3 + $0xb80] sm:$0xff] }
 0x14f   :  { %3948 = vmatprep.subr.bf16.mxu0 %v5586_v62  ;;  %4112 = vmatprep.subr.bf16.mxu1 %v5588_v0  ;;  %v5636_v62 = vcombine.high %v1069_v56, %v1073_v57  ;;  %v1076_v0 = vld [vmem:[%s8343_s3 + $0xa40] sm:$0xff] }
 0x150   :  { %v5641_v19 = vcombine.low %v1076_v0, %v1080_v1  ;;  %v1120_v55 = vld [vmem:[%s8343_s3 + $0xba0] sm:$0xff] }
 0x152   :  { %3949 = vmatpush1.bf16.msra.mxu0 %v5585_v7  ;;  %4113 = vmatpush1.bf16.msra.mxu1 %v5587_v8  ;;  %v5635_v7 = vcombine.low %v1069_v56, %v1073_v57  ;;  %v5642_v8 = vcombine.high %v1076_v0, %v1080_v1  ;;  %v1117_v56 = vld [vmem:[%s8343_s3 + $0xb88] sm:$0xff]  ;;  %v5682_v0 = vcombine.high %v1116_v54, %v1120_v55 }
 0x153   :  { %3950 = vmatprep.subr.bf16.mxu0 %v5594_v9  ;;  %4114 = vmatprep.subr.bf16.mxu1 %v5596_v11  ;;  %v5644_v9 = vcombine.high %v1077_v3, %v1081_v4  ;;  %v1084_v11 = vld [vmem:[%s8343_s3 + $0xa80] sm:$0xff]  ;;  %v1121_v57 = vld [vmem:[%s8343_s3 + $0xba8] sm:$0xff] }
 0x154   :  { %v5649_v27 = vcombine.low %v1084_v11, %v1088_v12  ;;  %v5684_v1 = vcombine.high %v1117_v56, %v1121_v57 }
 0x156   :  { %3951 = vmatpush1.bf16.msra.mxu0 %v5593_v20  ;;  %4115 = vmatpush1.bf16.msra.mxu1 %v5595_v24  ;;  %v5643_v20 = vcombine.low %v1077_v3, %v1081_v4  ;;  %v5650_v24 = vcombine.high %v1084_v11, %v1088_v12  ;;  %v1124_v3 = vld [vmem:[%s8343_s3 + $0xbc0] sm:$0xff]  ;;  %v5681_v11 = vcombine.low %v1116_v54, %v1120_v55  ;;  %v1157_v54 = vld [vmem:[%s8343_s3 + $0xcc8] sm:$0xff] }
 0x157   :  { %3952 = vmatprep.subr.bf16.mxu0 %v5602_v25  ;;  %4116 = vmatprep.subr.bf16.mxu1 %v5604_v26  ;;  %v5652_v25 = vcombine.high %v1085_v14, %v1089_v15  ;;  %v1092_v26 = vld [vmem:[%s8343_s3 + $0xac0] sm:$0xff]  ;;  %v5683_v12 = vcombine.low %v1117_v56, %v1121_v57  ;;  %v1161_v55 = vld [vmem:[%s8343_s3 + $0xce8] sm:$0xff] }
 0x158   :  { %v5657_v35 = vcombine.low %v1092_v26, %v1096_v16  ;;  %v1128_v4 = vld [vmem:[%s8343_s3 + $0xbe0] sm:$0xff] }
 0x15a   :  { %3953 = vmatpush1.bf16.msra.mxu0 %v5601_v13  ;;  %4117 = vmatpush1.bf16.msra.mxu1 %v5603_v30  ;;  %v5651_v13 = vcombine.low %v1085_v14, %v1089_v15  ;;  %v5658_v30 = vcombine.high %v1092_v26, %v1096_v16  ;;  %v5690_v14 = vcombine.high %v1124_v3, %v1128_v4 }
 0x15b   :  { %3954 = vmatprep.subr.bf16.mxu0 %v5610_v31  ;;  %4118 = vmatprep.subr.bf16.mxu1 %v5612_v32  ;;  %v5660_v31 = vcombine.high %v1093_v17, %v1097_v18  ;;  %v1100_v32 = vld [vmem:[%s8343_s3 + $0xb00] sm:$0xff]  ;;  %v5689_v26 = vcombine.low %v1124_v3, %v1128_v4  ;;  %v1169_v3 = vld [vmem:[%s8343_s3 + $0xd28] sm:$0xff] }
 0x15e   :  { %3955 = vmatpush1.bf16.msra.mxu0 %v5609_v36  ;;  %4119 = vmatpush1.bf16.msra.mxu1 %v5611_v37  ;;  %v5659_v36 = vcombine.low %v1093_v17, %v1097_v18  ;;  %v5666_v37 = vcombine.high %v1100_v32, %v1104_v6 }
 0x15f   :  { %3956 = vmatprep.subr.bf16.mxu0 %v5618_v38  ;;  %4120 = vmatprep.subr.bf16.mxu1 %v5620_v39  ;;  %v5668_v38 = vcombine.high %v1101_v33, %v1105_v34  ;;  %v1108_v39 = vld [vmem:[%s8343_s3 + $0xb40] sm:$0xff] }
 0x162   :  { %3957 = vmatpush1.bf16.msra.mxu0 %v5617_v43  ;;  %4121 = vmatpush1.bf16.msra.mxu1 %v5619_v46  ;;  %v5665_v43 = vcombine.low %v1100_v32, %v1104_v6  ;;  %v5667_v46 = vcombine.low %v1101_v33, %v1105_v34 }
 0x163   :  { %3958 = vmatprep.subr.bf16.mxu0 %v5626_v51  ;;  %4122 = vmatprep.subr.bf16.mxu1 %v5628_v53  ;;  %v5674_v51 = vcombine.high %v1108_v39, %v1112_v40  ;;  %v5676_v53 = vcombine.high %v1109_v41, %v1113_v29 }
 0x166   :  { %3959 = vmatpush1.bf16.msra.mxu0 %v5625_v58  ;;  %4123 = vmatpush1.bf16.msra.mxu1 %v5627_v60  ;;  %v154_v58 = vsub.s32 7, %v6650_v47  ;;  %v143_v60 = vrot.slane %v6656_v49, %v142_v42 }
 0x167   :  { %3960 = vmatprep.subr.bf16.mxu0 %v5634_v61  ;;  %4124 = vmatprep.subr.bf16.mxu1 %v5636_v62  ;;  %v5673_v61 = vcombine.low %v1108_v39, %v1112_v40  ;;  %v5675_v62 = vcombine.low %v1109_v41, %v1113_v29  ;;  %v1153_v39 = vld [vmem:[%s8343_s3 + $0xca8] sm:$0xff] }
 0x16a   :  { %3961 = vmatpush1.bf16.msra.mxu0 %v5633_v5  ;;  %4125 = vmatpush1.bf16.msra.mxu1 %v5635_v7  ;;  %v1125_v5 = vld [vmem:[%s8343_s3 + $0xbc8] sm:$0xff] }
 0x16b   :  { %3962 = vmatprep.subr.bf16.mxu0 %v5642_v8  ;;  %4126 = vmatprep.subr.bf16.mxu1 %v5644_v9  ;;  %v1129_v7 = vld [vmem:[%s8343_s3 + $0xbe8] sm:$0xff]  ;;  %v155_v8 = vrot.slane %v6656_v49, %v154_v58  ;;  %v685_v9 = vadd.f32 %v6809_v28, %v143_v60 }
 0x16c   :  { %v5692_v15 = vcombine.high %v1125_v5, %v1129_v7  ;;  %v1133_v49 = vld [vmem:[%s8343_s3 + $0xc08] sm:$0xff]  ;;  %v5691_v16 = vcombine.low %v1125_v5, %v1129_v7  ;;  %v5723_v5 = vcombine.low %v1157_v54, %v1161_v55 }
 0x16d   :  { %v1137_v28 = vld [vmem:[%s8343_s3 + $0xc28] sm:$0xff] }
 0x16e   :  { %3963 = vmatpush1.bf16.msra.mxu0 %v5641_v19  ;;  %4127 = vmatpush1.bf16.msra.mxu1 %v5643_v20  ;;  %v1132_v19 = vld [vmem:[%s8343_s3 + $0xc00] sm:$0xff]  ;;  %v5700_v18 = vcombine.high %v1133_v49, %v1137_v28  ;;  %v5699_v33 = vcombine.low %v1133_v49, %v1137_v28 }
 0x16f   :  { %3964 = vmatprep.subr.bf16.mxu0 %v5650_v24  ;;  %4128 = vmatprep.subr.bf16.mxu1 %v5652_v25  ;;  %v1136_v20 = vld [vmem:[%s8343_s3 + $0xc20] sm:$0xff]  ;;  %v728_v24 = vadd.f32 %v6839_v52, %v155_v8  ;;  %v736_v25 = vmax.f32 %v685_v9, 0.0  ;;  %v1141_v52 = vld [vmem:[%s8343_s3 + $0xc48] sm:$0xff] }
 0x170   :  { %v5698_v17 = vcombine.high %v1132_v19, %v1136_v20  ;;  %v5697_v6 = vcombine.low %v1132_v19, %v1136_v20  ;;  %v1172_v9 = vld [vmem:[%s8343_s3 + $0xd40] sm:$0xff] }
 0x171   :  { %v7121_v32 = vpack.c.bf16 %v736_v25, %v736_v25  ;;  %v1180_v28 = vld [vmem:[%s8343_s3 + $0xd80] sm:$0xff]  ;;  %v1181_v25 = vld [vmem:[%s8343_s3 + $0xd88] sm:$0xff] }
 0x172   :  { %3965 = vmatpush1.bf16.msra.mxu0 %v5649_v27  ;;  %4129 = vmatpush1.bf16.msra.mxu1 %v5651_v13  ;;  %v1140_v27 = vld [vmem:[%s8343_s3 + $0xc40] sm:$0xff] }
 0x173   :  { %3966 = vmatprep.subr.bf16.mxu0 %v5658_v30  ;;  %4130 = vmatprep.subr.bf16.mxu1 %v5660_v31  ;;  %v1144_v13 = vld [vmem:[%s8343_s3 + $0xc60] sm:$0xff]  ;;  %v1145_v30 = vld [vmem:[%s8343_s3 + $0xc68] sm:$0xff]  ;;  %v739_v31 = vmax.f32 %v728_v24, 0.0 }
 0x174   :  { %v5706_v34 = vcombine.high %v1140_v27, %v1144_v13  ;;  %v5705_v41 = vcombine.low %v1140_v27, %v1144_v13  ;;  %v5707_v29 = vcombine.low %v1141_v52, %v1145_v30  ;;  %v1184_v24 = vld [vmem:[%s8343_s3 + $0xda0] sm:$0xff] }
 0x175   :  { %v7135_v40 = vpack.c.bf16 %v739_v31, %v739_v31  ;;  %v1188_v13 = vld [vmem:[%s8343_s3 + $0xdc0] sm:$0xff]  ;;  %v1193_v31 = vld [vmem:[%s8343_s3 + $0xde8] sm:$0xff] }
 0x176   :  { %3967 = vmatpush1.bf16.msra.mxu0 %v5657_v35  ;;  %4131 = vmatpush1.bf16.msra.mxu1 %v5659_v36  ;;  %v5708_v35 = vcombine.high %v1141_v52, %v1145_v30  ;;  %v1148_v36 = vld [vmem:[%s8343_s3 + $0xc80] sm:$0xff]  ;;  %v1189_v30 = vld [vmem:[%s8343_s3 + $0xdc8] sm:$0xff] }
 0x177   :  { %3968 = vmatprep.subr.bf16.mxu0 %v5666_v37  ;;  %4132 = vmatprep.subr.bf16.mxu1 %v5668_v38  ;;  %v1152_v37 = vld [vmem:[%s8343_s3 + $0xca0] sm:$0xff]  ;;  %v1149_v38 = vld [vmem:[%s8343_s3 + $0xc88] sm:$0xff] }
 0x178   :  { %v5713_v56 = vcombine.low %v1148_v36, %v1152_v37  ;;  %v5715_v57 = vcombine.low %v1149_v38, %v1153_v39  ;;  %v1192_v52 = vld [vmem:[%s8343_s3 + $0xde0] sm:$0xff] }
 0x17a   :  { %3969 = vmatpush1.bf16.msra.mxu0 %v5665_v43  ;;  %4133 = vmatpush1.bf16.msra.mxu1 %v5667_v46  ;;  %v5714_v43 = vcombine.high %v1148_v36, %v1152_v37  ;;  %v5716_v46 = vcombine.high %v1149_v38, %v1153_v39  ;;  %v1196_v36 = vld [vmem:[%s8343_s3 + $0xe00] sm:$0xff]  ;;  %v1197_v38 = vld [vmem:[%s8343_s3 + $0xe08] sm:$0xff] }
 0x17b   :  { %3970 = vmatprep.subr.bf16.mxu0 %v5674_v51  ;;  %4134 = vmatprep.subr.bf16.mxu1 %v5676_v53  ;;  %v1156_v51 = vld [vmem:[%s8343_s3 + $0xcc0] sm:$0xff]  ;;  %v1201_v39 = vld [vmem:[%s8343_s3 + $0xe28] sm:$0xff] }
 0x17c   :  { %v1160_v53 = vld [vmem:[%s8343_s3 + $0xce0] sm:$0xff] }
 0x17d   :  { %v5722_v60 = vcombine.high %v1156_v51, %v1160_v53  ;;  %v5721_v4 = vcombine.low %v1156_v51, %v1160_v53  ;;  %v1200_v37 = vld [vmem:[%s8343_s3 + $0xe20] sm:$0xff] }
 0x17e   :  { %3971 = vmatpush1.bf16.msra.mxu0 %v5673_v61  ;;  %4135 = vmatpush1.bf16.msra.mxu1 %v5675_v62  ;;  %v5724_v61 = vcombine.high %v1157_v54, %v1161_v55  ;;  %v1164_v62 = vld [vmem:[%s8343_s3 + $0xd00] sm:$0xff]  ;;  %v1205_v54 = vld [vmem:[%s8343_s3 + $0xe48] sm:$0xff] }
 0x17f   :  { %3972 = vmatprep.subr.bf16.mxu0 %v5682_v0  ;;  %4136 = vmatprep.subr.bf16.mxu1 %v5684_v1  ;;  %v1168_v0 = vld [vmem:[%s8343_s3 + $0xd20] sm:$0xff]  ;;  %v1165_v1 = vld [vmem:[%s8343_s3 + $0xd08] sm:$0xff] }
 0x180   :  { %v5730_v7 = vcombine.high %v1164_v62, %v1168_v0  ;;  %v5732_v8 = vcombine.high %v1165_v1, %v1169_v3  ;;  %v5731_v19 = vcombine.low %v1165_v1, %v1169_v3  ;;  %v1204_v51 = vld [vmem:[%s8343_s3 + $0xe40] sm:$0xff]  ;;  %v1209_v55 = vld [vmem:[%s8343_s3 + $0xe68] sm:$0xff] }
 0x181   :  { %v1208_v53 = vld [vmem:[%s8343_s3 + $0xe60] sm:$0xff]  ;;  %v1213_v1 = vld [vmem:[%s8343_s3 + $0xe88] sm:$0xff] }
 0x182   :  { %3973 = vmatpush1.bf16.msra.mxu0 %v5681_v11  ;;  %4137 = vmatpush1.bf16.msra.mxu1 %v5683_v12  ;;  %v1176_v11 = vld [vmem:[%s8343_s3 + $0xd60] sm:$0xff]  ;;  %v1173_v12 = vld [vmem:[%s8343_s3 + $0xd48] sm:$0xff] }
 0x183   :  { %3974 = vmatprep.subr.bf16.mxu0 %v5690_v14  ;;  %4138 = vmatprep.subr.bf16.mxu1 %v5692_v15  ;;  %v1177_v14 = vld [vmem:[%s8343_s3 + $0xd68] sm:$0xff]  ;;  %v5729_v15 = vcombine.low %v1164_v62, %v1168_v0  ;;  %v5738_v20 = vcombine.high %v1172_v9, %v1176_v11  ;;  %v1212_v62 = vld [vmem:[%s8343_s3 + $0xe80] sm:$0xff] }
 0x184   :  { %v5740_v49 = vcombine.high %v1173_v12, %v1177_v14  ;;  %v1216_v0 = vld [vmem:[%s8343_s3 + $0xea0] sm:$0xff]  ;;  %v1217_v3 = vld [vmem:[%s8343_s3 + $0xea8] sm:$0xff] }
 0x186   :  { %3975 = vmatpush1.bf16.msra.mxu0 %v5689_v26  ;;  %4139 = vmatpush1.bf16.msra.mxu1 %v5691_v16  ;;  %v1185_v26 = vld [vmem:[%s8343_s3 + $0xda8] sm:$0xff]  ;;  %v5737_v16 = vcombine.low %v1172_v9, %v1176_v11  ;;  %v1220_v9 = vld [vmem:[%s8343_s3 + $0xec0] sm:$0xff] }
 0x187   :  { %3985 = vmatprep.subr.bf16.mxu0 %v5698_v17  ;;  %4149 = vmatprep.subr.bf16.mxu1 %v5700_v18  ;;  %v5739_v17 = vcombine.low %v1173_v12, %v1177_v14  ;;  %v5746_v18 = vcombine.high %v1180_v28, %v1184_v24  ;;  %v5748_v27 = vcombine.high %v1181_v25, %v1185_v26  ;;  %v1224_v11 = vld [vmem:[%s8343_s3 + $0xee0] sm:$0xff]  ;;  %v1221_v12 = vld [vmem:[%s8343_s3 + $0xec8] sm:$0xff] }
 0x188   :  { %v1225_v14 = vld [vmem:[%s8343_s3 + $0xee8] sm:$0xff] }
 0x189   :  { %3977 = vmatmul.mubr.bf16.vlgmr.msra.gmra.mrb[8].mxu0 %v7121_v32  ;;  %4141 = vmatmul.mubr.bf16.vlgmr.msra.gmra.mrb[8].mxu1 %v7121_v32 }
 0x18a   :  { %3986 = vmatpush1.bf16.msra.mxu0 %v5697_v6  ;;  %4150 = vmatpush1.bf16.msra.mxu1 %v5699_v33  ;;  %v5745_v6 = vcombine.low %v1180_v28, %v1184_v24  ;;  %v5747_v33 = vcombine.low %v1181_v25, %v1185_v26  ;;  %v1228_v28 = vld [vmem:[%s8343_s3 + $0xf00] sm:$0xff]  ;;  %v1229_v25 = vld [vmem:[%s8343_s3 + $0xf08] sm:$0xff] }
 0x18b   :  { %3987 = vmatprep.subr.bf16.mxu0 %v5706_v34  ;;  %4151 = vmatprep.subr.bf16.mxu1 %v5708_v35  ;;  %v5754_v34 = vcombine.high %v1188_v13, %v1192_v52  ;;  %v5756_v35 = vcombine.high %v1189_v30, %v1193_v31  ;;  %v1232_v24 = vld [vmem:[%s8343_s3 + $0xf20] sm:$0xff]  ;;  %v1233_v26 = vld [vmem:[%s8343_s3 + $0xf28] sm:$0xff] }
 0x18c   :  { %4017 = vmatprep.mubr.bf16.mxu0 %v7135_v40  ;;  %4181 = vmatprep.mubr.bf16.mxu1 %v7135_v40 }
 0x18e   :  { %3988 = vmatpush1.bf16.msra.mxu0 %v5705_v41  ;;  %4152 = vmatpush1.bf16.msra.mxu1 %v5707_v29  ;;  %v5753_v41 = vcombine.low %v1188_v13, %v1192_v52  ;;  %v5755_v29 = vcombine.low %v1189_v30, %v1193_v31  ;;  %v1236_v13 = vld [vmem:[%s8343_s3 + $0xf40] sm:$0xff]  ;;  %v1237_v30 = vld [vmem:[%s8343_s3 + $0xf48] sm:$0xff] }
 0x18f   :  { %3989 = vmatprep.subr.bf16.mxu0 %v5714_v43  ;;  %4153 = vmatprep.subr.bf16.mxu1 %v5716_v46  ;;  %v5762_v43 = vcombine.high %v1196_v36, %v1200_v37  ;;  %v5764_v46 = vcombine.high %v1197_v38, %v1201_v39  ;;  %v1240_v52 = vld [vmem:[%s8343_s3 + $0xf60] sm:$0xff]  ;;  %v1241_v31 = vld [vmem:[%s8343_s3 + $0xf68] sm:$0xff] }
 0x192   :  { %3990 = vmatpush1.bf16.msra.mxu0 %v5713_v56  ;;  %4154 = vmatpush1.bf16.msra.mxu1 %v5715_v57  ;;  %v5761_v56 = vcombine.low %v1196_v36, %v1200_v37  ;;  %v5763_v57 = vcombine.low %v1197_v38, %v1201_v39  ;;  %v5804_v36 = vcombine.high %v1237_v30, %v1241_v31  ;;  %v1244_v37 = vld [vmem:[%s8343_s3 + $0xf80] sm:$0xff]  ;;  %v1245_v39 = vld [vmem:[%s8343_s3 + $0xf88] sm:$0xff] }
 0x193   :  { %3991 = vmatprep.subr.bf16.mxu0 %v5722_v60  ;;  %4155 = vmatprep.subr.bf16.mxu1 %v5724_v61  ;;  %v5770_v60 = vcombine.high %v1204_v51, %v1208_v53  ;;  %v5772_v61 = vcombine.high %v1205_v54, %v1209_v55  ;;  %v1248_v38 = vld [vmem:[%s8343_s3 + $0xfa0] sm:$0xff] }
 0x196   :  { %3992 = vmatpush1.bf16.msra.mxu0 %v5721_v4  ;;  %4156 = vmatpush1.bf16.msra.mxu1 %v5723_v5  ;;  %v5769_v4 = vcombine.low %v1204_v51, %v1208_v53  ;;  %v5771_v5 = vcombine.low %v1205_v54, %v1209_v55  ;;  %v5810_v53 = vcombine.high %v1244_v37, %v1248_v38  ;;  %v1252_v55 = vld [vmem:[%s8343_s3 + $0xfc0] sm:$0xff] }
 0x197   :  { %3993 = vmatprep.subr.bf16.mxu0 %v5730_v7  ;;  %4157 = vmatprep.subr.bf16.mxu1 %v5732_v8  ;;  %v5778_v7 = vcombine.high %v1212_v62, %v1216_v0  ;;  %v5780_v8 = vcombine.high %v1213_v1, %v1217_v3 }
 0x19a   :  { %3994 = vmatpush1.bf16.msra.mxu0 %v5729_v15  ;;  %4158 = vmatpush1.bf16.msra.mxu1 %v5731_v19  ;;  %v5777_v15 = vcombine.low %v1212_v62, %v1216_v0  ;;  %v5779_v19 = vcombine.low %v1213_v1, %v1217_v3 }
 0x19b   :  { %3995 = vmatprep.subr.bf16.mxu0 %v5738_v20  ;;  %4159 = vmatprep.subr.bf16.mxu1 %v5740_v49  ;;  %v5786_v20 = vcombine.high %v1220_v9, %v1224_v11  ;;  %v5788_v49 = vcombine.high %v1221_v12, %v1225_v14 }
 0x19e   :  { %3996 = vmatpush1.bf16.msra.mxu0 %v5737_v16  ;;  %4160 = vmatpush1.bf16.msra.mxu1 %v5739_v17  ;;  %v5785_v16 = vcombine.low %v1220_v9, %v1224_v11  ;;  %v5787_v17 = vcombine.low %v1221_v12, %v1225_v14 }
 0x19f   :  { %3997 = vmatprep.subr.bf16.mxu0 %v5746_v18  ;;  %4161 = vmatprep.subr.bf16.mxu1 %v5748_v27  ;;  %v5794_v18 = vcombine.high %v1228_v28, %v1232_v24  ;;  %v5796_v27 = vcombine.high %v1229_v25, %v1233_v26 }
 0x1a2   :  { %3998 = vmatpush1.bf16.msra.mxu0 %v5745_v6  ;;  %4162 = vmatpush1.bf16.msra.mxu1 %v5747_v33  ;;  %v5793_v6 = vcombine.low %v1228_v28, %v1232_v24  ;;  %v5795_v33 = vcombine.low %v1229_v25, %v1233_v26 }
 0x1a3   :  { %3999 = vmatprep.subr.bf16.mxu0 %v5754_v34  ;;  %4163 = vmatprep.subr.bf16.mxu1 %v5756_v35  ;;  %v150_v34 = vsub.s32 6, %v6650_v47  ;;  %v5802_v35 = vcombine.high %v1236_v13, %v1240_v52 }
 0x1a6   :  { %4000 = vmatpush1.bf16.msra.mxu0 %v5753_v41  ;;  %4164 = vmatpush1.bf16.msra.mxu1 %v5755_v29  ;;  %v1249_v41 = vld [vmem:[%s8343_s3 + $0xfa8] sm:$0xff]  ;;  %v5801_v29 = vcombine.low %v1236_v13, %v1240_v52  ;;  %v771_v13 = vld [vmem:[%s8343_s3 + $0xb8] sm:$0xff] }
 0x1a7   :  { %4001 = vmatprep.subr.bf16.mxu0 %v5762_v43  ;;  %4165 = vmatprep.subr.bf16.mxu1 %v5764_v46  ;;  %v5803_v43 = vcombine.low %v1237_v30, %v1241_v31  ;;  %v6099_v46 = vld [vmem:[%s8342_s2] sm:$0xff]  ;;  %v5812_v54 = vcombine.high %v1245_v39, %v1249_v41  ;;  %v5811_v62 = vcombine.low %v1245_v39, %v1249_v41 }
 0x1a8   :  { %v151_v51 = vrot.slane %v6099_v46, %v150_v34  ;;  %v783_v46 = vld [vmem:[%s8343_s3 + $0x118] sm:$0xff] }
 0x1aa   :  { %4002 = vmatpush1.bf16.msra.mxu0 %v5761_v56  ;;  %4166 = vmatpush1.bf16.msra.mxu1 %v5763_v57  ;;  %v1256_v56 = vld [vmem:[%s8343_s3 + $0xfe0] sm:$0xff]  ;;  %v1253_v57 = vld [vmem:[%s8343_s3 + $0xfc8] sm:$0xff]  ;;  %v726_v0 = vadd.f32 %v6828_v44, %v151_v51  ;;  %v755_v44 = vld [vmem:[%s8343_s3 + $0x38] sm:$0xff] }
 0x1ab   :  { %4003 = vmatprep.subr.bf16.mxu0 %v5770_v60  ;;  %4167 = vmatprep.subr.bf16.mxu1 %v5772_v61  ;;  %v1257_v60 = vld [vmem:[%s8343_s3 + $0xfe8] sm:$0xff]  ;;  %v5809_v61 = vcombine.low %v1244_v37, %v1248_v38  ;;  %v5818_v1 = vcombine.high %v1252_v55, %v1256_v56  ;;  %v787_v51 = vld [vmem:[%s8343_s3 + $0x138] sm:$0xff] }
 0x1ac   :  { %v5820_v3 = vcombine.high %v1253_v57, %v1257_v60  ;;  %v5819_v9 = vcombine.low %v1253_v57, %v1257_v60  ;;  %v738_v11 = vmax.f32 %v726_v0, 0.0  ;;  %v790_v57 = vld [vmem:[%s8343_s3 + $0x150] sm:$0xff] }
 0x1ad   :  { %v794_v60 = vld [vmem:[%s8343_s3 + $0x170] sm:$0xff] }
 0x1ae   :  { %4004 = vmatpush1.bf16.msra.mxu0 %v5769_v4  ;;  %4168 = vmatpush1.bf16.msra.mxu1 %v5771_v5  ;;  %v750_v4 = vld [vmem:[%s8343_s3 + $0x10] sm:$0xff]  ;;  %v7328_v24 = vpack.c.bf16 %v738_v11, %v738_v11 }
 0x1af   :  { %4005 = vmatprep.subr.bf16.mxu0 %v5778_v7  ;;  %4169 = vmatprep.subr.bf16.mxu1 %v5780_v8  ;;  %v754_v5 = vld [vmem:[%s8343_s3 + $0x30] sm:$0xff]  ;;  %v751_v7 = vld [vmem:[%s8343_s3 + $0x18] sm:$0xff]  ;;  %v5817_v8 = vcombine.low %v1252_v55, %v1256_v56  ;;  %v5352_v56 = vcombine.high %v783_v46, %v787_v51 }
 0x1b0   :  { %v5318_v12 = vcombine.high %v750_v4, %v754_v5  ;;  %v5320_v14 = vcombine.high %v751_v7, %v755_v44  ;;  %v5317_v28 = vcombine.low %v750_v4, %v754_v5  ;;  %v5319_v25 = vcombine.low %v751_v7, %v755_v44  ;;  %v798_v5 = vld [vmem:[%s8343_s3 + $0x190] sm:$0xff]  ;;  %v799_v44 = vld [vmem:[%s8343_s3 + $0x198] sm:$0xff] }
 0x1b1   :  { %v802_v7 = vld [vmem:[%s8343_s3 + $0x1b0] sm:$0xff] }
 0x1b2   :  { %4006 = vmatpush1.bf16.msra.mxu0 %v5777_v15  ;;  %4170 = vmatpush1.bf16.msra.mxu1 %v5779_v19  ;;  %v758_v15 = vld [vmem:[%s8343_s3 + $0x50] sm:$0xff] }
 0x1b3   :  { %4007 = vmatprep.subr.bf16.mxu0 %v5786_v20  ;;  %4171 = vmatprep.subr.bf16.mxu1 %v5788_v49  ;;  %v762_v19 = vld [vmem:[%s8343_s3 + $0x70] sm:$0xff]  ;;  %v759_v20 = vld [vmem:[%s8343_s3 + $0x58] sm:$0xff] }
 0x1b4   :  { %v763_v49 = vld [vmem:[%s8343_s3 + $0x78] sm:$0xff]  ;;  %v5326_v26 = vcombine.high %v758_v15, %v762_v19  ;;  %v5325_v52 = vcombine.low %v758_v15, %v762_v19  ;;  %v806_v15 = vld [vmem:[%s8343_s3 + $0x1d0] sm:$0xff] }
 0x1b5   :  { %v5327_v30 = vcombine.low %v759_v20, %v763_v49  ;;  %v810_v19 = vld [vmem:[%s8343_s3 + $0x1f0] sm:$0xff] }
 0x1b6   :  { %4008 = vmatpush1.bf16.msra.mxu0 %v5785_v16  ;;  %4172 = vmatpush1.bf16.msra.mxu1 %v5787_v17  ;;  %v5328_v16 = vcombine.high %v759_v20, %v763_v49  ;;  %v766_v17 = vld [vmem:[%s8343_s3 + $0x90] sm:$0xff]  ;;  %v807_v20 = vld [vmem:[%s8343_s3 + $0x1d8] sm:$0xff] }
 0x1b7   :  { %4009 = vmatprep.subr.bf16.mxu0 %v5794_v18  ;;  %4173 = vmatprep.subr.bf16.mxu1 %v5796_v27  ;;  %v770_v18 = vld [vmem:[%s8343_s3 + $0xb0] sm:$0xff]  ;;  %v767_v27 = vld [vmem:[%s8343_s3 + $0x98] sm:$0xff] }
 0x1b8   :  { %v5334_v31 = vcombine.high %v766_v17, %v770_v18  ;;  %v5333_v37 = vcombine.low %v766_v17, %v770_v18  ;;  %v5335_v38 = vcombine.low %v767_v27, %v771_v13  ;;  %v811_v49 = vld [vmem:[%s8343_s3 + $0x1f8] sm:$0xff]  ;;  %v814_v17 = vld [vmem:[%s8343_s3 + $0x210] sm:$0xff] }
 0x1b9   :  { %v818_v18 = vld [vmem:[%s8343_s3 + $0x230] sm:$0xff] }
 0x1ba   :  { %4010 = vmatpush1.bf16.msra.mxu0 %v5793_v6  ;;  %4174 = vmatpush1.bf16.msra.mxu1 %v5795_v33  ;;  %v5336_v6 = vcombine.high %v767_v27, %v771_v13  ;;  %v774_v33 = vld [vmem:[%s8343_s3 + $0xd0] sm:$0xff]  ;;  %v815_v27 = vld [vmem:[%s8343_s3 + $0x218] sm:$0xff] }
 0x1bb   :  { %4011 = vmatprep.subr.bf16.mxu0 %v5802_v35  ;;  %4175 = vmatprep.subr.bf16.mxu1 %v5804_v36  ;;  %v778_v35 = vld [vmem:[%s8343_s3 + $0xf0] sm:$0xff]  ;;  %v775_v36 = vld [vmem:[%s8343_s3 + $0xd8] sm:$0xff] }
 0x1bc   :  { %v5342_v39 = vcombine.high %v774_v33, %v778_v35  ;;  %v819_v13 = vld [vmem:[%s8343_s3 + $0x238] sm:$0xff] }
 0x1be   :  { %4012 = vmatpush1.bf16.msra.mxu0 %v5801_v29  ;;  %4176 = vmatpush1.bf16.msra.mxu1 %v5803_v43  ;;  %v782_v29 = vld [vmem:[%s8343_s3 + $0x110] sm:$0xff] }
 0x1bf   :  { %4013 = vmatprep.subr.bf16.mxu0 %v5810_v53  ;;  %4177 = vmatprep.subr.bf16.mxu1 %v5812_v54  ;;  %v786_v43 = vld [vmem:[%s8343_s3 + $0x130] sm:$0xff]  ;;  %v5341_v53 = vcombine.low %v774_v33, %v778_v35 }
 0x1c0   :  { %v5350_v55 = vcombine.high %v782_v29, %v786_v43  ;;  %v5349_v0 = vcombine.low %v782_v29, %v786_v43  ;;  %v822_v33 = vld [vmem:[%s8343_s3 + $0x250] sm:$0xff] }
 0x1c1   :  { %v826_v35 = vld [vmem:[%s8343_s3 + $0x270] sm:$0xff] }
 0x1c2   :  { %4014 = vmatpush1.bf16.msra.mxu0 %v5809_v61  ;;  %4178 = vmatpush1.bf16.msra.mxu1 %v5811_v62  ;;  %v791_v61 = vld [vmem:[%s8343_s3 + $0x158] sm:$0xff]  ;;  %v830_v29 = vld [vmem:[%s8343_s3 + $0x290] sm:$0xff] }
 0x1c3   :  { %4015 = vmatprep.subr.bf16.mxu0 %v5818_v1  ;;  %4179 = vmatprep.subr.bf16.mxu1 %v5820_v3  ;;  %v795_v62 = vld [vmem:[%s8343_s3 + $0x178] sm:$0xff]  ;;  %v5351_v1 = vcombine.low %v783_v46, %v787_v51  ;;  %v5358_v3 = vcombine.high %v790_v57, %v794_v60  ;;  %v834_v43 = vld [vmem:[%s8343_s3 + $0x2b0] sm:$0xff] }
 0x1c4   :  { %v5360_v4 = vcombine.high %v791_v61, %v795_v62  ;;  %v5359_v11 = vcombine.low %v791_v61, %v795_v62  ;;  %v831_v46 = vld [vmem:[%s8343_s3 + $0x298] sm:$0xff] }
 0x1c5   :  { %v835_v51 = vld [vmem:[%s8343_s3 + $0x2b8] sm:$0xff] }
 0x1c6   :  { %4016 = vmatpush1.bf16.msra.mxu0 %v5817_v8  ;;  %4180 = vmatpush1.bf16.msra.mxu1 %v5819_v9  ;;  %v803_v8 = vld [vmem:[%s8343_s3 + $0x1b8] sm:$0xff]  ;;  %v5357_v9 = vcombine.low %v790_v57, %v794_v60  ;;  %v838_v57 = vld [vmem:[%s8343_s3 + $0x2d0] sm:$0xff] }
 0x1c7   :  { %4190 = vmatprep.subr.bf16.mxu0 %v5318_v12  ;;  %4354 = vmatprep.subr.bf16.mxu1 %v5320_v14  ;;  %v5366_v12 = vcombine.high %v798_v5, %v802_v7  ;;  %v5368_v14 = vcombine.high %v799_v44, %v803_v8  ;;  %v842_v60 = vld [vmem:[%s8343_s3 + $0x2f0] sm:$0xff]  ;;  %v839_v61 = vld [vmem:[%s8343_s3 + $0x2d8] sm:$0xff] }
 0x1c8   :  { %v843_v62 = vld [vmem:[%s8343_s3 + $0x2f8] sm:$0xff] }
 0x1c9   :  { %4018 = vmatmul.mubr.bf16.vlgmr.msra.gmra.mrb[8].mxu0 %v7328_v24  ;;  %4182 = vmatmul.mubr.bf16.vlgmr.msra.gmra.mrb[8].mxu1 %v7328_v24 }
 0x1ca   :  { %4191 = vmatpush1.bf16.msra.mxu0 %v5317_v28  ;;  %4222 = vmatprep.mubr.bf16.mxu0 %v6681_v2  ;;  %v5365_v28 = vcombine.low %v798_v5, %v802_v7  ;;  %v846_v5 = vld [vmem:[%s8343_s3 + $0x310] sm:$0xff] }
 0x1cb   :  { %4355 = vmatpush1.bf16.msra.mxu1 %v5319_v25  ;;  %4386 = vmatprep.mubr.bf16.mxu1 %v6681_v2  ;;  %v779_v2 = vld [vmem:[%s8343_s3 + $0xf8] sm:$0xff]  ;;  %v5367_v25 = vcombine.low %v799_v44, %v803_v8  ;;  %v850_v7 = vld [vmem:[%s8343_s3 + $0x330] sm:$0xff] }
 0x1cc   :  { %4192 = vmatprep.subr.bf16.mxu0 %v5326_v26  ;;  %4356 = vmatprep.subr.bf16.mxu1 %v5328_v16  ;;  %v5344_v41 = vcombine.high %v775_v36, %v779_v2  ;;  %v5343_v54 = vcombine.low %v775_v36, %v779_v2  ;;  %v5374_v26 = vcombine.high %v806_v15, %v810_v19  ;;  %v823_v36 = vld [vmem:[%s8343_s3 + $0x258] sm:$0xff] }
 0x1cd   :  { %v5376_v16 = vcombine.high %v807_v20, %v811_v49  ;;  %v827_v2 = vld [vmem:[%s8343_s3 + $0x278] sm:$0xff] }
 0x1ce   :  { %4193 = vmatpush1.bf16.msra.mxu0 %v5325_v52  ;;  %v5373_v52 = vcombine.low %v806_v15, %v810_v19  ;;  %v847_v44 = vld [vmem:[%s8343_s3 + $0x318] sm:$0xff]  ;;  %v854_v15 = vld [vmem:[%s8343_s3 + $0x350] sm:$0xff] }
 0x1cf   :  { %4357 = vmatpush1.bf16.msra.mxu1 %v5327_v30  ;;  %4194 = vmatprep.subr.bf16.mxu0 %v5334_v31  ;;  %v5375_v30 = vcombine.low %v807_v20, %v811_v49  ;;  %v5382_v31 = vcombine.high %v814_v17, %v818_v18  ;;  %v851_v8 = vld [vmem:[%s8343_s3 + $0x338] sm:$0xff]  ;;  %v858_v19 = vld [vmem:[%s8343_s3 + $0x370] sm:$0xff] }
 0x1d0   :  { %4358 = vmatprep.subr.bf16.mxu1 %v5336_v6  ;;  %v5384_v6 = vcombine.high %v815_v27, %v819_v13  ;;  %v855_v20 = vld [vmem:[%s8343_s3 + $0x358] sm:$0xff] }
 0x1d1   :  { %v859_v49 = vld [vmem:[%s8343_s3 + $0x378] sm:$0xff] }
 0x1d2   :  { %4195 = vmatpush1.bf16.msra.mxu0 %v5333_v37  ;;  %v5381_v37 = vcombine.low %v814_v17, %v818_v18  ;;  %v862_v17 = vld [vmem:[%s8343_s3 + $0x390] sm:$0xff] }
 0x1d3   :  { %4359 = vmatpush1.bf16.msra.mxu1 %v5335_v38  ;;  %4196 = vmatprep.subr.bf16.mxu0 %v5342_v39  ;;  %v5383_v38 = vcombine.low %v815_v27, %v819_v13  ;;  %v5390_v39 = vcombine.high %v822_v33, %v826_v35  ;;  %v866_v18 = vld [vmem:[%s8343_s3 + $0x3b0] sm:$0xff]  ;;  %v863_v27 = vld [vmem:[%s8343_s3 + $0x398] sm:$0xff] }
 0x1d4   :  { %4360 = vmatprep.subr.bf16.mxu1 %v5344_v41  ;;  %v5392_v41 = vcombine.high %v823_v36, %v827_v2  ;;  %v867_v13 = vld [vmem:[%s8343_s3 + $0x3b8] sm:$0xff] }
 0x1d6   :  { %4197 = vmatpush1.bf16.msra.mxu0 %v5341_v53  ;;  %v5389_v53 = vcombine.low %v822_v33, %v826_v35  ;;  %v870_v33 = vld [vmem:[%s8343_s3 + $0x3d0] sm:$0xff] }
 0x1d7   :  { %4361 = vmatpush1.bf16.msra.mxu1 %v5343_v54  ;;  %4198 = vmatprep.subr.bf16.mxu0 %v5350_v55  ;;  %v5391_v54 = vcombine.low %v823_v36, %v827_v2  ;;  %v5398_v55 = vcombine.high %v830_v29, %v834_v43  ;;  %v874_v35 = vld [vmem:[%s8343_s3 + $0x3f0] sm:$0xff]  ;;  %v871_v36 = vld [vmem:[%s8343_s3 + $0x3d8] sm:$0xff] }
 0x1d8   :  { %4362 = vmatprep.subr.bf16.mxu1 %v5352_v56  ;;  %v5400_v56 = vcombine.high %v831_v46, %v835_v51  ;;  %v875_v2 = vld [vmem:[%s8343_s3 + $0x3f8] sm:$0xff] }
 0x1da   :  { %4199 = vmatpush1.bf16.msra.mxu0 %v5349_v0  ;;  %v5397_v0 = vcombine.low %v830_v29, %v834_v43  ;;  %v878_v29 = vld [vmem:[%s8343_s3 + $0x410] sm:$0xff] }
 0x1db   :  { %4363 = vmatpush1.bf16.msra.mxu1 %v5351_v1  ;;  %4200 = vmatprep.subr.bf16.mxu0 %v5358_v3  ;;  %v5399_v1 = vcombine.low %v831_v46, %v835_v51  ;;  %v5406_v3 = vcombine.high %v838_v57, %v842_v60  ;;  %v882_v43 = vld [vmem:[%s8343_s3 + $0x430] sm:$0xff]  ;;  %v879_v46 = vld [vmem:[%s8343_s3 + $0x418] sm:$0xff] }
 0x1dc   :  { %4364 = vmatprep.subr.bf16.mxu1 %v5360_v4  ;;  %v5408_v4 = vcombine.high %v839_v61, %v843_v62  ;;  %v883_v51 = vld [vmem:[%s8343_s3 + $0x438] sm:$0xff] }
 0x1de   :  { %4201 = vmatpush1.bf16.msra.mxu0 %v5357_v9  ;;  %v5405_v9 = vcombine.low %v838_v57, %v842_v60  ;;  %v886_v57 = vld [vmem:[%s8343_s3 + $0x450] sm:$0xff] }
 0x1df   :  { %4365 = vmatpush1.bf16.msra.mxu1 %v5359_v11  ;;  %4202 = vmatprep.subr.bf16.mxu0 %v5366_v12  ;;  %v5407_v11 = vcombine.low %v839_v61, %v843_v62  ;;  %v5414_v12 = vcombine.high %v846_v5, %v850_v7  ;;  %v890_v60 = vld [vmem:[%s8343_s3 + $0x470] sm:$0xff]  ;;  %v5445_v61 = vcombine.low %v878_v29, %v882_v43  ;;  %v887_v62 = vld [vmem:[%s8343_s3 + $0x458] sm:$0xff] }
 0x1e0   :  { %4366 = vmatprep.subr.bf16.mxu1 %v5368_v14  ;;  %v5416_v14 = vcombine.high %v847_v44, %v851_v8 }
 0x1e2   :  { %4203 = vmatpush1.bf16.msra.mxu0 %v5365_v28  ;;  %v5413_v28 = vcombine.low %v846_v5, %v850_v7  ;;  %v898_v5 = vld [vmem:[%s8343_s3 + $0x4b0] sm:$0xff] }
 0x1e3   :  { %4367 = vmatpush1.bf16.msra.mxu1 %v5367_v25  ;;  %4204 = vmatprep.subr.bf16.mxu0 %v5374_v26  ;;  %v5415_v25 = vcombine.low %v847_v44, %v851_v8  ;;  %v5422_v26 = vcombine.high %v854_v15, %v858_v19  ;;  %v895_v44 = vld [vmem:[%s8343_s3 + $0x498] sm:$0xff] }
 0x1e4   :  { %4368 = vmatprep.subr.bf16.mxu1 %v5376_v16  ;;  %v5424_v16 = vcombine.high %v855_v20, %v859_v49  ;;  %v899_v8 = vld [vmem:[%s8343_s3 + $0x4b8] sm:$0xff] }
 0x1e6   :  { %4205 = vmatpush1.bf16.msra.mxu0 %v5373_v52  ;;  %v5421_v52 = vcombine.low %v854_v15, %v858_v19  ;;  %v902_v15 = vld [vmem:[%s8343_s3 + $0x4d0] sm:$0xff] }
 0x1e7   :  { %4369 = vmatpush1.bf16.msra.mxu1 %v5375_v30  ;;  %4206 = vmatprep.subr.bf16.mxu0 %v5382_v31  ;;  %v5423_v30 = vcombine.low %v855_v20, %v859_v49  ;;  %v5430_v31 = vcombine.high %v862_v17, %v866_v18  ;;  %v906_v19 = vld [vmem:[%s8343_s3 + $0x4f0] sm:$0xff]  ;;  %v907_v20 = vld [vmem:[%s8343_s3 + $0x4f8] sm:$0xff]  ;;  %v5463_v49 = vcombine.low %v895_v44, %v899_v8 }
 0x1e8   :  { %4370 = vmatprep.subr.bf16.mxu1 %v5384_v6  ;;  %v5432_v6 = vcombine.high %v863_v27, %v867_v13 }
 0x1ea   :  { %4207 = vmatpush1.bf16.msra.mxu0 %v5381_v37  ;;  %v5429_v37 = vcombine.low %v862_v17, %v866_v18  ;;  %v911_v17 = vld [vmem:[%s8343_s3 + $0x518] sm:$0xff] }
 0x1eb   :  { %4371 = vmatpush1.bf16.msra.mxu1 %v5383_v38  ;;  %4208 = vmatprep.subr.bf16.mxu0 %v5390_v39  ;;  %v5431_v38 = vcombine.low %v863_v27, %v867_v13  ;;  %v5438_v39 = vcombine.high %v870_v33, %v874_v35  ;;  %v915_v18 = vld [vmem:[%s8343_s3 + $0x538] sm:$0xff]  ;;  %v5469_v27 = vcombine.low %v902_v15, %v906_v19 }
 0x1ec   :  { %4372 = vmatprep.subr.bf16.mxu1 %v5392_v41  ;;  %v5440_v41 = vcombine.high %v871_v36, %v875_v2 }
 0x1ee   :  { %4209 = vmatpush1.bf16.msra.mxu0 %v5389_v53  ;;  %v5437_v53 = vcombine.low %v870_v33, %v874_v35  ;;  %v919_v33 = vld [vmem:[%s8343_s3 + $0x558] sm:$0xff] }
 0x1ef   :  { %4373 = vmatpush1.bf16.msra.mxu1 %v5391_v54  ;;  %4210 = vmatprep.subr.bf16.mxu0 %v5398_v55  ;;  %v5439_v54 = vcombine.low %v871_v36, %v875_v2  ;;  %v5446_v55 = vcombine.high %v878_v29, %v882_v43  ;;  %v923_v35 = vld [vmem:[%s8343_s3 + $0x578] sm:$0xff]  ;;  %v5479_v2 = vcombine.low %v911_v17, %v915_v18 }
 0x1f0   :  { %4374 = vmatprep.subr.bf16.mxu1 %v5400_v56  ;;  %v5448_v56 = vcombine.high %v879_v46, %v883_v51  ;;  %v927_v29 = vld [vmem:[%s8343_s3 + $0x598] sm:$0xff] }
 0x1f1   :  { %v931_v43 = vld [vmem:[%s8343_s3 + $0x5b8] sm:$0xff] }
 0x1f2   :  { %4211 = vmatpush1.bf16.msra.mxu0 %v5397_v0  ;;  %v891_v0 = vld [vmem:[%s8343_s3 + $0x478] sm:$0xff] }
 0x1f3   :  { %4375 = vmatpush1.bf16.msra.mxu1 %v5399_v1  ;;  %4212 = vmatprep.subr.bf16.mxu0 %v5406_v3  ;;  %v5447_v1 = vcombine.low %v879_v46, %v883_v51  ;;  %v5454_v3 = vcombine.high %v886_v57, %v890_v60  ;;  %v5456_v7 = vcombine.high %v887_v62, %v891_v0 }
 0x1f4   :  { %4376 = vmatprep.subr.bf16.mxu1 %v5408_v4  ;;  %v894_v4 = vld [vmem:[%s8343_s3 + $0x490] sm:$0xff]  ;;  %v5487_v51 = vcombine.low %v919_v33, %v923_v35 }
 0x1f6   :  { %4213 = vmatpush1.bf16.msra.mxu0 %v5405_v9  ;;  %v5453_v9 = vcombine.low %v886_v57, %v890_v60  ;;  %v935_v57 = vld [vmem:[%s8343_s3 + $0x5d8] sm:$0xff] }
 0x1f7   :  { %4377 = vmatpush1.bf16.msra.mxu1 %v5407_v11  ;;  %4214 = vmatprep.subr.bf16.mxu0 %v5414_v12  ;;  %v5455_v11 = vcombine.low %v887_v62, %v891_v0  ;;  %v5462_v12 = vcombine.high %v894_v4, %v898_v5  ;;  %v939_v60 = vld [vmem:[%s8343_s3 + $0x5f8] sm:$0xff]  ;;  %v5495_v62 = vcombine.low %v927_v29, %v931_v43 }
 0x1f8   :  { %4378 = vmatprep.subr.bf16.mxu1 %v5416_v14  ;;  %v5464_v14 = vcombine.high %v895_v44, %v899_v8  ;;  %v5503_v8 = vcombine.low %v935_v57, %v939_v60 }
 0x1fa   :  { %4215 = vmatpush1.bf16.msra.mxu0 %v5413_v28  ;;  %v5470_v28 = vcombine.high %v902_v15, %v906_v19  ;;  %v951_v15 = vld [vmem:[%s8343_s3 + $0x658] sm:$0xff] }
 0x1fb   :  { %4379 = vmatpush1.bf16.msra.mxu1 %v5415_v25  ;;  %4216 = vmatprep.subr.bf16.mxu0 %v5422_v26  ;;  %v910_v26 = vld [vmem:[%s8343_s3 + $0x510] sm:$0xff]  ;;  %v955_v19 = vld [vmem:[%s8343_s3 + $0x678] sm:$0xff] }
 0x1fc   :  { %4380 = vmatprep.subr.bf16.mxu1 %v5424_v16  ;;  %v914_v16 = vld [vmem:[%s8343_s3 + $0x530] sm:$0xff] }
 0x1fd   :  { %v5477_v36 = vcombine.low %v910_v26, %v914_v16 }
 0x1fe   :  { %4217 = vmatpush1.bf16.msra.mxu0 %v5421_v52  ;;  %v5478_v52 = vcombine.high %v910_v26, %v914_v16  ;;  %v959_v26 = vld [vmem:[%s8343_s3 + $0x698] sm:$0xff] }
 0x1ff   :  { %4381 = vmatpush1.bf16.msra.mxu1 %v5423_v30  ;;  %4218 = vmatprep.subr.bf16.mxu0 %v5430_v31  ;;  %v5480_v30 = vcombine.high %v911_v17, %v915_v18  ;;  %v918_v31 = vld [vmem:[%s8343_s3 + $0x550] sm:$0xff]  ;;  %v963_v16 = vld [vmem:[%s8343_s3 + $0x6b8] sm:$0xff]  ;;  %v5519_v18 = vcombine.low %v951_v15, %v955_v19 }
 0x200   :  { %4382 = vmatprep.subr.bf16.mxu1 %v5432_v6  ;;  %v922_v6 = vld [vmem:[%s8343_s3 + $0x570] sm:$0xff] }
 0x201   :  { %v5485_v46 = vcombine.low %v918_v31, %v922_v6 }
 0x202   :  { %4219 = vmatpush1.bf16.msra.mxu0 %v5429_v37  ;;  %v5486_v37 = vcombine.high %v918_v31, %v922_v6  ;;  %v967_v31 = vld [vmem:[%s8343_s3 + $0x6d8] sm:$0xff] }
 0x203   :  { %4383 = vmatpush1.bf16.msra.mxu1 %v5431_v38  ;;  %4220 = vmatprep.subr.bf16.mxu0 %v5438_v39  ;;  %v5488_v38 = vcombine.high %v919_v33, %v923_v35  ;;  %v926_v39 = vld [vmem:[%s8343_s3 + $0x590] sm:$0xff]  ;;  %v971_v6 = vld [vmem:[%s8343_s3 + $0x6f8] sm:$0xff]  ;;  %v5527_v35 = vcombine.low %v959_v26, %v963_v16 }
 0x204   :  { %4384 = vmatprep.subr.bf16.mxu1 %v5440_v41  ;;  %v930_v41 = vld [vmem:[%s8343_s3 + $0x5b0] sm:$0xff] }
 0x206   :  { %4221 = vmatpush1.bf16.msra.mxu0 %v5437_v53  ;;  %v5494_v53 = vcombine.high %v926_v39, %v930_v41 }
 0x207   :  { %4385 = vmatpush1.bf16.msra.mxu1 %v5439_v54  ;;  %4231 = vmatprep.subr.bf16.mxu0 %v5446_v55  ;;  %v5496_v54 = vcombine.high %v927_v29, %v931_v43  ;;  %v934_v55 = vld [vmem:[%s8343_s3 + $0x5d0] sm:$0xff]  ;;  %v5535_v43 = vcombine.low %v967_v31, %v971_v6 }
 0x208   :  { %4395 = vmatprep.subr.bf16.mxu1 %v5448_v56  ;;  %v938_v56 = vld [vmem:[%s8343_s3 + $0x5f0] sm:$0xff] }
 0x209   :  { %4223 = vmatmul.mubr.bf16.vlgmr.msra.gmra.mrb[12].mxu0 %v6683_v22  ;;  %v5502_v0 = vcombine.high %v934_v55, %v938_v56  ;;  %v5501_v44 = vcombine.low %v934_v55, %v938_v56  ;;  %v983_v55 = vld [vmem:[%s8343_s3 + $0x758] sm:$0xff] }
 0x20a   :  { %4387 = vmatmul.mubr.bf16.vlgmr.msra.gmra.mrb[12].mxu1 %v6683_v22  ;;  %4232 = vmatpush1.bf16.msra.mxu0 %v5445_v61  ;;  %v903_v22 = vld [vmem:[%s8343_s3 + $0x4d8] sm:$0xff]  ;;  %v5493_v61 = vcombine.low %v926_v39, %v930_v41 }
 0x20b   :  { %4263 = vmatprep.mubr.bf16.mxu0 %v6721_v21  ;;  %4396 = vmatpush1.bf16.msra.mxu1 %v5447_v1  ;;  %v5472_v25 = vcombine.high %v903_v22, %v907_v20  ;;  %v5471_v13 = vcombine.low %v903_v22, %v907_v20  ;;  %v5504_v1 = vcombine.high %v935_v57, %v939_v60  ;;  %v975_v39 = vld [vmem:[%s8343_s3 + $0x718] sm:$0xff] }
 0x20c   :  { %4427 = vmatprep.mubr.bf16.mxu1 %v6721_v21  ;;  %4233 = vmatprep.subr.bf16.mxu0 %v5454_v3  ;;  %v5461_v21 = vcombine.low %v894_v4, %v898_v5  ;;  %v942_v3 = vld [vmem:[%s8343_s3 + $0x610] sm:$0xff]  ;;  %v943_v5 = vld [vmem:[%s8343_s3 + $0x618] sm:$0xff] }
 0x20d   :  { %4397 = vmatprep.subr.bf16.mxu1 %v5456_v7  ;;  %v946_v4 = vld [vmem:[%s8343_s3 + $0x630] sm:$0xff]  ;;  %v947_v7 = vld [vmem:[%s8343_s3 + $0x638] sm:$0xff] }
 0x20e   :  { %4234 = vmatpush1.bf16.msra.mxu0 %v5453_v9  ;;  %v5510_v9 = vcombine.high %v942_v3, %v946_v4  ;;  %v5509_v22 = vcombine.low %v942_v3, %v946_v4  ;;  %v5511_v20 = vcombine.low %v943_v5, %v947_v7  ;;  %v979_v41 = vld [vmem:[%s8343_s3 + $0x738] sm:$0xff] }
 0x20f   :  { %4398 = vmatpush1.bf16.msra.mxu1 %v5455_v11  ;;  %4235 = vmatprep.subr.bf16.mxu0 %v5462_v12  ;;  %v5512_v11 = vcombine.high %v943_v5, %v947_v7  ;;  %v950_v12 = vld [vmem:[%s8343_s3 + $0x650] sm:$0xff]  ;;  %v987_v56 = vld [vmem:[%s8343_s3 + $0x778] sm:$0xff]  ;;  %v5543_v60 = vcombine.low %v975_v39, %v979_v41 }
 0x210   :  { %4399 = vmatprep.subr.bf16.mxu1 %v5464_v14  ;;  %v954_v14 = vld [vmem:[%s8343_s3 + $0x670] sm:$0xff]  ;;  %v991_v3 = vld [vmem:[%s8343_s3 + $0x798] sm:$0xff]  ;;  %v5551_v7 = vcombine.low %v983_v55, %v987_v56 }
 0x211   :  { %v5517_v17 = vcombine.low %v950_v12, %v954_v14  ;;  %v995_v4 = vld [vmem:[%s8343_s3 + $0x7b8] sm:$0xff] }
 0x212   :  { %4236 = vmatpush1.bf16.msra.mxu0 %v5461_v21  ;;  %v5518_v21 = vcombine.high %v950_v12, %v954_v14  ;;  %v999_v12 = vld [vmem:[%s8343_s3 + $0x7d8] sm:$0xff] }
 0x213   :  { %4400 = vmatpush1.bf16.msra.mxu1 %v5463_v49  ;;  %4237 = vmatprep.subr.bf16.mxu0 %v5470_v28  ;;  %v5520_v49 = vcombine.high %v951_v15, %v955_v19  ;;  %v958_v28 = vld [vmem:[%s8343_s3 + $0x690] sm:$0xff]  ;;  %v1003_v14 = vld [vmem:[%s8343_s3 + $0x7f8] sm:$0xff]  ;;  %v5559_v19 = vcombine.low %v991_v3, %v995_v4 }
 0x214   :  { %4401 = vmatprep.subr.bf16.mxu1 %v5472_v25  ;;  %v962_v25 = vld [vmem:[%s8343_s3 + $0x6b0] sm:$0xff] }
 0x215   :  { %v5525_v33 = vcombine.low %v958_v28, %v962_v25 }
 0x216   :  { %4238 = vmatpush1.bf16.msra.mxu0 %v5469_v27  ;;  %v5526_v27 = vcombine.high %v958_v28, %v962_v25  ;;  %v1007_v28 = vld [vmem:[%s8343_s3 + $0x818] sm:$0xff] }
 0x217   :  { %4402 = vmatpush1.bf16.msra.mxu1 %v5471_v13  ;;  %4239 = vmatprep.subr.bf16.mxu0 %v5478_v52  ;;  %v5528_v13 = vcombine.high %v959_v26, %v963_v16  ;;  %v966_v52 = vld [vmem:[%s8343_s3 + $0x6d0] sm:$0xff]  ;;  %v1011_v25 = vld [vmem:[%s8343_s3 + $0x838] sm:$0xff]  ;;  %v5567_v16 = vcombine.low %v999_v12, %v1003_v14 }
 0x218   :  { %4403 = vmatprep.subr.bf16.mxu1 %v5480_v30  ;;  %v970_v30 = vld [vmem:[%s8343_s3 + $0x6f0] sm:$0xff] }
 0x219   :  { %v5533_v29 = vcombine.low %v966_v52, %v970_v30 }
 0x21a   :  { %4240 = vmatpush1.bf16.msra.mxu0 %v5477_v36  ;;  %v5534_v36 = vcombine.high %v966_v52, %v970_v30  ;;  %v1015_v30 = vld [vmem:[%s8343_s3 + $0x858] sm:$0xff] }
 0x21b   :  { %4404 = vmatpush1.bf16.msra.mxu1 %v5479_v2  ;;  %4241 = vmatprep.subr.bf16.mxu0 %v5486_v37  ;;  %v5536_v2 = vcombine.high %v967_v31, %v971_v6  ;;  %v974_v37 = vld [vmem:[%s8343_s3 + $0x710] sm:$0xff]  ;;  %v1019_v31 = vld [vmem:[%s8343_s3 + $0x878] sm:$0xff]  ;;  %v5575_v6 = vcombine.low %v1007_v28, %v1011_v25 }
 0x21c   :  { %4405 = vmatprep.subr.bf16.mxu1 %v5488_v38  ;;  %v978_v38 = vld [vmem:[%s8343_s3 + $0x730] sm:$0xff] }
 0x21d   :  { %v5541_v57 = vcombine.low %v974_v37, %v978_v38 }
 0x21e   :  { %4242 = vmatpush1.bf16.msra.mxu0 %v5485_v46  ;;  %v5542_v46 = vcombine.high %v974_v37, %v978_v38  ;;  %v1023_v37 = vld [vmem:[%s8343_s3 + $0x898] sm:$0xff] }
 0x21f   :  { %4406 = vmatpush1.bf16.msra.mxu1 %v5487_v51  ;;  %4243 = vmatprep.subr.bf16.mxu0 %v5494_v53  ;;  %v5544_v51 = vcombine.high %v975_v39, %v979_v41  ;;  %v982_v53 = vld [vmem:[%s8343_s3 + $0x750] sm:$0xff]  ;;  %v1027_v38 = vld [vmem:[%s8343_s3 + $0x8b8] sm:$0xff]  ;;  %v5583_v41 = vcombine.low %v1015_v30, %v1019_v31 }
 0x220   :  { %4407 = vmatprep.subr.bf16.mxu1 %v5496_v54  ;;  %v986_v54 = vld [vmem:[%s8343_s3 + $0x770] sm:$0xff] }
 0x221   :  { %v5549_v5 = vcombine.low %v982_v53, %v986_v54 }
 0x222   :  { %4244 = vmatpush1.bf16.msra.mxu0 %v5493_v61  ;;  %v5550_v61 = vcombine.high %v982_v53, %v986_v54  ;;  %v1035_v53 = vld [vmem:[%s8343_s3 + $0x8f8] sm:$0xff]  ;;  %v5591_v54 = vcombine.low %v1023_v37, %v1027_v38 }
 0x223   :  { %4408 = vmatpush1.bf16.msra.mxu1 %v5495_v62  ;;  %4245 = vmatprep.subr.bf16.mxu0 %v5502_v0  ;;  %v5552_v62 = vcombine.high %v983_v55, %v987_v56  ;;  %v990_v0 = vld [vmem:[%s8343_s3 + $0x790] sm:$0xff] }
 0x224   :  { %4409 = vmatprep.subr.bf16.mxu1 %v5504_v1  ;;  %v994_v1 = vld [vmem:[%s8343_s3 + $0x7b0] sm:$0xff] }
 0x225   :  { %v5557_v15 = vcombine.low %v990_v0, %v994_v1 }
 0x226   :  { %4246 = vmatpush1.bf16.msra.mxu0 %v5501_v44  ;;  %v5558_v44 = vcombine.high %v990_v0, %v994_v1 }
 0x227   :  { %4410 = vmatpush1.bf16.msra.mxu1 %v5503_v8  ;;  %4247 = vmatprep.subr.bf16.mxu0 %v5510_v9  ;;  %v5560_v8 = vcombine.high %v991_v3, %v995_v4  ;;  %v998_v9 = vld [vmem:[%s8343_s3 + $0x7d0] sm:$0xff] }
 0x228   :  { %4411 = vmatprep.subr.bf16.mxu1 %v5512_v11  ;;  %v1002_v11 = vld [vmem:[%s8343_s3 + $0x7f0] sm:$0xff] }
 0x229   :  { %v5565_v26 = vcombine.low %v998_v9, %v1002_v11 }
 0x22a   :  { %4248 = vmatpush1.bf16.msra.mxu0 %v5509_v22  ;;  %v5566_v22 = vcombine.high %v998_v9, %v1002_v11 }
 0x22b   :  { %4412 = vmatpush1.bf16.msra.mxu1 %v5511_v20  ;;  %4249 = vmatprep.subr.bf16.mxu0 %v5518_v21  ;;  %v5568_v20 = vcombine.high %v999_v12, %v1003_v14  ;;  %v1006_v21 = vld [vmem:[%s8343_s3 + $0x810] sm:$0xff] }
 0x22c   :  { %4413 = vmatprep.subr.bf16.mxu1 %v5520_v49  ;;  %v1010_v49 = vld [vmem:[%s8343_s3 + $0x830] sm:$0xff] }
 0x22d   :  { %v5573_v52 = vcombine.low %v1006_v21, %v1010_v49 }
 0x22e   :  { %4250 = vmatpush1.bf16.msra.mxu0 %v5517_v17  ;;  %v5574_v17 = vcombine.high %v1006_v21, %v1010_v49 }
 0x22f   :  { %4414 = vmatpush1.bf16.msra.mxu1 %v5519_v18  ;;  %4251 = vmatprep.subr.bf16.mxu0 %v5526_v27  ;;  %v5576_v18 = vcombine.high %v1007_v28, %v1011_v25  ;;  %v1014_v27 = vld [vmem:[%s8343_s3 + $0x850] sm:$0xff] }
 0x230   :  { %4415 = vmatprep.subr.bf16.mxu1 %v5528_v13  ;;  %v1018_v13 = vld [vmem:[%s8343_s3 + $0x870] sm:$0xff] }
 0x231   :  { %v5581_v39 = vcombine.low %v1014_v27, %v1018_v13 }
 0x232   :  { %4252 = vmatpush1.bf16.msra.mxu0 %v5525_v33  ;;  %v5582_v33 = vcombine.high %v1014_v27, %v1018_v13 }
 0x233   :  { %4416 = vmatpush1.bf16.msra.mxu1 %v5527_v35  ;;  %4253 = vmatprep.subr.bf16.mxu0 %v5534_v36  ;;  %v1022_v35 = vld [vmem:[%s8343_s3 + $0x890] sm:$0xff] }
 0x234   :  { %4417 = vmatprep.subr.bf16.mxu1 %v5536_v2  ;;  %v1026_v36 = vld [vmem:[%s8343_s3 + $0x8b0] sm:$0xff]  ;;  %v5584_v2 = vcombine.high %v1015_v30, %v1019_v31 }
 0x235   :  { %v1070_v31 = vld [vmem:[%s8343_s3 + $0xa10] sm:$0xff] }
 0x236   :  { %4254 = vmatpush1.bf16.msra.mxu0 %v5533_v29  ;;  %v5590_v29 = vcombine.high %v1022_v35, %v1026_v36 }
 0x237   :  { %4418 = vmatpush1.bf16.msra.mxu1 %v5535_v43  ;;  %4255 = vmatprep.subr.bf16.mxu0 %v5542_v46  ;;  %v5592_v43 = vcombine.high %v1023_v37, %v1027_v38  ;;  %v1030_v46 = vld [vmem:[%s8343_s3 + $0x8d0] sm:$0xff] }
 0x238   :  { %4419 = vmatprep.subr.bf16.mxu1 %v5544_v51  ;;  %v1034_v51 = vld [vmem:[%s8343_s3 + $0x8f0] sm:$0xff] }
 0x239   :  { %v5598_v55 = vcombine.high %v1030_v46, %v1034_v51  ;;  %v5597_v0 = vcombine.low %v1030_v46, %v1034_v51 }
 0x23a   :  { %4256 = vmatpush1.bf16.msra.mxu0 %v5541_v57  ;;  %v1038_v57 = vld [vmem:[%s8343_s3 + $0x910] sm:$0xff] }
 0x23b   :  { %4420 = vmatpush1.bf16.msra.mxu1 %v5543_v60  ;;  %4257 = vmatprep.subr.bf16.mxu0 %v5550_v61  ;;  %v1042_v60 = vld [vmem:[%s8343_s3 + $0x930] sm:$0xff]  ;;  %v1039_v61 = vld [vmem:[%s8343_s3 + $0x918] sm:$0xff] }
 0x23c   :  { %4421 = vmatprep.subr.bf16.mxu1 %v5552_v62  ;;  %v1043_v62 = vld [vmem:[%s8343_s3 + $0x938] sm:$0xff]  ;;  %v5606_v3 = vcombine.high %v1038_v57, %v1042_v60  ;;  %v5605_v9 = vcombine.low %v1038_v57, %v1042_v60 }
 0x23d   :  { %v5608_v4 = vcombine.high %v1039_v61, %v1043_v62  ;;  %v5607_v11 = vcombine.low %v1039_v61, %v1043_v62 }
 0x23e   :  { %4258 = vmatpush1.bf16.msra.mxu0 %v5549_v5  ;;  %v1046_v5 = vld [vmem:[%s8343_s3 + $0x950] sm:$0xff] }
 0x23f   :  { %4422 = vmatpush1.bf16.msra.mxu1 %v5551_v7  ;;  %4259 = vmatprep.subr.bf16.mxu0 %v5558_v44  ;;  %v1050_v7 = vld [vmem:[%s8343_s3 + $0x970] sm:$0xff]  ;;  %v1047_v44 = vld [vmem:[%s8343_s3 + $0x958] sm:$0xff] }
 0x240   :  { %4423 = vmatprep.subr.bf16.mxu1 %v5560_v8  ;;  %v1051_v8 = vld [vmem:[%s8343_s3 + $0x978] sm:$0xff]  ;;  %v5614_v12 = vcombine.high %v1046_v5, %v1050_v7  ;;  %v5613_v21 = vcombine.low %v1046_v5, %v1050_v7 }
 0x241   :  { %v5616_v14 = vcombine.high %v1047_v44, %v1051_v8  ;;  %v5615_v49 = vcombine.low %v1047_v44, %v1051_v8 }
 0x242   :  { %4260 = vmatpush1.bf16.msra.mxu0 %v5557_v15  ;;  %v1054_v15 = vld [vmem:[%s8343_s3 + $0x990] sm:$0xff] }
 0x243   :  { %4424 = vmatpush1.bf16.msra.mxu1 %v5559_v19  ;;  %4261 = vmatprep.subr.bf16.mxu0 %v5566_v22  ;;  %v1058_v19 = vld [vmem:[%s8343_s3 + $0x9b0] sm:$0xff]  ;;  %v1055_v22 = vld [vmem:[%s8343_s3 + $0x998] sm:$0xff] }
 0x244   :  { %4425 = vmatprep.subr.bf16.mxu1 %v5568_v20  ;;  %v1059_v20 = vld [vmem:[%s8343_s3 + $0x9b8] sm:$0xff]  ;;  %v5622_v28 = vcombine.high %v1054_v15, %v1058_v19  ;;  %v5621_v27 = vcombine.low %v1054_v15, %v1058_v19 }
 0x245   :  { %v5624_v25 = vcombine.high %v1055_v22, %v1059_v20  ;;  %v5623_v13 = vcombine.low %v1055_v22, %v1059_v20 }
 0x246   :  { %4262 = vmatpush1.bf16.msra.mxu0 %v5565_v26  ;;  %v1062_v26 = vld [vmem:[%s8343_s3 + $0x9d0] sm:$0xff] }
 0x247   :  { %4426 = vmatpush1.bf16.msra.mxu1 %v5567_v16  ;;  %4272 = vmatprep.subr.bf16.mxu0 %v5574_v17  ;;  %v1066_v16 = vld [vmem:[%s8343_s3 + $0x9f0] sm:$0xff]  ;;  %v1063_v17 = vld [vmem:[%s8343_s3 + $0x9d8] sm:$0xff] }
 0x248   :  { %4436 = vmatprep.subr.bf16.mxu1 %v5576_v18  ;;  %v1067_v18 = vld [vmem:[%s8343_s3 + $0x9f8] sm:$0xff] }
 0x249   :  { %4264 = vmatmul.mubr.bf16.vlgmr.msra.gmra.mrb[12].mxu0 %v6911_v45  ;;  %v5632_v30 = vcombine.high %v1063_v17, %v1067_v18 }
 0x24a   :  { %4428 = vmatmul.mubr.bf16.vlgmr.msra.gmra.mrb[12].mxu1 %v6911_v45  ;;  %4273 = vmatpush1.bf16.msra.mxu0 %v5573_v52  ;;  %v1031_v45 = vld [vmem:[%s8343_s3 + $0x8d8] sm:$0xff]  ;;  %v5630_v52 = vcombine.high %v1062_v26, %v1066_v16 }
 0x24b   :  { %4304 = vmatprep.mubr.bf16.mxu0 %v6925_v59  ;;  %4437 = vmatpush1.bf16.msra.mxu1 %v5575_v6  ;;  %v5600_v56 = vcombine.high %v1031_v45, %v1035_v53  ;;  %v5599_v1 = vcombine.low %v1031_v45, %v1035_v53  ;;  %v1074_v6 = vld [vmem:[%s8343_s3 + $0xa30] sm:$0xff] }
 0x24c   :  { %4468 = vmatprep.mubr.bf16.mxu1 %v6925_v59  ;;  %4274 = vmatprep.subr.bf16.mxu0 %v5582_v33  ;;  %v5589_v59 = vcombine.low %v1022_v35, %v1026_v36  ;;  %v1071_v33 = vld [vmem:[%s8343_s3 + $0xa18] sm:$0xff]  ;;  %v5629_v36 = vcombine.low %v1062_v26, %v1066_v16  ;;  %v5638_v37 = vcombine.high %v1070_v31, %v1074_v6 }
 0x24d   :  { %4438 = vmatprep.subr.bf16.mxu1 %v5584_v2  ;;  %v1075_v35 = vld [vmem:[%s8343_s3 + $0xa38] sm:$0xff]  ;;  %v5631_v2 = vcombine.low %v1063_v17, %v1067_v18  ;;  %v5637_v46 = vcombine.low %v1070_v31, %v1074_v6 }
 0x24e   :  { %4275 = vmatpush1.bf16.msra.mxu0 %v5581_v39  ;;  %v5640_v38 = vcombine.high %v1071_v33, %v1075_v35  ;;  %v1078_v39 = vld [vmem:[%s8343_s3 + $0xa50] sm:$0xff]  ;;  %v5639_v51 = vcombine.low %v1071_v33, %v1075_v35 }
 0x24f   :  { %4439 = vmatpush1.bf16.msra.mxu1 %v5583_v41  ;;  %4276 = vmatprep.subr.bf16.mxu0 %v5590_v29  ;;  %v1082_v41 = vld [vmem:[%s8343_s3 + $0xa70] sm:$0xff]  ;;  %v1079_v29 = vld [vmem:[%s8343_s3 + $0xa58] sm:$0xff] }
 0x250   :  { %4440 = vmatprep.subr.bf16.mxu1 %v5592_v43  ;;  %v1083_v43 = vld [vmem:[%s8343_s3 + $0xa78] sm:$0xff]  ;;  %v5646_v45 = vcombine.high %v1078_v39, %v1082_v41  ;;  %v5645_v57 = vcombine.low %v1078_v39, %v1082_v41 }
 0x251   :  { %v5648_v53 = vcombine.high %v1079_v29, %v1083_v43  ;;  %v5647_v60 = vcombine.low %v1079_v29, %v1083_v43 }
 0x252   :  { %4277 = vmatpush1.bf16.msra.mxu0 %v5589_v59  ;;  %v1086_v59 = vld [vmem:[%s8343_s3 + $0xa90] sm:$0xff] }
 0x253   :  { %4441 = vmatpush1.bf16.msra.mxu1 %v5591_v54  ;;  %4278 = vmatprep.subr.bf16.mxu0 %v5598_v55  ;;  %v1090_v54 = vld [vmem:[%s8343_s3 + $0xab0] sm:$0xff]  ;;  %v1087_v55 = vld [vmem:[%s8343_s3 + $0xa98] sm:$0xff] }
 0x254   :  { %4442 = vmatprep.subr.bf16.mxu1 %v5600_v56  ;;  %v1091_v56 = vld [vmem:[%s8343_s3 + $0xab8] sm:$0xff]  ;;  %v5654_v61 = vcombine.high %v1086_v59, %v1090_v54  ;;  %v5653_v5 = vcombine.low %v1086_v59, %v1090_v54 }
 0x255   :  { %v5656_v62 = vcombine.high %v1087_v55, %v1091_v56  ;;  %v5655_v7 = vcombine.low %v1087_v55, %v1091_v56 }
 0x256   :  { %4279 = vmatpush1.bf16.msra.mxu0 %v5597_v0  ;;  %v1094_v0 = vld [vmem:[%s8343_s3 + $0xad0] sm:$0xff] }
 0x257   :  { %4443 = vmatpush1.bf16.msra.mxu1 %v5599_v1  ;;  %4280 = vmatprep.subr.bf16.mxu0 %v5606_v3  ;;  %v1098_v1 = vld [vmem:[%s8343_s3 + $0xaf0] sm:$0xff]  ;;  %v1095_v3 = vld [vmem:[%s8343_s3 + $0xad8] sm:$0xff] }
 0x258   :  { %4444 = vmatprep.subr.bf16.mxu1 %v5608_v4  ;;  %v1099_v4 = vld [vmem:[%s8343_s3 + $0xaf8] sm:$0xff]  ;;  %v5662_v44 = vcombine.high %v1094_v0, %v1098_v1  ;;  %v5661_v15 = vcombine.low %v1094_v0, %v1098_v1 }
 0x259   :  { %v5664_v8 = vcombine.high %v1095_v3, %v1099_v4  ;;  %v5663_v19 = vcombine.low %v1095_v3, %v1099_v4  ;;  %v1147_v0 = vld [vmem:[%s8343_s3 + $0xc78] sm:$0xff]  ;;  %v1150_v4 = vld [vmem:[%s8343_s3 + $0xc90] sm:$0xff] }
 0x25a   :  { %4281 = vmatpush1.bf16.msra.mxu0 %v5605_v9  ;;  %v1102_v9 = vld [vmem:[%s8343_s3 + $0xb10] sm:$0xff] }
 0x25b   :  { %4445 = vmatpush1.bf16.msra.mxu1 %v5607_v11  ;;  %4282 = vmatprep.subr.bf16.mxu0 %v5614_v12  ;;  %v1106_v11 = vld [vmem:[%s8343_s3 + $0xb30] sm:$0xff]  ;;  %v1103_v12 = vld [vmem:[%s8343_s3 + $0xb18] sm:$0xff] }
 0x25c   :  { %4446 = vmatprep.subr.bf16.mxu1 %v5616_v14  ;;  %v1107_v14 = vld [vmem:[%s8343_s3 + $0xb38] sm:$0xff]  ;;  %v5670_v22 = vcombine.high %v1102_v9, %v1106_v11  ;;  %v5669_v26 = vcombine.low %v1102_v9, %v1106_v11 }
 0x25d   :  { %v5672_v20 = vcombine.high %v1103_v12, %v1107_v14  ;;  %v5671_v16 = vcombine.low %v1103_v12, %v1107_v14 }
 0x25e   :  { %4283 = vmatpush1.bf16.msra.mxu0 %v5613_v21  ;;  %v1110_v21 = vld [vmem:[%s8343_s3 + $0xb50] sm:$0xff] }
 0x25f   :  { %4447 = vmatpush1.bf16.msra.mxu1 %v5615_v49  ;;  %4284 = vmatprep.subr.bf16.mxu0 %v5622_v28  ;;  %v1114_v49 = vld [vmem:[%s8343_s3 + $0xb70] sm:$0xff]  ;;  %v1111_v28 = vld [vmem:[%s8343_s3 + $0xb58] sm:$0xff] }
 0x260   :  { %4448 = vmatprep.subr.bf16.mxu1 %v5624_v25  ;;  %v1115_v25 = vld [vmem:[%s8343_s3 + $0xb78] sm:$0xff]  ;;  %v5678_v17 = vcombine.high %v1110_v21, %v1114_v49  ;;  %v5677_v31 = vcombine.low %v1110_v21, %v1114_v49 }
 0x261   :  { %v5680_v18 = vcombine.high %v1111_v28, %v1115_v25  ;;  %v5679_v6 = vcombine.low %v1111_v28, %v1115_v25  ;;  %v1166_v28 = vld [vmem:[%s8343_s3 + $0xd10] sm:$0xff] }
 0x262   :  { %4285 = vmatpush1.bf16.msra.mxu0 %v5621_v27  ;;  %v1118_v27 = vld [vmem:[%s8343_s3 + $0xb90] sm:$0xff] }
 0x263   :  { %4449 = vmatpush1.bf16.msra.mxu1 %v5623_v13  ;;  %4286 = vmatprep.subr.bf16.mxu0 %v5630_v52  ;;  %v1122_v13 = vld [vmem:[%s8343_s3 + $0xbb0] sm:$0xff]  ;;  %v1119_v52 = vld [vmem:[%s8343_s3 + $0xb98] sm:$0xff] }
 0x264   :  { %4450 = vmatprep.subr.bf16.mxu1 %v5632_v30  ;;  %v1123_v30 = vld [vmem:[%s8343_s3 + $0xbb8] sm:$0xff]  ;;  %v5686_v33 = vcombine.high %v1118_v27, %v1122_v13  ;;  %v5685_v39 = vcombine.low %v1118_v27, %v1122_v13  ;;  %v1170_v25 = vld [vmem:[%s8343_s3 + $0xd30] sm:$0xff] }
 0x265   :  { %v5688_v35 = vcombine.high %v1119_v52, %v1123_v30  ;;  %v5687_v41 = vcombine.low %v1119_v52, %v1123_v30  ;;  %v5734_v27 = vcombine.high %v1166_v28, %v1170_v25  ;;  %v1174_v52 = vld [vmem:[%s8343_s3 + $0xd50] sm:$0xff] }
 0x266   :  { %4287 = vmatpush1.bf16.msra.mxu0 %v5629_v36  ;;  %v1126_v36 = vld [vmem:[%s8343_s3 + $0xbd0] sm:$0xff] }
 0x267   :  { %4451 = vmatpush1.bf16.msra.mxu1 %v5631_v2  ;;  %4288 = vmatprep.subr.bf16.mxu0 %v5638_v37  ;;  %v1130_v2 = vld [vmem:[%s8343_s3 + $0xbf0] sm:$0xff]  ;;  %v1127_v37 = vld [vmem:[%s8343_s3 + $0xbd8] sm:$0xff] }
 0x268   :  { %4452 = vmatprep.subr.bf16.mxu1 %v5640_v38  ;;  %v1131_v38 = vld [vmem:[%s8343_s3 + $0xbf8] sm:$0xff]  ;;  %v5694_v29 = vcombine.high %v1126_v36, %v1130_v2  ;;  %v5693_v59 = vcombine.low %v1126_v36, %v1130_v2  ;;  %v1178_v30 = vld [vmem:[%s8343_s3 + $0xd70] sm:$0xff] }
 0x269   :  { %v5696_v43 = vcombine.high %v1127_v37, %v1131_v38  ;;  %v5695_v54 = vcombine.low %v1127_v37, %v1131_v38  ;;  %v5742_v36 = vcombine.high %v1174_v52, %v1178_v30  ;;  %v1182_v37 = vld [vmem:[%s8343_s3 + $0xd90] sm:$0xff] }
 0x26a   :  { %4289 = vmatpush1.bf16.msra.mxu0 %v5637_v46  ;;  %v1134_v46 = vld [vmem:[%s8343_s3 + $0xc10] sm:$0xff] }
 0x26b   :  { %4453 = vmatpush1.bf16.msra.mxu1 %v5639_v51  ;;  %4290 = vmatprep.subr.bf16.mxu0 %v5646_v45  ;;  %v1138_v51 = vld [vmem:[%s8343_s3 + $0xc30] sm:$0xff]  ;;  %v1135_v45 = vld [vmem:[%s8343_s3 + $0xc18] sm:$0xff] }
 0x26c   :  { %4454 = vmatprep.subr.bf16.mxu1 %v5648_v53  ;;  %v1139_v53 = vld [vmem:[%s8343_s3 + $0xc38] sm:$0xff]  ;;  %v5702_v55 = vcombine.high %v1134_v46, %v1138_v51  ;;  %v1186_v38 = vld [vmem:[%s8343_s3 + $0xdb0] sm:$0xff] }
 0x26d   :  { %v5704_v56 = vcombine.high %v1135_v45, %v1139_v53  ;;  %v5703_v1 = vcombine.low %v1135_v45, %v1139_v53 }
 0x26e   :  { %4291 = vmatpush1.bf16.msra.mxu0 %v5645_v57  ;;  %v1142_v57 = vld [vmem:[%s8343_s3 + $0xc50] sm:$0xff] }
 0x26f   :  { %4455 = vmatpush1.bf16.msra.mxu1 %v5647_v60  ;;  %4292 = vmatprep.subr.bf16.mxu0 %v5654_v61  ;;  %v1146_v60 = vld [vmem:[%s8343_s3 + $0xc70] sm:$0xff]  ;;  %v5701_v61 = vcombine.low %v1134_v46, %v1138_v51  ;;  %v5750_v46 = vcombine.high %v1182_v37, %v1186_v38 }
 0x270   :  { %4456 = vmatprep.subr.bf16.mxu1 %v5656_v62  ;;  %v1143_v62 = vld [vmem:[%s8343_s3 + $0xc58] sm:$0xff]  ;;  %v5710_v3 = vcombine.high %v1142_v57, %v1146_v60  ;;  %v5709_v9 = vcombine.low %v1142_v57, %v1146_v60 }
 0x271   :  { %v5711_v11 = vcombine.low %v1143_v62, %v1147_v0  ;;  %v1191_v57 = vld [vmem:[%s8343_s3 + $0xdd8] sm:$0xff] }
 0x272   :  { %4293 = vmatpush1.bf16.msra.mxu0 %v5653_v5  ;;  %v1154_v5 = vld [vmem:[%s8343_s3 + $0xcb0] sm:$0xff]  ;;  %v1195_v60 = vld [vmem:[%s8343_s3 + $0xdf8] sm:$0xff] }
 0x273   :  { %4457 = vmatpush1.bf16.msra.mxu1 %v5655_v7  ;;  %4294 = vmatprep.subr.bf16.mxu0 %v5662_v44  ;;  %v5712_v7 = vcombine.high %v1143_v62, %v1147_v0  ;;  %v1151_v44 = vld [vmem:[%s8343_s3 + $0xc98] sm:$0xff]  ;;  %v5718_v12 = vcombine.high %v1150_v4, %v1154_v5  ;;  %v5749_v0 = vcombine.low %v1182_v37, %v1186_v38 }
 0x274   :  { %4458 = vmatprep.subr.bf16.mxu1 %v5664_v8  ;;  %v1155_v8 = vld [vmem:[%s8343_s3 + $0xcb8] sm:$0xff] }
 0x275   :  { %v5720_v14 = vcombine.high %v1151_v44, %v1155_v8 }
 0x276   :  { %4295 = vmatpush1.bf16.msra.mxu0 %v5661_v15  ;;  %v1158_v15 = vld [vmem:[%s8343_s3 + $0xcd0] sm:$0xff] }
 0x277   :  { %4459 = vmatpush1.bf16.msra.mxu1 %v5663_v19  ;;  %4296 = vmatprep.subr.bf16.mxu0 %v5670_v22  ;;  %v1162_v19 = vld [vmem:[%s8343_s3 + $0xcf0] sm:$0xff]  ;;  %v1163_v22 = vld [vmem:[%s8343_s3 + $0xcf8] sm:$0xff] }
 0x278   :  { %4460 = vmatprep.subr.bf16.mxu1 %v5672_v20  ;;  %v5719_v20 = vcombine.low %v1151_v44, %v1155_v8  ;;  %v5726_v21 = vcombine.high %v1158_v15, %v1162_v19  ;;  %v1198_v44 = vld [vmem:[%s8343_s3 + $0xe10] sm:$0xff] }
 0x279   :  { %v1202_v8 = vld [vmem:[%s8343_s3 + $0xe30] sm:$0xff] }
 0x27a   :  { %4297 = vmatpush1.bf16.msra.mxu0 %v5669_v26  ;;  %v1167_v26 = vld [vmem:[%s8343_s3 + $0xd18] sm:$0xff] }
 0x27b   :  { %4461 = vmatpush1.bf16.msra.mxu1 %v5671_v16  ;;  %4298 = vmatprep.subr.bf16.mxu0 %v5678_v17  ;;  %v1171_v16 = vld [vmem:[%s8343_s3 + $0xd38] sm:$0xff]  ;;  %v5725_v17 = vcombine.low %v1158_v15, %v1162_v19  ;;  %v5766_v15 = vcombine.high %v1198_v44, %v1202_v8 }
 0x27c   :  { %4462 = vmatprep.subr.bf16.mxu1 %v5680_v18  ;;  %v5736_v13 = vcombine.high %v1167_v26, %v1171_v16 }
 0x27e   :  { %4299 = vmatpush1.bf16.msra.mxu0 %v5677_v31  ;;  %v1175_v31 = vld [vmem:[%s8343_s3 + $0xd58] sm:$0xff] }
 0x27f   :  { %4463 = vmatpush1.bf16.msra.mxu1 %v5679_v6  ;;  %4300 = vmatprep.subr.bf16.mxu0 %v5686_v33  ;;  %v1179_v6 = vld [vmem:[%s8343_s3 + $0xd78] sm:$0xff]  ;;  %v5733_v33 = vcombine.low %v1166_v28, %v1170_v25 }
 0x280   :  { %4464 = vmatprep.subr.bf16.mxu1 %v5688_v35  ;;  %v5735_v35 = vcombine.low %v1167_v26, %v1171_v16  ;;  %v5744_v2 = vcombine.high %v1175_v31, %v1179_v6  ;;  %v1214_v26 = vld [vmem:[%s8343_s3 + $0xe90] sm:$0xff] }
 0x281   :  { %v1218_v16 = vld [vmem:[%s8343_s3 + $0xeb0] sm:$0xff] }
 0x282   :  { %4301 = vmatpush1.bf16.msra.mxu0 %v5685_v39  ;;  %v1183_v39 = vld [vmem:[%s8343_s3 + $0xd98] sm:$0xff] }
 0x283   :  { %4465 = vmatpush1.bf16.msra.mxu1 %v5687_v41  ;;  %4302 = vmatprep.subr.bf16.mxu0 %v5694_v29  ;;  %v1187_v41 = vld [vmem:[%s8343_s3 + $0xdb8] sm:$0xff]  ;;  %v5741_v29 = vcombine.low %v1174_v52, %v1178_v30  ;;  %v5782_v52 = vcombine.high %v1214_v26, %v1218_v16 }
 0x284   :  { %4466 = vmatprep.subr.bf16.mxu1 %v5696_v43  ;;  %v5743_v43 = vcombine.low %v1175_v31, %v1179_v6  ;;  %v5752_v53 = vcombine.high %v1183_v39, %v1187_v41  ;;  %v1222_v31 = vld [vmem:[%s8343_s3 + $0xed0] sm:$0xff] }
 0x285   :  { %v1226_v6 = vld [vmem:[%s8343_s3 + $0xef0] sm:$0xff] }
 0x286   :  { %4303 = vmatpush1.bf16.msra.mxu0 %v5693_v59  ;;  %v1190_v59 = vld [vmem:[%s8343_s3 + $0xdd0] sm:$0xff]  ;;  %v5790_v37 = vcombine.high %v1222_v31, %v1226_v6 }
 0x287   :  { %4467 = vmatpush1.bf16.msra.mxu1 %v5695_v54  ;;  %4313 = vmatprep.subr.bf16.mxu0 %v5702_v55  ;;  %v1194_v54 = vld [vmem:[%s8343_s3 + $0xdf0] sm:$0xff] }
 0x288   :  { %4477 = vmatprep.subr.bf16.mxu1 %v5704_v56 }
 0x289   :  { %4305 = vmatmul.mubr.bf16.vlgmr.msra.gmra.mrb[12].mxu0 %v7121_v32 }
 0x28a   :  { %4469 = vmatmul.mubr.bf16.vlgmr.msra.gmra.mrb[12].mxu1 %v7121_v32  ;;  %4314 = vmatpush1.bf16.msra.mxu0 %v5701_v61  ;;  %v1159_v32 = vld [vmem:[%s8343_s3 + $0xcd8] sm:$0xff] }
 0x28b   :  { %4345 = vmatprep.mubr.bf16.mxu0 %v7135_v40  ;;  %4478 = vmatpush1.bf16.msra.mxu1 %v5703_v1  ;;  %v5728_v49 = vcombine.high %v1159_v32, %v1163_v22  ;;  %v5727_v18 = vcombine.low %v1159_v32, %v1163_v22  ;;  %v1206_v32 = vld [vmem:[%s8343_s3 + $0xe50] sm:$0xff] }
 0x28c   :  { %4509 = vmatprep.mubr.bf16.mxu1 %v7135_v40  ;;  %4315 = vmatprep.subr.bf16.mxu0 %v5710_v3  ;;  %v5717_v40 = vcombine.low %v1150_v4, %v1154_v5  ;;  %v5751_v4 = vcombine.low %v1183_v39, %v1187_v41  ;;  %v5758_v5 = vcombine.high %v1190_v59, %v1194_v54  ;;  %v1210_v22 = vld [vmem:[%s8343_s3 + $0xe70] sm:$0xff] }
 0x28d   :  { %4479 = vmatprep.subr.bf16.mxu1 %v5712_v7  ;;  %v5760_v7 = vcombine.high %v1191_v57, %v1195_v60  ;;  %v5774_v28 = vcombine.high %v1206_v32, %v1210_v22  ;;  %v1230_v39 = vld [vmem:[%s8343_s3 + $0xf10] sm:$0xff] }
 0x28e   :  { %4316 = vmatpush1.bf16.msra.mxu0 %v5709_v9  ;;  %v1199_v9 = vld [vmem:[%s8343_s3 + $0xe18] sm:$0xff]  ;;  %v1234_v41 = vld [vmem:[%s8343_s3 + $0xf30] sm:$0xff] }
 0x28f   :  { %4480 = vmatpush1.bf16.msra.mxu1 %v5711_v11  ;;  %4317 = vmatprep.subr.bf16.mxu0 %v5718_v12  ;;  %v1203_v11 = vld [vmem:[%s8343_s3 + $0xe38] sm:$0xff]  ;;  %v5757_v12 = vcombine.low %v1190_v59, %v1194_v54  ;;  %v5798_v59 = vcombine.high %v1230_v39, %v1234_v41 }
 0x290   :  { %4481 = vmatprep.subr.bf16.mxu1 %v5720_v14  ;;  %v5759_v14 = vcombine.low %v1191_v57, %v1195_v60  ;;  %v5768_v19 = vcombine.high %v1199_v9, %v1203_v11  ;;  %v1238_v57 = vld [vmem:[%s8343_s3 + $0xf50] sm:$0xff] }
 0x291   :  { %v1242_v60 = vld [vmem:[%s8343_s3 + $0xf70] sm:$0xff] }
 0x292   :  { %4318 = vmatpush1.bf16.msra.mxu0 %v5717_v40  ;;  %v1207_v40 = vld [vmem:[%s8343_s3 + $0xe58] sm:$0xff] }
 0x293   :  { %4482 = vmatpush1.bf16.msra.mxu1 %v5719_v20  ;;  %4319 = vmatprep.subr.bf16.mxu0 %v5726_v21  ;;  %v1211_v20 = vld [vmem:[%s8343_s3 + $0xe78] sm:$0xff]  ;;  %v5765_v21 = vcombine.low %v1198_v44, %v1202_v8 }
 0x294   :  { %4483 = vmatprep.subr.bf16.mxu1 %v5728_v49  ;;  %v5767_v49 = vcombine.low %v1199_v9, %v1203_v11  ;;  %v5776_v25 = vcombine.high %v1207_v40, %v1211_v20  ;;  %v1247_v44 = vld [vmem:[%s8343_s3 + $0xf98] sm:$0xff]  ;;  %v8089_v9 = vld [vmem:[%s8344_s4] sm:$0xff]  ;;  %v5805_v11 = vcombine.low %v1238_v57, %v1242_v60 }
 0x295   :  { %v1251_v8 = vld [vmem:[%s8343_s3 + $0xfb8] sm:$0xff] }
 0x296   :  { %4320 = vmatpush1.bf16.msra.mxu0 %v5725_v17  ;;  %v1215_v17 = vld [vmem:[%s8343_s3 + $0xe98] sm:$0xff] }
 0x297   :  { %4484 = vmatpush1.bf16.msra.mxu1 %v5727_v18  ;;  %4321 = vmatprep.subr.bf16.mxu0 %v5734_v27  ;;  %v1219_v18 = vld [vmem:[%s8343_s3 + $0xeb8] sm:$0xff]  ;;  %v5773_v27 = vcombine.low %v1206_v32, %v1210_v22  ;;  %v1258_v32 = vld [vmem:[%s8343_s3 + $0xff0] sm:$0xff]  ;;  %v1269_v22 = vrot.slane %v8089_v9, %v130_v50 }
 0x298   :  { %4485 = vmatprep.subr.bf16.mxu1 %v5736_v13  ;;  %v5775_v13 = vcombine.low %v1207_v40, %v1211_v20  ;;  %v5784_v30 = vcombine.high %v1215_v17, %v1219_v18  ;;  %v1255_v40 = vld [vmem:[%s8343_s3 + $0xfd8] sm:$0xff] }
 0x299   :  { %v1259_v20 = vld [vmem:[%s8343_s3 + $0xff8] sm:$0xff] }
 0x29a   :  { %4322 = vmatpush1.bf16.msra.mxu0 %v5733_v33  ;;  %v1223_v33 = vld [vmem:[%s8343_s3 + $0xed8] sm:$0xff]  ;;  %v5824_v50 = vcombine.high %v1255_v40, %v1259_v20 }
 0x29b   :  { %4486 = vmatpush1.bf16.msra.mxu1 %v5735_v35  ;;  %4323 = vmatprep.subr.bf16.mxu0 %v5742_v36  ;;  %v1227_v35 = vld [vmem:[%s8343_s3 + $0xef8] sm:$0xff]  ;;  %v5781_v36 = vcombine.low %v1214_v26, %v1218_v16 }
 0x29c   :  { %v7982_v51 = vpop.f32.mrb[8].mxu0  ;;  %v7984_v45 = vpop.f32.mrb[8].mxu1  ;;  %4487 = vmatprep.subr.bf16.mxu1 %v5744_v2  ;;  %v5783_v2 = vcombine.low %v1215_v17, %v1219_v18  ;;  %v5792_v38 = vcombine.high %v1223_v33, %v1227_v35  ;;  %v5823_v18 = vcombine.low %v1255_v40, %v1259_v20  ;;  %v6071_v40 = vld [vmem:[%s8345_s5 + $0x148] sm:$0xff]  }
 0x29d   :  { %v7992_v55 = vpop.f32.mrb[9].mxu0  ;;  %v7994_v56 = vpop.f32.mrb[9].mxu1 }
 0x29e   :  { %v4023_v61 = vpop.f32.mrb[10].mxu0  ;;  %v4187_v62 = vpop.f32.mrb[10].mxu1  ;;  %4324 = vmatpush1.bf16.msra.mxu0 %v5741_v29  ;;  %v1231_v29 = vld [vmem:[%s8343_s3 + $0xf18] sm:$0xff]  ;;  %v5979_v26 = vadd.f32 %v7992_v55, %v1269_v22  ;;  %v6037_v55 = vld [vmem:[%s8345_s5] sm:$0xff]  }
 0x29f   :  { %4488 = vmatpush1.bf16.msra.mxu1 %v5743_v43  ;;  %v4024_v1 = vpop.f32.mrb[11].mxu0  ;;  %v4188_v3 = vpop.f32.mrb[11].mxu1  ;;  %4325 = vmatprep.subr.bf16.mxu0 %v5750_v46  ;;  %v1235_v43 = vld [vmem:[%s8343_s3 + $0xf38] sm:$0xff]  ;;  %v5789_v46 = vcombine.low %v1222_v31, %v1226_v6  ;;  %v6040_v6 = vld [vmem:[%s8345_s5 + $0xc8] sm:$0xff]   ;;  %v6070_v22 = vld [vmem:[%s8345_s5 + $0x180] sm:$0xff]  }
 0x2a0   :  { %4489 = vmatprep.subr.bf16.mxu1 %v5752_v53  ;;  %v5791_v53 = vcombine.low %v1223_v33, %v1227_v35  ;;  %v5800_v54 = vcombine.high %v1231_v29, %v1235_v43  ;;  %v1239_v61 = vld [vmem:[%s8343_s3 + $0xf58] sm:$0xff]  ;;  %v5799_v1 = vcombine.low %v1231_v29, %v1235_v43  ;;  %v5806_v3 = vcombine.high %v1238_v57, %v1242_v60  ;;  %v6041_v35 = vld [vmem:[%s8345_s5 + $0x8] sm:$0xff]  }
 0x2a1   :  { %v1243_v62 = vld [vmem:[%s8343_s3 + $0xf78] sm:$0xff]  ;;  %v6055_v57 = vld [vmem:[%s8345_s5 + $0x68] sm:$0xff]  }
 0x2a2   :  { %4326 = vmatpush1.bf16.msra.mxu0 %v5749_v0  ;;  %v5797_v0 = vcombine.low %v1230_v39, %v1234_v41  ;;  %v6047_v39 = vld [vmem:[%s8345_s5 + $0x58] sm:$0xff]   ;;  %v6056_v60 = vld [vmem:[%s8345_s5 + $0xe8] sm:$0xff]  }
 0x2a3   :  { %4490 = vmatpush1.bf16.msra.mxu1 %v5751_v4  ;;  %4327 = vmatprep.subr.bf16.mxu0 %v5758_v5  ;;  %v5808_v4 = vcombine.high %v1239_v61, %v1243_v62  ;;  %v1246_v5 = vld [vmem:[%s8343_s3 + $0xf90] sm:$0xff]  ;;  %v6048_v41 = vld [vmem:[%s8345_s5 + $0xd8] sm:$0xff]  }
 0x2a4   :  { %4491 = vmatprep.subr.bf16.mxu1 %v5760_v7  ;;  %v1250_v7 = vld [vmem:[%s8343_s3 + $0xfb0] sm:$0xff]  ;;  %v6049_v29 = vld [vmem:[%s8345_s5 + $0x18] sm:$0xff]  }
 0x2a5   :  { %v6050_v43 = vld [vmem:[%s8345_s5 + $0x98] sm:$0xff]  }
 0x2a6   :  { %4328 = vmatpush1.bf16.msra.mxu0 %v5757_v12  ;;  %v5807_v12 = vcombine.low %v1239_v61, %v1243_v62  ;;  %v6057_v61 = vld [vmem:[%s8345_s5 + $0x28] sm:$0xff]   ;;  %v1265_v62 = vrot.slane %v8089_v9, %v126_v48  ;;  %v6061_v48 = vld [vmem:[%s8345_s5 + $0x30] sm:$0xff]  }
 0x2a7   :  { %4492 = vmatpush1.bf16.msra.mxu1 %v5759_v14  ;;  %4329 = vmatprep.subr.bf16.mxu0 %v5766_v15  ;;  %v5814_v14 = vcombine.high %v1246_v5, %v1250_v7  ;;  %v5816_v15 = vcombine.high %v1247_v44, %v1251_v8 }
 0x2a8   :  { %4493 = vmatprep.subr.bf16.mxu1 %v5768_v19  ;;  %v1254_v19 = vld [vmem:[%s8343_s3 + $0xfd0] sm:$0xff] }
 0x2a9   :  { %v5821_v17 = vcombine.low %v1254_v19, %v1258_v32 }
 0x2aa   :  { %4330 = vmatpush1.bf16.msra.mxu0 %v5765_v21  ;;  %v1277_v21 = vrot.slane %v8089_v9, %v138_v23  ;;  %v6035_v23 = vld [vmem:[%s8345_s5 + $0x40] sm:$0xff]  }
 0x2ab   :  { %4494 = vmatpush1.bf16.msra.mxu1 %v5767_v49  ;;  %4331 = vmatprep.subr.bf16.mxu0 %v5774_v28  ;;  %v5813_v49 = vcombine.low %v1246_v5, %v1250_v7  ;;  %v5815_v28 = vcombine.low %v1247_v44, %v1251_v8  ;;  %v5978_v5 = vadd.f32 %v7982_v51, %v1265_v62  ;;  %v6062_v7 = vld [vmem:[%s8345_s5 + $0xb0] sm:$0xff]   ;;  %v6064_v8 = vld [vmem:[%s8345_s5 + $0xf8] sm:$0xff]  }
 0x2ac   :  { %4495 = vmatprep.subr.bf16.mxu1 %v5776_v25  ;;  %v5822_v25 = vcombine.high %v1254_v19, %v1258_v32  ;;  %v5981_v16 = vadd.f32 %v7994_v56, %v1277_v21  ;;  %v6038_v56 = vld [vmem:[%s8345_s5 + $0x80] sm:$0xff]   ;;  %v6065_v51 = vld [vmem:[%s8345_s5 + $0x38] sm:$0xff]   ;;  %v6072_v21 = vld [vmem:[%s8345_s5 + $0x1c8] sm:$0xff]  }
 0x2ad   :  { %v6069_v19 = vld [vmem:[%s8345_s5 + $0x100] sm:$0xff]  }
 0x2ae   :  { %4332 = vmatpush1.bf16.msra.mxu0 %v5773_v27  ;;  %v6036_v27 = vld [vmem:[%s8345_s5 + $0xc0] sm:$0xff]  }
 0x2af   :  { %4496 = vmatpush1.bf16.msra.mxu1 %v5775_v13  ;;  %4333 = vmatprep.subr.bf16.mxu0 %v5782_v52  ;;  %v4519_v13 = vmax.f32 %v5979_v26, 0.0  ;;  %v4521_v52 = vmax.f32 %v5981_v16, 0.0  ;;  %v6077_v26 = vld [vmem:[%s8345_s5 + $0x110] sm:$0xff]  }
 0x2b0   :  { %4497 = vmatprep.subr.bf16.mxu1 %v5784_v30  ;;  %v6039_v30 = vld [vmem:[%s8345_s5 + $0x48] sm:$0xff]   ;;  %v6078_v16 = vld [vmem:[%s8345_s5 + $0x190] sm:$0xff]  }
 0x2b1   :  { %v4527_v31 = vpack.c.bf16 %v4519_v13, %v4519_v13  ;;  %v4529_v33 = vpack.c.bf16 %v4521_v52, %v4521_v52  ;;  %v6083_v13 = vld [vmem:[%s8345_s5 + $0x160] sm:$0xff]  }
 0x2b2   :  { %4334 = vmatpush1.bf16.msra.mxu0 %v5781_v36  ;;  %v6042_v36 = vld [vmem:[%s8345_s5 + $0x88] sm:$0xff]   ;;  %v6084_v52 = vld [vmem:[%s8345_s5 + $0x1e0] sm:$0xff]  }
 0x2b3   :  { %4498 = vmatpush1.bf16.msra.mxu1 %v5783_v2  ;;  %4335 = vmatprep.subr.bf16.mxu0 %v5790_v37  ;;  %v6043_v2 = vld [vmem:[%s8345_s5 + $0x50] sm:$0xff]  }
 0x2b4   :  { %4499 = vmatprep.subr.bf16.mxu1 %v5792_v38  ;;  %v6045_v37 = vld [vmem:[%s8345_s5 + $0x10] sm:$0xff]  }
 0x2b5   :  { %v6046_v38 = vld [vmem:[%s8345_s5 + $0x90] sm:$0xff]  }
 0x2b6   :  { %4336 = vmatpush1.bf16.msra.mxu0 %v5789_v46  ;;  %v6051_v46 = vld [vmem:[%s8345_s5 + $0x60] sm:$0xff]  }
 0x2b7   :  { %4500 = vmatpush1.bf16.msra.mxu1 %v5791_v53  ;;  %4337 = vmatprep.subr.bf16.mxu0 %v5798_v59  ;;  %v6052_v53 = vld [vmem:[%s8345_s5 + $0xe0] sm:$0xff]  }
 0x2b8   :  { %4501 = vmatprep.subr.bf16.mxu1 %v5800_v54  ;;  %v6053_v59 = vld [vmem:[%s8345_s5 + $0x20] sm:$0xff]  }
 0x2b9   :  { %v6054_v54 = vld [vmem:[%s8345_s5 + $0xa0] sm:$0xff]  }
 0x2ba   :  { %4338 = vmatpush1.bf16.msra.mxu0 %v5797_v0  ;;  %v6058_v0 = vld [vmem:[%s8345_s5 + $0xa8] sm:$0xff]  }
 0x2bb   :  { %4502 = vmatpush1.bf16.msra.mxu1 %v5799_v1  ;;  %4339 = vmatprep.subr.bf16.mxu0 %v5806_v3  ;;  %v6059_v1 = vld [vmem:[%s8345_s5 + $0x70] sm:$0xff]   ;;  %v1273_v3 = vrot.slane %v8089_v9, %v134_v63  ;;  %v6063_v63 = vld [vmem:[%s8345_s5 + $0x78] sm:$0xff]  }
 0x2bc   :  { %4503 = vmatprep.subr.bf16.mxu1 %v5808_v4  ;;  %v6060_v4 = vld [vmem:[%s8345_s5 + $0xf0] sm:$0xff]  }
 0x2bd   :  { %v5980_v44 = vadd.f32 %v7984_v45, %v1273_v3  ;;  %v6067_v45 = vld [vmem:[%s8345_s5 + $0x140] sm:$0xff]  }
 0x2be   :  { %4340 = vmatpush1.bf16.msra.mxu0 %v5805_v11  ;;  %v4518_v11 = vmax.f32 %v5978_v5, 0.0 }
 0x2bf   :  { %4504 = vmatpush1.bf16.msra.mxu1 %v5807_v12  ;;  %4341 = vmatprep.subr.bf16.mxu0 %v5814_v14  ;;  %v6066_v12 = vld [vmem:[%s8345_s5 + $0xb8] sm:$0xff]   ;;  %v4520_v14 = vmax.f32 %v5980_v44, 0.0 }
 0x2c0   :  { %4505 = vmatprep.subr.bf16.mxu1 %v5816_v15  ;;  %v6068_v15 = vld [vmem:[%s8345_s5 + $0x1c0] sm:$0xff]   ;;  %v4526_v32 = vpack.c.bf16 %v4518_v11, %v4518_v11 }
 0x2c1   :  { %v4528_v20 = vpack.c.bf16 %v4520_v14, %v4520_v14 }
 0x2c2   :  { %4342 = vmatpush1.bf16.msra.mxu0 %v5813_v49  ;;  %v6073_v49 = vld [vmem:[%s8345_s5 + $0x108] sm:$0xff]  }
 0x2c3   :  { %4506 = vmatpush1.bf16.msra.mxu1 %v5815_v28  ;;  %4343 = vmatprep.subr.bf16.mxu0 %v5822_v25  ;;  %v6074_v28 = vld [vmem:[%s8345_s5 + $0x188] sm:$0xff]   ;;  %v6075_v25 = vld [vmem:[%s8345_s5 + $0x150] sm:$0xff]  }
 0x2c4   :  { %4507 = vmatprep.subr.bf16.mxu1 %v5824_v50  ;;  %v6076_v50 = vld [vmem:[%s8345_s5 + $0x1d0] sm:$0xff]  }
 0x2c6   :  { %4344 = vmatpush1.bf16.msra.mxu0 %v5821_v17  ;;  %v6079_v17 = vld [vmem:[%s8345_s5 + $0x158] sm:$0xff]  }
 0x2c7   :  { %4508 = vmatpush1.bf16.msra.mxu1 %v5823_v18  ;;  %5890 = vmatprep.subr.bf16.mxu0 %v6035_v23  ;;  %v6080_v18 = vld [vmem:[%s8345_s5 + $0x1d8] sm:$0xff]  }
 0x2c8   :  { %5912 = vmatprep.subr.bf16.mxu1 %v6036_v27  ;;  %v6081_v23 = vld [vmem:[%s8345_s5 + $0x118] sm:$0xff]  }
 0x2c9   :  { %4346 = vmatmul.mubr.bf16.vlgmr.msra.gmra.mrb[12].mxu0 %v7328_v24  ;;  %v6082_v27 = vld [vmem:[%s8345_s5 + $0x198] sm:$0xff]  }
 0x2ca   :  { %4510 = vmatmul.mubr.bf16.vlgmr.msra.gmra.mrb[12].mxu1 %v7328_v24  ;;  %5891 = vmatpush3.bf16.msra.mxu0 %v6037_v55  ;;  %v6044_v24 = vld [vmem:[%s8345_s5 + $0xd0] sm:$0xff]   ;;  %v6085_v55 = vld [vmem:[%s8345_s5 + $0x120] sm:$0xff]  }
 0x2cb   :  { %5085 = vmatprep.mubr.bf16.mxu0 %v4527_v31  ;;  %5913 = vmatpush3.bf16.msra.mxu1 %v6038_v56  ;;  %v6086_v56 = vld [vmem:[%s8345_s5 + $0x1a0] sm:$0xff]   ;;  %v6088_v31 = vld [vmem:[%s8345_s5 + $0x1e8] sm:$0xff]  }
 0x2cc   :  { %5125 = vmatprep.mubr.bf16.mxu1 %v4529_v33  ;;  %5892 = vmatprep.subr.bf16.mxu0 %v6039_v30  ;;  %v6087_v30 = vld [vmem:[%s8345_s5 + $0x168] sm:$0xff]  }
 0x2cd   :  { %5914 = vmatprep.subr.bf16.mxu1 %v6040_v6  ;;  %v6089_v6 = vld [vmem:[%s8345_s5 + $0x128] sm:$0xff]  }
 0x2ce   :  { %5893 = vmatpush3.bf16.msra.mxu0 %v6041_v35  ;;  %v6090_v33 = vld [vmem:[%s8345_s5 + $0x1a8] sm:$0xff]   ;;  %v6091_v35 = vld [vmem:[%s8345_s5 + $0x170] sm:$0xff]  }
 0x2cf   :  { %5915 = vmatpush3.bf16.msra.mxu1 %v6042_v36  ;;  %5894 = vmatprep.subr.bf16.mxu0 %v6043_v2  ;;  %v6092_v36 = vld [vmem:[%s8345_s5 + $0x1f0] sm:$0xff]  }
 0x2d0   :  { %5916 = vmatprep.subr.bf16.mxu1 %v6044_v24  ;;  %v6093_v2 = vld [vmem:[%s8345_s5 + $0x130] sm:$0xff]  }
 0x2d1   :  { %v6094_v24 = vld [vmem:[%s8345_s5 + $0x1b0] sm:$0xff]  }
 0x2d2   :  { %5895 = vmatpush3.bf16.msra.mxu0 %v6045_v37  ;;  %v6095_v37 = vld [vmem:[%s8345_s5 + $0x178] sm:$0xff]  }
 0x2d3   :  { %5917 = vmatpush3.bf16.msra.mxu1 %v6046_v38  ;;  %5896 = vmatprep.subr.bf16.mxu0 %v6047_v39  ;;  %v6096_v38 = vld [vmem:[%s8345_s5 + $0x1f8] sm:$0xff]  }
 0x2d4   :  { %5918 = vmatprep.subr.bf16.mxu1 %v6048_v41  ;;  %v6097_v39 = vld [vmem:[%s8345_s5 + $0x138] sm:$0xff]  }
 0x2d5   :  { %v6098_v41 = vld [vmem:[%s8345_s5 + $0x1b8] sm:$0xff]  }
 0x2d6   :  { %5897 = vmatpush3.bf16.msra.mxu0 %v6049_v29  ;;  %v1281_v29 = vrot.slane %v8089_v9, %v142_v42 }
 0x2d7   :  { %5919 = vmatpush3.bf16.msra.mxu1 %v6050_v43  ;;  %5898 = vmatprep.subr.bf16.mxu0 %v6051_v46  ;;  %v1289_v43 = vrot.slane %v8089_v9, %v150_v34  ;;  %v1285_v46 = vrot.slane %v8089_v9, %v146_v10 }
 0x2d8   :  { %5920 = vmatprep.subr.bf16.mxu1 %v6052_v53  ;;  %v1293_v53 = vrot.slane %v8089_v9, %v154_v58 }
 0x2da   :  { %5899 = vmatpush3.bf16.msra.mxu0 %v6053_v59 }
 0x2db   :  { %5921 = vmatpush3.bf16.msra.mxu1 %v6054_v54  ;;  %5900 = vmatprep.subr.bf16.mxu0 %v6055_v57 }
 0x2dc   :  { %5922 = vmatprep.subr.bf16.mxu1 %v6056_v60 }
 0x2de   :  { %5901 = vmatpush3.bf16.msra.mxu0 %v6057_v61 }
 0x2df   :  { %5923 = vmatpush3.bf16.msra.mxu1 %v6058_v0  ;;  %5902 = vmatprep.subr.bf16.mxu0 %v6059_v1 }
 0x2e0   :  { %5924 = vmatprep.subr.bf16.mxu1 %v6060_v4 }
 0x2e2   :  { %5903 = vmatpush3.bf16.msra.mxu0 %v6061_v48 }
 0x2e3   :  { %5925 = vmatpush3.bf16.msra.mxu1 %v6062_v7  ;;  %5904 = vmatprep.subr.bf16.mxu0 %v6063_v63 }
 0x2e4   :  { %5926 = vmatprep.subr.bf16.mxu1 %v6064_v8 }
 0x2e6   :  { %5905 = vmatpush3.bf16.msra.mxu0 %v6065_v51  ;;  %v5825_v51 = vld [vmem:[%s8346_s6] ss:$0 sm:$0xff]  ;;  %s6124_s6 = smov [#allocation2]  }
 0x2e7   :  { %5927 = vmatpush3.bf16.msra.mxu1 %v6066_v12  ;;  %5934 = vmatprep.subr.bf16.mxu0 %v6067_v45  ;;  %s5220_s18 = sshll.u32 %s6124_s6, 4  ;;  %s5221_s18 = int_to_ptr.vmem [resolvable:$true] %s5220_s18 }
 0x2e8   :  { %5956 = vmatprep.subr.bf16.mxu1 %v6068_v15  ;;  %s6100_s19 = scalar_lea.vmem %s5221_s18, 32  ;;  %p6105_p1 = scmp.lt.s32.totalorder %s5221_s18, %s5221_s18 }
 0x2e9   :  { %5086 = vmatmul.mubr.bf16.vlgmr.msra.gmra.mrb[16].mxu0 %v4526_v32  ;;  %p6101_p0 = scmp.ne.s32.totalorder %s5221_s18, %s6100_s19  ;;  %p6106_p2 = scmp.lt.s32.totalorder %s6100_s19, %s6100_s19 }
 0x2ea   :  { %5126 = vmatmul.mubr.bf16.vlgmr.msra.gmra.mrb[16].mxu1 %v4528_v20  ;;  %5935 = vmatpush3.bf16.msra.mxu0 %v6069_v19 }
 0x2eb   :  { %5957 = vmatpush3.bf16.msra.mxu1 %v6070_v22  ;;  %5936 = vmatprep.subr.bf16.mxu0 %v6071_v40  ;;  %p6107_p3 = por %p6106_p2, %p6105_p1 }
 0x2ec   :  { %5958 = vmatprep.subr.bf16.mxu1 %v6072_v21 }
 0x2ed   :  { %p6108_p4 = pnand %p6107_p3, %p6101_p0 }
 0x2ee   :  { %5937 = vmatpush3.bf16.msra.mxu0 %v6073_v49 }
 0x2ef   :  { %5959 = vmatpush3.bf16.msra.mxu1 %v6074_v28  ;;  %5938 = vmatprep.subr.bf16.mxu0 %v6075_v25 }
 0x2f0   :  { %5960 = vmatprep.subr.bf16.mxu1 %v6076_v50 }
 0x2f2   :  { %5939 = vmatpush3.bf16.msra.mxu0 %v6077_v26 }
 0x2f3   :  { %5961 = vmatpush3.bf16.msra.mxu1 %v6078_v16  ;;  %5940 = vmatprep.subr.bf16.mxu0 %v6079_v17 }
 0x2f4   :  { %5962 = vmatprep.subr.bf16.mxu1 %v6080_v18 }
 0x2f6   :  { %5941 = vmatpush3.bf16.msra.mxu0 %v6081_v23 }
 0x2f7   :  { %5963 = vmatpush3.bf16.msra.mxu1 %v6082_v27  ;;  %5942 = vmatprep.subr.bf16.mxu0 %v6083_v13 }
 0x2f8   :  { %5964 = vmatprep.subr.bf16.mxu1 %v6084_v52 }
 0x2fa   :  { %5943 = vmatpush3.bf16.msra.mxu0 %v6085_v55 }
 0x2fb   :  { %5965 = vmatpush3.bf16.msra.mxu1 %v6086_v56  ;;  %5944 = vmatprep.subr.bf16.mxu0 %v6087_v30 }
 0x2fc   :  { %5966 = vmatprep.subr.bf16.mxu1 %v6088_v31 }
 0x2fe   :  { %5945 = vmatpush3.bf16.msra.mxu0 %v6089_v6 }
 0x2ff   :  { %5967 = vmatpush3.bf16.msra.mxu1 %v6090_v33  ;;  %5946 = vmatprep.subr.bf16.mxu0 %v6091_v35 }
 0x300   :  { %5968 = vmatprep.subr.bf16.mxu1 %v6092_v36 }
 0x302   :  { %5947 = vmatpush3.bf16.msra.mxu0 %v6093_v2 }
 0x303   :  { %5969 = vmatpush3.bf16.msra.mxu1 %v6094_v24  ;;  %5948 = vmatprep.subr.bf16.mxu0 %v6095_v37 }
 0x304   :  { %5970 = vmatprep.subr.bf16.mxu1 %v6096_v38 }
 0x306   :  { %5949 = vmatpush3.bf16.msra.mxu0 %v6097_v39 }
 0x307   :  { %5971 = vmatpush3.bf16.msra.mxu1 %v6098_v41 }
 0x39c   :  { %v4347_v59 = vpop.f32.mrb[12].mxu0 }
 0x39d   :  { %v5982_v54 = vadd.f32 %v4347_v59, %v1281_v29  ;;  %v4511_v57 = vpop.f32.mrb[12].mxu1  ;;  %v4349_v60 = vpop.f32.mrb[13].mxu0 }
 0x39e   :  { %v5984_v61 = vadd.f32 %v4511_v57, %v1289_v43  ;;  %v5983_v62 = vadd.f32 %v4349_v60, %v1285_v46  ;;  %v4513_v0 = vpop.f32.mrb[13].mxu1  ;;  %v4351_v42 = vpop.f32.mrb[14].mxu0 }
 0x39f   :  { %v4522_v1 = vmax.f32 %v5982_v54, 0.0  ;;  %v5985_v3 = vadd.f32 %v4513_v0, %v1293_v53  ;;  %v4515_v4 = vpop.f32.mrb[14].mxu1  ;;  %v4352_v34 = vpop.f32.mrb[15].mxu0 }
 0x3a0   :  { %v4524_v48 = vmax.f32 %v5984_v61, 0.0  ;;  %v4523_v5 = vmax.f32 %v5983_v62, 0.0  ;;  %v4516_v7 = vpop.f32.mrb[15].mxu1 }
 0x3a1   :  { %v4525_v10 = vmax.f32 %v5985_v3, 0.0  ;;  %v4530_v47 = vpack.c.bf16 %v4522_v1, %v4522_v1 }
 0x3a2   :  { %v4531_v63 = vpack.c.bf16 %v4523_v5, %v4523_v5  ;;  %v4532_v58 = vpack.c.bf16 %v4524_v48, %v4524_v48 }
 0x3a3   :  { %v4533_v44 = vpack.c.bf16 %v4525_v10, %v4525_v10 }
 0x3a4   :  { %5165 = vmatprep.mubr.bf16.mxu0 %v4531_v63 }
 0x3a5   :  { %5205 = vmatprep.mubr.bf16.mxu1 %v4533_v44  ;;  %5166 = vmatmul.mubr.bf16.vlgmr.msra.gmra.mrb[20].mxu0 %v4530_v47 }
 0x3a6   :  { %5206 = vmatmul.mubr.bf16.vlgmr.msra.gmra.mrb[20].mxu1 %v4532_v58 }
 0x3bc   :  { %v5906_v9 = vpop.f32.mrb[16].mxu0 }
 0x3bd   :  { %v5928_v8 = vpop.f32.mrb[16].mxu1  ;;  %v5907_v11 = vpop.f32.mrb[17].mxu0 }
 0x3be   :  { %v5908_v12 = vadd.f32 %v5907_v11, %v5906_v9  ;;  %v5929_v45 = vpop.f32.mrb[17].mxu1  ;;  %v5909_v14 = vpop.f32.mrb[18].mxu0 }
 0x3bf   :  { %v5930_v15 = vadd.f32 %v5929_v45, %v5928_v8  ;;  %v5931_v19 = vpop.f32.mrb[18].mxu1  ;;  %v5910_v32 = vpop.f32.mrb[19].mxu0 }
 0x3c0   :  { %v5088_v22 = vadd.f32 %v5908_v12, %v5825_v51  ;;  %v5932_v40 = vpop.f32.mrb[19].mxu1 }
 0x3c2   :  { %v5128_v20 = vadd.f32 %v5930_v15, %v5088_v22 }
 0x478   :  { %v5950_v21 = vpop.f32.mrb[20].mxu0 }
 0x479   :  { %v5972_v49 = vpop.f32.mrb[20].mxu1  ;;  %v5951_v28 = vpop.f32.mrb[21].mxu0 }
 0x47a   :  { %v5952_v25 = vadd.f32 %v5951_v28, %v5950_v21  ;;  %v5973_v50 = vpop.f32.mrb[21].mxu1  ;;  %v5953_v26 = vpop.f32.mrb[22].mxu0 }
 0x47b   :  { %v5974_v16 = vadd.f32 %v5973_v50, %v5972_v49  ;;  %v5975_v17 = vpop.f32.mrb[22].mxu1  ;;  %v5954_v18 = vpop.f32.mrb[23].mxu0 }
 0x47c   :  { %v5168_v23 = vadd.f32 %v5952_v25, %v5128_v20  ;;  %v5976_v27 = vpop.f32.mrb[23].mxu1 }
 0x47e   :  { %v5208_v13 = vadd.f32 %v5974_v16, %v5168_v23 }
 0x480   :  { %5213 = vst [vmem:[#allocation2] sm:$0x3] %v5208_v13 }
 0x481   :  { %6111 = shalt.err (!%p6108_p4)
}
 0x482   :  { %s6112_s22 = scalar_lea.hbm %s8347_s7, 32 }
 0x483   :  { %p6113_p5 = scmp.ne.s32.totalorder %s8347_s7, %s6112_s22  ;;  %p6116_p6 = scmp.lt.u32.totalorder %s6112_s22, %s8347_s7 }
 0x485   :  { %p6118_p7 = pnand %p6116_p6, %p6113_p5 }
 0x487   :  { %6121 = shalt.err (!%p6118_p7)
}
 0x488   :  { %5223 = dma.vmem_to_hbm [thread:$0]  %s5221_s18, 32, %s8347_s7, [#allocation3]  }
 0x489   :  { %6122 = dma.done.wait [#allocation3], 32  }
 0x48a   :  { %6123 = vsyncadd [#allocation3], 4294967264 }
 0x48b   :  { %5227 = vsyncpa [#allocation3], 1 }

</bundles_post_ra>
